<compile_context>
chip_gen: v7x
topology: tpu7x:2x2x1
jax: 0.10.0
libtpu: 0.0.40
codegen_flags: <defaults>
</compile_context>

<pallas_src>
import functools

import jax
import jax.numpy as jnp
import numpy as np
from jax.experimental import pallas as pl
from jax.experimental.pallas import tpu as pltpu

EPS = 1e-5
PAD_ROWS = 8  # sublane-tile-aligned border of the padded conv buffer


# ------------------------------ fused forward kernel ------------------------------
def _fused_forward_kernel(x_ref, w0_ref, b0_ref, w1_ref, b1_ref, w2_ref, b2_ref,
                          wf1_ref, bf1_ref, wf2_ref, bf2_ref, wf3_ref, bf3_ref,
                          o_ref, xpad_ref, *, pool):
    bb, L, KC0 = x_ref.shape
    C = b0_ref.shape[-1]
    K1 = w1_ref.shape[0]
    K2 = w2_ref.shape[0]
    Lp = wf1_ref.shape[0]
    H1 = wf1_ref.shape[-1]
    BL = bb * L

    # Zero the aligned borders ONCE; they serve both ResnetBlock convs (pads <= 8).
    zeros8 = jnp.zeros((bb, PAD_ROWS, C), jnp.float32)
    xpad_ref[:, 0:PAD_ROWS, :] = zeros8
    xpad_ref[:, PAD_ROWS + L:PAD_ROWS + L + PAD_ROWS, :] = zeros8

    # conv0 + BN + ReLU: host-side im2col -> one MXU matmul, no in-kernel staging.
    h0 = jnp.dot(x_ref[...].reshape(BL, KC0), w0_ref[...],
                 preferred_element_type=jnp.float32) + b0_ref[...]
    h0 = jnp.maximum(h0, 0.0)                                        # (BL, C)

    def conv(body, w_ref, b_ref, K, relu):
        # 'same' Conv1d (odd K), eval-BN folded into w/b.  body: (BL, C) channels-last.
        # One aligned body store, then K tap matmuls accumulated straight off xpad.
        xpad_ref[:, PAD_ROWS:PAD_ROWS + L, :] = body.reshape(bb, L, C)
        pad = K // 2
        acc = b_ref[...]                                             # (1, C) broadcast
        for k in range(K):
            off = PAD_ROWS - pad + k
            tap = xpad_ref[:, off:off + L, :].reshape(BL, C)
            acc = acc + jnp.dot(tap, w_ref[k], preferred_element_type=jnp.float32)
        return jnp.maximum(acc, 0.0) if relu else acc

    h1 = conv(h0, w1_ref, b1_ref, K1, True)                          # (BL, C)
    h2 = conv(h1, w2_ref, b2_ref, K2, False) + h0                    # residual add

    # AvgPool1d(pool) + ReLU + fc1, fused: per pooled position sum 'pool' rows,
    # scale, relu, and contract against the pre-permuted (Lp, C, H1) fc1 weights.
    h2_3 = h2.reshape(bb, L, C)
    inv = jnp.float32(1.0 / pool)
    acc1 = jnp.zeros((bb, H1), jnp.float32)
    for lp in range(Lp):
        s = h2_3[:, lp * pool, :]
        for p in range(1, pool):
            s = s + h2_3[:, lp * pool + p, :]
        pooled = jnp.maximum(s * inv, 0.0)                           # (bb, C)
        acc1 = acc1 + jnp.dot(pooled, wf1_ref[lp],
                              preferred_element_type=jnp.float32)

    f = jnp.maximum(acc1 + bf1_ref[...], 0.0)
    f = jnp.maximum(jnp.dot(f, wf2_ref[...], preferred_element_type=jnp.float32)
                    + bf2_ref[...], 0.0)
    o_ref[...] = (jnp.dot(f, wf3_ref[...], preferred_element_type=jnp.float32)
                  + bf3_ref[...])


# ---------------------------- parameter preparation -------------------------------
def prepare_params(tp, *, in_size, maxpool=4):
    """Fold eval-mode BatchNorm into conv weights/bias and convert PyTorch layouts:
    conv0 -> im2col (K0*Cin, C); conv1/conv2 -> per-tap (K, Cin, Cout); fc1 -> the
    pooled-position-major 3-D form (Lp, C, H1) matching PyTorch's channel-major
    Flatten; fc2/fc3 -> (in, out)."""
    def fold(w_t, b_t, bn):
        gamma, beta, mean, var = bn
        scale = gamma / jnp.sqrt(var + EPS)                          # (Cout,)
        w = jnp.transpose(w_t, (2, 1, 0)) * scale                    # (K, Cin, Cout)
        b = (b_t - mean) * scale + beta
        return w, b.reshape(1, -1)

    w0, b0 = fold(tp['conv0_w'], tp['conv0_b'], tp['bn0'])
    w1, b1 = fold(tp['conv1_w'], tp['conv1_b'], tp['bn1'])
    w2, b2 = fold(tp['conv2_w'], tp['conv2_b'], tp['bn2'])
    K0, Cin, C = w0.shape
    w0 = w0.reshape(K0 * Cin, C)

    Lp = in_size // maxpool
    H1 = tp['fc1_w'].shape[0]
    assert tp['fc1_w'].shape[1] == C * Lp
    # PyTorch flatten order is channel-major (row c*Lp + lp); regroup to (Lp, C, H1).
    wf1 = jnp.transpose(tp['fc1_w']).reshape(C, Lp, H1).transpose(1, 0, 2)
    wf2 = jnp.transpose(tp['fc2_w'])
    wf3 = jnp.transpose(tp['fc3_w'])
    return dict(w0=w0, b0=b0, w1=w1, b1=b1, w2=w2, b2=b2,
                wf1=wf1, bf1=tp['fc1_b'].reshape(1, -1),
                wf2=wf2, bf2=tp['fc2_b'].reshape(1, -1),
                wf3=wf3, bf3=tp['fc3_b'].reshape(1, -1))


# --------------------------------- forward wrapper --------------------------------
def forward(x, kp, *, maxpool=4, batch_block=None):
    """x: (B, 1, Cin, L) — the same tensor the PyTorch module receives before squeeze(1)."""
    B, one, Cin, L = x.shape
    assert one == 1
    C = kp['b0'].shape[-1]
    K0 = kp['w0'].shape[0] // Cin
    K1 = kp['w1'].shape[0]
    K2 = kp['w2'].shape[0]
    assert K0 % 2 == 1 and K1 % 2 == 1 and K2 % 2 == 1               # 'same' convs
    assert max(K1, K2) // 2 <= PAD_ROWS
    assert L % maxpool == 0 and L % 8 == 0
    Lp = L // maxpool
    out_size = kp['bf3'].shape[-1]
    assert kp['wf1'].shape == (Lp, C, kp['bf1'].shape[-1])

    # squeeze(1) + channels-last + tiny host-side im2col for the first conv only.
    xs = x.reshape(B, Cin, L)
    xk = xs.reshape(B, L, Cin) if Cin == 1 else jnp.transpose(xs, (0, 2, 1))
    pad0 = K0 // 2
    xp = jnp.pad(xk, ((0, 0), (pad0, pad0), (0, 0)))
    xcols = jnp.concatenate([xp[:, k:k + L, :] for k in range(K0)], axis=-1)  # (B,L,K0*Cin)

    # Batch blocking: bb == B -> one grid step; for large B on v7x pick bb = B // 2n
    # (multiple of 8) so the "parallel" grid axis shards across both TensorCores.
    bb = B if batch_block is None else batch_block
    assert B % bb == 0 and (bb == B or bb % 8 == 0)
    grid = (B // bb,)

    kern = functools.partial(_fused_forward_kernel, pool=maxpool)

    def _const_spec(a):
        return pl.BlockSpec(a.shape, lambda i, _nd=a.ndim: (0,) * _nd)

    weights = (kp['w0'], kp['b0'], kp['w1'], kp['b1'], kp['w2'], kp['b2'],
               kp['wf1'], kp['bf1'], kp['wf2'], kp['bf2'], kp['wf3'], kp['bf3'])

    return pl.pallas_call(
        kern,
        out_shape=jax.ShapeDtypeStruct((B, out_size), jnp.float32),
        grid_spec=pltpu.PrefetchScalarGridSpec(
            num_scalar_prefetch=0,
            grid=grid,
            in_specs=[pl.BlockSpec((bb, L, K0 * Cin), lambda i: (i, 0, 0))]
                     + [_const_spec(w) for w in weights],
            out_specs=pl.BlockSpec((bb, out_size), lambda i: (i, 0)),
            scratch_shapes=[
                # padded conv buffer: 8-row aligned borders, lane dim exactly C
                pltpu.VMEM((bb, PAD_ROWS + L + PAD_ROWS, C), jnp.float32),
            ]),
        compiler_params=pltpu.CompilerParams(
            dimension_semantics=("parallel",),
            vmem_limit_bytes=32 * 1024 * 1024),
    )(xcols, *weights)


# ------------------------- plain-JAX reference (PyTorch semantics) ----------------
def ref_forward(x, tp, *, maxpool=4):
    xs = jnp.squeeze(x, 1)                                           # (B, Cin, L)

    def conv_bn(x_ncl, w_t, b_t, bn, relu):
        gamma, beta, mean, var = bn
        Cout, Cin, K = w_t.shape
        pad = K // 2
        L = x_ncl.shape[-1]
        Lout = L + 2 * pad - K + 1
        xpd = jnp.pad(x_ncl, ((0, 0), (0, 0), (pad, pad)))
        y = sum(jnp.einsum('bcl,oc->bol', xpd[:, :, k:k + Lout], w_t[:, :, k])
                for k in range(K))
        y = y + b_t[None, :, None]
        y = ((y - mean[None, :, None]) / jnp.sqrt(var + EPS)[None, :, None]
             * gamma[None, :, None] + beta[None, :, None])
        return jnp.maximum(y, 0.0) if relu else y

    h0 = conv_bn(xs, tp['conv0_w'], tp['conv0_b'], tp['bn0'], True)
    h1 = conv_bn(h0, tp['conv1_w'], tp['conv1_b'], tp['bn1'], True)
    h2 = conv_bn(h1, tp['conv2_w'], tp['conv2_b'], tp['bn2'], False) + h0
    B, C, L = h2.shape
    h2 = jnp.maximum(jnp.mean(h2.reshape(B, C, L // maxpool, maxpool), axis=3), 0.0)
    f = h2.reshape(B, -1)                                            # channel-major Flatten
    f = jnp.maximum(f @ tp['fc1_w'].T + tp['fc1_b'], 0.0)
    f = jnp.maximum(f @ tp['fc2_w'].T + tp['fc2_b'], 0.0)
    return f @ tp['fc3_w'].T + tp['fc3_b']


if __name__ == "__main__":
    # ResidualNetworkD1(in_size=64, out_size=10) defaults: convolutions=[16,16],
    # kernel_size=[7,7] (second block conv is k=5), hiddenlayer=[512,256], maxpool=4.
    B, Cin, L, out_size = 2, 1, 64, 10
    C, hidden, maxpool = 16, [512, 256], 4

    key = jax.random.PRNGKey(0)
    _keys = iter(jax.random.split(key, 32))

    def n(shape, s=0.1):
        return s * jax.random.normal(next(_keys), shape, jnp.float32)

    def bn(c):  # (gamma, beta, running_mean, running_var>0)
        return (1.0 + n((c,)), n((c,)), n((c,)), 1.0 + jnp.abs(n((c,))))

    flat_in = (L // maxpool) * C                                     # 16 * 16 = 256
    torch_params = dict(
        conv0_w=n((C, Cin, 7)), conv0_b=n((C,)), bn0=bn(C),
        conv1_w=n((C, C, 7)),   conv1_b=n((C,)), bn1=bn(C),
        conv2_w=n((C, C, 5)),   conv2_b=n((C,)), bn2=bn(C),
        fc1_w=n((hidden[0], flat_in), 0.05), fc1_b=n((hidden[0],)),
        fc2_w=n((hidden[1], hidden[0]), 0.05), fc2_b=n((hidden[1],)),
        fc3_w=n((out_size, hidden[1]), 0.05), fc3_b=n((out_size,)),
    )
    x = jax.random.normal(next(_keys), (B, 1, Cin, L), jnp.float32)

    kp = prepare_params(torch_params, in_size=L, maxpool=maxpool)
    out = jax.block_until_ready(forward(x, kp, maxpool=maxpool))
    ref = ref_forward(x, torch_params, maxpool=maxpool)
    np.testing.assert_allclose(np.asarray(out), np.asarray(ref), rtol=2e-4, atol=2e-4)
    assert out.shape == (B, out_size)
    print("KERNEL_OK")
</pallas_src>

<mosaic_0001>
module attributes {stable_mosaic.version = 11 : i64} {
  func.func @_fused_forward_kernel(%arg0: i32, %arg1: memref<2x64x7xf32, #tpu.memory_space<vmem>>, %arg2: memref<7x16xf32, #tpu.memory_space<vmem>>, %arg3: memref<1x16xf32, #tpu.memory_space<vmem>>, %arg4: memref<7x16x16xf32, #tpu.memory_space<vmem>>, %arg5: memref<1x16xf32, #tpu.memory_space<vmem>>, %arg6: memref<5x16x16xf32, #tpu.memory_space<vmem>>, %arg7: memref<1x16xf32, #tpu.memory_space<vmem>>, %arg8: memref<16x16x512xf32, #tpu.memory_space<vmem>>, %arg9: memref<1x512xf32, #tpu.memory_space<vmem>>, %arg10: memref<512x256xf32, #tpu.memory_space<vmem>>, %arg11: memref<1x256xf32, #tpu.memory_space<vmem>>, %arg12: memref<256x10xf32, #tpu.memory_space<vmem>>, %arg13: memref<1x10xf32, #tpu.memory_space<vmem>>, %arg14: memref<2x10xf32, #tpu.memory_space<vmem>>, %arg15: memref<2x80x16xf32, #tpu.memory_space<vmem>>) attributes {dimension_semantics = [#tpu.dimension_semantics<parallel>], iteration_bounds = array<i64: 1>, scalar_prefetch = 0 : i64, scratch_operands = 1 : i64, tpu.core_type = #tpu.core_type<tc>, window_params = [{transform_indices = @transform_0, window_bounds = array<i64: 2, 64, 7>}, {pipeline_mode = #tpu.pipeline_mode<synchronous>, transform_indices = @transform_1, window_bounds = array<i64: 7, 16>}, {pipeline_mode = #tpu.pipeline_mode<synchronous>, transform_indices = @transform_2, window_bounds = array<i64: 1, 16>}, {pipeline_mode = #tpu.pipeline_mode<synchronous>, transform_indices = @transform_3, window_bounds = array<i64: 7, 16, 16>}, {pipeline_mode = #tpu.pipeline_mode<synchronous>, transform_indices = @transform_4, window_bounds = array<i64: 1, 16>}, {pipeline_mode = #tpu.pipeline_mode<synchronous>, transform_indices = @transform_5, window_bounds = array<i64: 5, 16, 16>}, {pipeline_mode = #tpu.pipeline_mode<synchronous>, transform_indices = @transform_6, window_bounds = array<i64: 1, 16>}, {pipeline_mode = #tpu.pipeline_mode<synchronous>, transform_indices = @transform_7, window_bounds = array<i64: 16, 16, 512>}, {pipeline_mode = #tpu.pipeline_mode<synchronous>, transform_indices = @transform_8, window_bounds = array<i64: 1, 512>}, {pipeline_mode = #tpu.pipeline_mode<synchronous>, transform_indices = @transform_9, window_bounds = array<i64: 512, 256>}, {pipeline_mode = #tpu.pipeline_mode<synchronous>, transform_indices = @transform_10, window_bounds = array<i64: 1, 256>}, {pipeline_mode = #tpu.pipeline_mode<synchronous>, transform_indices = @transform_11, window_bounds = array<i64: 256, 10>}, {pipeline_mode = #tpu.pipeline_mode<synchronous>, transform_indices = @transform_12, window_bounds = array<i64: 1, 10>}, {transform_indices = @transform_13, window_bounds = array<i64: 2, 10>}]} {
    %cst = arith.constant 0.000000e+00 : f32
    %0 = vector.broadcast %cst : f32 to vector<2x8x16xf32>
    %c0 = arith.constant 0 : index
    %c0_0 = arith.constant 0 : index
    %c0_1 = arith.constant 0 : index
    %1 = vector.load %arg15[%c0, %c0_0, %c0_1] : memref<2x80x16xf32, #tpu.memory_space<vmem>>, vector<2x8x16xf32>
    tpu.vector_store %arg15[%c0, %c0_0, %c0_1], %0 {strides = array<i32>} : memref<2x80x16xf32, #tpu.memory_space<vmem>>, vector<2x8x16xf32>,
    %c0_2 = arith.constant 0 : index
    %c72 = arith.constant 72 : index
    %c0_3 = arith.constant 0 : index
    %2 = vector.load %arg15[%c0_2, %c72, %c0_3] : memref<2x80x16xf32, #tpu.memory_space<vmem>>, vector<2x8x16xf32>
    tpu.vector_store %arg15[%c0_2, %c72, %c0_3], %0 {strides = array<i32>} : memref<2x80x16xf32, #tpu.memory_space<vmem>>, vector<2x8x16xf32>,
    %c0_4 = arith.constant 0 : index
    %c0_5 = arith.constant 0 : index
    %c0_6 = arith.constant 0 : index
    %3 = vector.load %arg1[%c0_4, %c0_5, %c0_6] : memref<2x64x7xf32, #tpu.memory_space<vmem>>, vector<2x64x7xf32>
    %4 = vector.shape_cast %3 : vector<2x64x7xf32> to vector<128x7xf32>
    %c0_7 = arith.constant 0 : index
    %c0_8 = arith.constant 0 : index
    %5 = vector.load %arg2[%c0_7, %c0_8] : memref<7x16xf32, #tpu.memory_space<vmem>>, vector<7x16xf32>
    %cst_9 = arith.constant dense<0.000000e+00> : vector<128x16xf32>
    %6 = tpu.matmul %4, %5, %cst_9 {dimension_numbers = #tpu.dot_dimension_numbers<[1], [0], [0], [1], [0, 0, 1, 1], [], []>} : vector<128x7xf32>, vector<7x16xf32>, vector<128x16xf32> -> vector<128x16xf32>
    %c0_10 = arith.constant 0 : index
    %c0_11 = arith.constant 0 : index
    %7 = vector.load %arg3[%c0_10, %c0_11] : memref<1x16xf32, #tpu.memory_space<vmem>>, vector<1x16xf32>
    %8 = vector.broadcast %7 : vector<1x16xf32> to vector<128x16xf32>
    %9 = arith.addf %6, %8 : vector<128x16xf32>
    %cst_12 = arith.constant 0.000000e+00 : f32
    %10 = vector.broadcast %cst_12 : f32 to vector<128x16xf32>
    %11 = arith.maximumf %9, %10 : vector<128x16xf32>
    %12 = vector.shape_cast %11 : vector<128x16xf32> to vector<2x64x16xf32>
    %c0_13 = arith.constant 0 : index
    %c8 = arith.constant 8 : index
    %c0_14 = arith.constant 0 : index
    %13 = vector.load %arg15[%c0_13, %c8, %c0_14] : memref<2x80x16xf32, #tpu.memory_space<vmem>>, vector<2x64x16xf32>
    tpu.vector_store %arg15[%c0_13, %c8, %c0_14], %12 {strides = array<i32>} : memref<2x80x16xf32, #tpu.memory_space<vmem>>, vector<2x64x16xf32>,
    %c0_15 = arith.constant 0 : index
    %c0_16 = arith.constant 0 : index
    %14 = vector.load %arg5[%c0_15, %c0_16] : memref<1x16xf32, #tpu.memory_space<vmem>>, vector<1x16xf32>
    %c0_17 = arith.constant 0 : index
    %c5 = arith.constant 5 : index
    %c0_18 = arith.constant 0 : index
    %15 = vector.load %arg15[%c0_17, %c5, %c0_18] : memref<2x80x16xf32, #tpu.memory_space<vmem>>, vector<2x64x16xf32>
    %16 = vector.shape_cast %15 : vector<2x64x16xf32> to vector<128x16xf32>
    %c0_19 = arith.constant 0 : index
    %c0_20 = arith.constant 0 : index
    %c0_21 = arith.constant 0 : index
    %17 = vector.load %arg4[%c0_19, %c0_20, %c0_21] : memref<7x16x16xf32, #tpu.memory_space<vmem>>, vector<1x16x16xf32>
    %18 = vector.shape_cast %17 : vector<1x16x16xf32> to vector<16x16xf32>
    %cst_22 = arith.constant dense<0.000000e+00> : vector<128x16xf32>
    %19 = tpu.matmul %16, %18, %cst_22 {dimension_numbers = #tpu.dot_dimension_numbers<[1], [0], [0], [1], [0, 0, 1, 1], [], []>} : vector<128x16xf32>, vector<16x16xf32>, vector<128x16xf32> -> vector<128x16xf32>
    %20 = vector.broadcast %14 : vector<1x16xf32> to vector<128x16xf32>
    %21 = arith.addf %20, %19 : vector<128x16xf32>
    %c0_23 = arith.constant 0 : index
    %c6 = arith.constant 6 : index
    %c0_24 = arith.constant 0 : index
    %22 = vector.load %arg15[%c0_23, %c6, %c0_24] : memref<2x80x16xf32, #tpu.memory_space<vmem>>, vector<2x64x16xf32>
    %23 = vector.shape_cast %22 : vector<2x64x16xf32> to vector<128x16xf32>
    %c1 = arith.constant 1 : index
    %c0_25 = arith.constant 0 : index
    %c0_26 = arith.constant 0 : index
    %24 = vector.load %arg4[%c1, %c0_25, %c0_26] : memref<7x16x16xf32, #tpu.memory_space<vmem>>, vector<1x16x16xf32>
    %25 = vector.shape_cast %24 : vector<1x16x16xf32> to vector<16x16xf32>
    %cst_27 = arith.constant dense<0.000000e+00> : vector<128x16xf32>
    %26 = tpu.matmul %23, %25, %cst_27 {dimension_numbers = #tpu.dot_dimension_numbers<[1], [0], [0], [1], [0, 0, 1, 1], [], []>} : vector<128x16xf32>, vector<16x16xf32>, vector<128x16xf32> -> vector<128x16xf32>
    %27 = arith.addf %21, %26 : vector<128x16xf32>
    %c0_28 = arith.constant 0 : index
    %c7 = arith.constant 7 : index
    %c0_29 = arith.constant 0 : index
    %28 = vector.load %arg15[%c0_28, %c7, %c0_29] : memref<2x80x16xf32, #tpu.memory_space<vmem>>, vector<2x64x16xf32>
    %29 = vector.shape_cast %28 : vector<2x64x16xf32> to vector<128x16xf32>
    %c2 = arith.constant 2 : index
    %c0_30 = arith.constant 0 : index
    %c0_31 = arith.constant 0 : index
    %30 = vector.load %arg4[%c2, %c0_30, %c0_31] : memref<7x16x16xf32, #tpu.memory_space<vmem>>, vector<1x16x16xf32>
    %31 = vector.shape_cast %30 : vector<1x16x16xf32> to vector<16x16xf32>
    %cst_32 = arith.constant dense<0.000000e+00> : vector<128x16xf32>
    %32 = tpu.matmul %29, %31, %cst_32 {dimension_numbers = #tpu.dot_dimension_numbers<[1], [0], [0], [1], [0, 0, 1, 1], [], []>} : vector<128x16xf32>, vector<16x16xf32>, vector<128x16xf32> -> vector<128x16xf32>
    %33 = arith.addf %27, %32 : vector<128x16xf32>
    %c0_33 = arith.constant 0 : index
    %c8_34 = arith.constant 8 : index
    %c0_35 = arith.constant 0 : index
    %34 = vector.load %arg15[%c0_33, %c8_34, %c0_35] : memref<2x80x16xf32, #tpu.memory_space<vmem>>, vector<2x64x16xf32>
    %35 = vector.shape_cast %34 : vector<2x64x16xf32> to vector<128x16xf32>
    %c3 = arith.constant 3 : index
    %c0_36 = arith.constant 0 : index
    %c0_37 = arith.constant 0 : index
    %36 = vector.load %arg4[%c3, %c0_36, %c0_37] : memref<7x16x16xf32, #tpu.memory_space<vmem>>, vector<1x16x16xf32>
    %37 = vector.shape_cast %36 : vector<1x16x16xf32> to vector<16x16xf32>
    %cst_38 = arith.constant dense<0.000000e+00> : vector<128x16xf32>
    %38 = tpu.matmul %35, %37, %cst_38 {dimension_numbers = #tpu.dot_dimension_numbers<[1], [0], [0], [1], [0, 0, 1, 1], [], []>} : vector<128x16xf32>, vector<16x16xf32>, vector<128x16xf32> -> vector<128x16xf32>
    %39 = arith.addf %33, %38 : vector<128x16xf32>
    %c0_39 = arith.constant 0 : index
    %c9 = arith.constant 9 : index
    %c0_40 = arith.constant 0 : index
    %40 = vector.load %arg15[%c0_39, %c9, %c0_40] : memref<2x80x16xf32, #tpu.memory_space<vmem>>, vector<2x64x16xf32>
    %41 = vector.shape_cast %40 : vector<2x64x16xf32> to vector<128x16xf32>
    %c4 = arith.constant 4 : index
    %c0_41 = arith.constant 0 : index
    %c0_42 = arith.constant 0 : index
    %42 = vector.load %arg4[%c4, %c0_41, %c0_42] : memref<7x16x16xf32, #tpu.memory_space<vmem>>, vector<1x16x16xf32>
    %43 = vector.shape_cast %42 : vector<1x16x16xf32> to vector<16x16xf32>
    %cst_43 = arith.constant dense<0.000000e+00> : vector<128x16xf32>
    %44 = tpu.matmul %41, %43, %cst_43 {dimension_numbers = #tpu.dot_dimension_numbers<[1], [0], [0], [1], [0, 0, 1, 1], [], []>} : vector<128x16xf32>, vector<16x16xf32>, vector<128x16xf32> -> vector<128x16xf32>
    %45 = arith.addf %39, %44 : vector<128x16xf32>
    %c0_44 = arith.constant 0 : index
    %c10 = arith.constant 10 : index
    %c0_45 = arith.constant 0 : index
    %46 = vector.load %arg15[%c0_44, %c10, %c0_45] : memref<2x80x16xf32, #tpu.memory_space<vmem>>, vector<2x64x16xf32>
    %47 = vector.shape_cast %46 : vector<2x64x16xf32> to vector<128x16xf32>
    %c5_46 = arith.constant 5 : index
    %c0_47 = arith.constant 0 : index
    %c0_48 = arith.constant 0 : index
    %48 = vector.load %arg4[%c5_46, %c0_47, %c0_48] : memref<7x16x16xf32, #tpu.memory_space<vmem>>, vector<1x16x16xf32>
    %49 = vector.shape_cast %48 : vector<1x16x16xf32> to vector<16x16xf32>
    %cst_49 = arith.constant dense<0.000000e+00> : vector<128x16xf32>
    %50 = tpu.matmul %47, %49, %cst_49 {dimension_numbers = #tpu.dot_dimension_numbers<[1], [0], [0], [1], [0, 0, 1, 1], [], []>} : vector<128x16xf32>, vector<16x16xf32>, vector<128x16xf32> -> vector<128x16xf32>
    %51 = arith.addf %45, %50 : vector<128x16xf32>
    %c0_50 = arith.constant 0 : index
    %c11 = arith.constant 11 : index
    %c0_51 = arith.constant 0 : index
    %52 = vector.load %arg15[%c0_50, %c11, %c0_51] : memref<2x80x16xf32, #tpu.memory_space<vmem>>, vector<2x64x16xf32>
    %53 = vector.shape_cast %52 : vector<2x64x16xf32> to vector<128x16xf32>
    %c6_52 = arith.constant 6 : index
    %c0_53 = arith.constant 0 : index
    %c0_54 = arith.constant 0 : index
    %54 = vector.load %arg4[%c6_52, %c0_53, %c0_54] : memref<7x16x16xf32, #tpu.memory_space<vmem>>, vector<1x16x16xf32>
    %55 = vector.shape_cast %54 : vector<1x16x16xf32> to vector<16x16xf32>
    %cst_55 = arith.constant dense<0.000000e+00> : vector<128x16xf32>
    %56 = tpu.matmul %53, %55, %cst_55 {dimension_numbers = #tpu.dot_dimension_numbers<[1], [0], [0], [1], [0, 0, 1, 1], [], []>} : vector<128x16xf32>, vector<16x16xf32>, vector<128x16xf32> -> vector<128x16xf32>
    %57 = arith.addf %51, %56 : vector<128x16xf32>
    %cst_56 = arith.constant 0.000000e+00 : f32
    %58 = vector.broadcast %cst_56 : f32 to vector<128x16xf32>
    %59 = arith.maximumf %57, %58 : vector<128x16xf32>
    %60 = vector.shape_cast %59 : vector<128x16xf32> to vector<2x64x16xf32>
    %c0_57 = arith.constant 0 : index
    %c8_58 = arith.constant 8 : index
    %c0_59 = arith.constant 0 : index
    %61 = vector.load %arg15[%c0_57, %c8_58, %c0_59] : memref<2x80x16xf32, #tpu.memory_space<vmem>>, vector<2x64x16xf32>
    tpu.vector_store %arg15[%c0_57, %c8_58, %c0_59], %60 {strides = array<i32>} : memref<2x80x16xf32, #tpu.memory_space<vmem>>, vector<2x64x16xf32>,
    %c0_60 = arith.constant 0 : index
    %c0_61 = arith.constant 0 : index
    %62 = vector.load %arg7[%c0_60, %c0_61] : memref<1x16xf32, #tpu.memory_space<vmem>>, vector<1x16xf32>
    %c0_62 = arith.constant 0 : index
    %c6_63 = arith.constant 6 : index
    %c0_64 = arith.constant 0 : index
    %63 = vector.load %arg15[%c0_62, %c6_63, %c0_64] : memref<2x80x16xf32, #tpu.memory_space<vmem>>, vector<2x64x16xf32>
    %64 = vector.shape_cast %63 : vector<2x64x16xf32> to vector<128x16xf32>
    %c0_65 = arith.constant 0 : index
    %c0_66 = arith.constant 0 : index
    %c0_67 = arith.constant 0 : index
    %65 = vector.load %arg6[%c0_65, %c0_66, %c0_67] : memref<5x16x16xf32, #tpu.memory_space<vmem>>, vector<1x16x16xf32>
    %66 = vector.shape_cast %65 : vector<1x16x16xf32> to vector<16x16xf32>
    %cst_68 = arith.constant dense<0.000000e+00> : vector<128x16xf32>
    %67 = tpu.matmul %64, %66, %cst_68 {dimension_numbers = #tpu.dot_dimension_numbers<[1], [0], [0], [1], [0, 0, 1, 1], [], []>} : vector<128x16xf32>, vector<16x16xf32>, vector<128x16xf32> -> vector<128x16xf32>
    %68 = vector.broadcast %62 : vector<1x16xf32> to vector<128x16xf32>
    %69 = arith.addf %68, %67 : vector<128x16xf32>
    %c0_69 = arith.constant 0 : index
    %c7_70 = arith.constant 7 : index
    %c0_71 = arith.constant 0 : index
    %70 = vector.load %arg15[%c0_69, %c7_70, %c0_71] : memref<2x80x16xf32, #tpu.memory_space<vmem>>, vector<2x64x16xf32>
    %71 = vector.shape_cast %70 : vector<2x64x16xf32> to vector<128x16xf32>
    %c1_72 = arith.constant 1 : index
    %c0_73 = arith.constant 0 : index
    %c0_74 = arith.constant 0 : index
    %72 = vector.load %arg6[%c1_72, %c0_73, %c0_74] : memref<5x16x16xf32, #tpu.memory_space<vmem>>, vector<1x16x16xf32>
    %73 = vector.shape_cast %72 : vector<1x16x16xf32> to vector<16x16xf32>
    %cst_75 = arith.constant dense<0.000000e+00> : vector<128x16xf32>
    %74 = tpu.matmul %71, %73, %cst_75 {dimension_numbers = #tpu.dot_dimension_numbers<[1], [0], [0], [1], [0, 0, 1, 1], [], []>} : vector<128x16xf32>, vector<16x16xf32>, vector<128x16xf32> -> vector<128x16xf32>
    %75 = arith.addf %69, %74 : vector<128x16xf32>
    %c0_76 = arith.constant 0 : index
    %c8_77 = arith.constant 8 : index
    %c0_78 = arith.constant 0 : index
    %76 = vector.load %arg15[%c0_76, %c8_77, %c0_78] : memref<2x80x16xf32, #tpu.memory_space<vmem>>, vector<2x64x16xf32>
    %77 = vector.shape_cast %76 : vector<2x64x16xf32> to vector<128x16xf32>
    %c2_79 = arith.constant 2 : index
    %c0_80 = arith.constant 0 : index
    %c0_81 = arith.constant 0 : index
    %78 = vector.load %arg6[%c2_79, %c0_80, %c0_81] : memref<5x16x16xf32, #tpu.memory_space<vmem>>, vector<1x16x16xf32>
    %79 = vector.shape_cast %78 : vector<1x16x16xf32> to vector<16x16xf32>
    %cst_82 = arith.constant dense<0.000000e+00> : vector<128x16xf32>
    %80 = tpu.matmul %77, %79, %cst_82 {dimension_numbers = #tpu.dot_dimension_numbers<[1], [0], [0], [1], [0, 0, 1, 1], [], []>} : vector<128x16xf32>, vector<16x16xf32>, vector<128x16xf32> -> vector<128x16xf32>
    %81 = arith.addf %75, %80 : vector<128x16xf32>
    %c0_83 = arith.constant 0 : index
    %c9_84 = arith.constant 9 : index
    %c0_85 = arith.constant 0 : index
    %82 = vector.load %arg15[%c0_83, %c9_84, %c0_85] : memref<2x80x16xf32, #tpu.memory_space<vmem>>, vector<2x64x16xf32>
    %83 = vector.shape_cast %82 : vector<2x64x16xf32> to vector<128x16xf32>
    %c3_86 = arith.constant 3 : index
    %c0_87 = arith.constant 0 : index
    %c0_88 = arith.constant 0 : index
    %84 = vector.load %arg6[%c3_86, %c0_87, %c0_88] : memref<5x16x16xf32, #tpu.memory_space<vmem>>, vector<1x16x16xf32>
    %85 = vector.shape_cast %84 : vector<1x16x16xf32> to vector<16x16xf32>
    %cst_89 = arith.constant dense<0.000000e+00> : vector<128x16xf32>
    %86 = tpu.matmul %83, %85, %cst_89 {dimension_numbers = #tpu.dot_dimension_numbers<[1], [0], [0], [1], [0, 0, 1, 1], [], []>} : vector<128x16xf32>, vector<16x16xf32>, vector<128x16xf32> -> vector<128x16xf32>
    %87 = arith.addf %81, %86 : vector<128x16xf32>
    %c0_90 = arith.constant 0 : index
    %c10_91 = arith.constant 10 : index
    %c0_92 = arith.constant 0 : index
    %88 = vector.load %arg15[%c0_90, %c10_91, %c0_92] : memref<2x80x16xf32, #tpu.memory_space<vmem>>, vector<2x64x16xf32>
    %89 = vector.shape_cast %88 : vector<2x64x16xf32> to vector<128x16xf32>
    %c4_93 = arith.constant 4 : index
    %c0_94 = arith.constant 0 : index
    %c0_95 = arith.constant 0 : index
    %90 = vector.load %arg6[%c4_93, %c0_94, %c0_95] : memref<5x16x16xf32, #tpu.memory_space<vmem>>, vector<1x16x16xf32>
    %91 = vector.shape_cast %90 : vector<1x16x16xf32> to vector<16x16xf32>
    %cst_96 = arith.constant dense<0.000000e+00> : vector<128x16xf32>
    %92 = tpu.matmul %89, %91, %cst_96 {dimension_numbers = #tpu.dot_dimension_numbers<[1], [0], [0], [1], [0, 0, 1, 1], [], []>} : vector<128x16xf32>, vector<16x16xf32>, vector<128x16xf32> -> vector<128x16xf32>
    %93 = arith.addf %87, %92 : vector<128x16xf32>
    %94 = arith.addf %93, %11 : vector<128x16xf32>
    %95 = vector.shape_cast %94 : vector<128x16xf32> to vector<2x64x16xf32>
    %cst_97 = arith.constant 0.000000e+00 : f32
    %96 = vector.broadcast %cst_97 : f32 to vector<2x512xf32>
    %97 = vector.extract_strided_slice %95 {offsets = [0, 0, 0], sizes = [2, 1, 16], strides = [1, 1, 1]} : vector<2x64x16xf32> to vector<2x1x16xf32>
    %98 = vector.shape_cast %97 : vector<2x1x16xf32> to vector<2x16xf32>
    %99 = vector.extract_strided_slice %95 {offsets = [0, 1, 0], sizes = [2, 1, 16], strides = [1, 1, 1]} : vector<2x64x16xf32> to vector<2x1x16xf32>
    %100 = vector.shape_cast %99 : vector<2x1x16xf32> to vector<2x16xf32>
    %101 = arith.addf %98, %100 : vector<2x16xf32>
    %102 = vector.extract_strided_slice %95 {offsets = [0, 2, 0], sizes = [2, 1, 16], strides = [1, 1, 1]} : vector<2x64x16xf32> to vector<2x1x16xf32>
    %103 = vector.shape_cast %102 : vector<2x1x16xf32> to vector<2x16xf32>
    %104 = arith.addf %101, %103 : vector<2x16xf32>
    %105 = vector.extract_strided_slice %95 {offsets = [0, 3, 0], sizes = [2, 1, 16], strides = [1, 1, 1]} : vector<2x64x16xf32> to vector<2x1x16xf32>
    %106 = vector.shape_cast %105 : vector<2x1x16xf32> to vector<2x16xf32>
    %107 = arith.addf %104, %106 : vector<2x16xf32>
    %cst_98 = arith.constant 2.500000e-01 : f32
    %108 = vector.broadcast %cst_98 : f32 to vector<2x16xf32>
    %109 = arith.mulf %107, %108 : vector<2x16xf32>
    %cst_99 = arith.constant 0.000000e+00 : f32
    %110 = vector.broadcast %cst_99 : f32 to vector<2x16xf32>
    %111 = arith.maximumf %109, %110 : vector<2x16xf32>
    %c0_100 = arith.constant 0 : index
    %c0_101 = arith.constant 0 : index
    %c0_102 = arith.constant 0 : index
    %112 = vector.load %arg8[%c0_100, %c0_101, %c0_102] : memref<16x16x512xf32, #tpu.memory_space<vmem>>, vector<1x16x512xf32>
    %113 = vector.shape_cast %112 : vector<1x16x512xf32> to vector<16x512xf32>
    %cst_103 = arith.constant dense<0.000000e+00> : vector<2x512xf32>
    %114 = tpu.matmul %111, %113, %cst_103 {dimension_numbers = #tpu.dot_dimension_numbers<[1], [0], [0], [1], [0, 0, 1, 1], [], []>} : vector<2x16xf32>, vector<16x512xf32>, vector<2x512xf32> -> vector<2x512xf32>
    %115 = arith.addf %96, %114 : vector<2x512xf32>
    %116 = vector.extract_strided_slice %95 {offsets = [0, 4, 0], sizes = [2, 1, 16], strides = [1, 1, 1]} : vector<2x64x16xf32> to vector<2x1x16xf32>
    %117 = vector.shape_cast %116 : vector<2x1x16xf32> to vector<2x16xf32>
    %118 = vector.extract_strided_slice %95 {offsets = [0, 5, 0], sizes = [2, 1, 16], strides = [1, 1, 1]} : vector<2x64x16xf32> to vector<2x1x16xf32>
    %119 = vector.shape_cast %118 : vector<2x1x16xf32> to vector<2x16xf32>
    %120 = arith.addf %117, %119 : vector<2x16xf32>
    %121 = vector.extract_strided_slice %95 {offsets = [0, 6, 0], sizes = [2, 1, 16], strides = [1, 1, 1]} : vector<2x64x16xf32> to vector<2x1x16xf32>
    %122 = vector.shape_cast %121 : vector<2x1x16xf32> to vector<2x16xf32>
    %123 = arith.addf %120, %122 : vector<2x16xf32>
    %124 = vector.extract_strided_slice %95 {offsets = [0, 7, 0], sizes = [2, 1, 16], strides = [1, 1, 1]} : vector<2x64x16xf32> to vector<2x1x16xf32>
    %125 = vector.shape_cast %124 : vector<2x1x16xf32> to vector<2x16xf32>
    %126 = arith.addf %123, %125 : vector<2x16xf32>
    %cst_104 = arith.constant 2.500000e-01 : f32
    %127 = vector.broadcast %cst_104 : f32 to vector<2x16xf32>
    %128 = arith.mulf %126, %127 : vector<2x16xf32>
    %cst_105 = arith.constant 0.000000e+00 : f32
    %129 = vector.broadcast %cst_105 : f32 to vector<2x16xf32>
    %130 = arith.maximumf %128, %129 : vector<2x16xf32>
    %c1_106 = arith.constant 1 : index
    %c0_107 = arith.constant 0 : index
    %c0_108 = arith.constant 0 : index
    %131 = vector.load %arg8[%c1_106, %c0_107, %c0_108] : memref<16x16x512xf32, #tpu.memory_space<vmem>>, vector<1x16x512xf32>
    %132 = vector.shape_cast %131 : vector<1x16x512xf32> to vector<16x512xf32>
    %cst_109 = arith.constant dense<0.000000e+00> : vector<2x512xf32>
    %133 = tpu.matmul %130, %132, %cst_109 {dimension_numbers = #tpu.dot_dimension_numbers<[1], [0], [0], [1], [0, 0, 1, 1], [], []>} : vector<2x16xf32>, vector<16x512xf32>, vector<2x512xf32> -> vector<2x512xf32>
    %134 = arith.addf %115, %133 : vector<2x512xf32>
    %135 = vector.extract_strided_slice %95 {offsets = [0, 8, 0], sizes = [2, 1, 16], strides = [1, 1, 1]} : vector<2x64x16xf32> to vector<2x1x16xf32>
    %136 = vector.shape_cast %135 : vector<2x1x16xf32> to vector<2x16xf32>
    %137 = vector.extract_strided_slice %95 {offsets = [0, 9, 0], sizes = [2, 1, 16], strides = [1, 1, 1]} : vector<2x64x16xf32> to vector<2x1x16xf32>
    %138 = vector.shape_cast %137 : vector<2x1x16xf32> to vector<2x16xf32>
    %139 = arith.addf %136, %138 : vector<2x16xf32>
    %140 = vector.extract_strided_slice %95 {offsets = [0, 10, 0], sizes = [2, 1, 16], strides = [1, 1, 1]} : vector<2x64x16xf32> to vector<2x1x16xf32>
    %141 = vector.shape_cast %140 : vector<2x1x16xf32> to vector<2x16xf32>
    %142 = arith.addf %139, %141 : vector<2x16xf32>
    %143 = vector.extract_strided_slice %95 {offsets = [0, 11, 0], sizes = [2, 1, 16], strides = [1, 1, 1]} : vector<2x64x16xf32> to vector<2x1x16xf32>
    %144 = vector.shape_cast %143 : vector<2x1x16xf32> to vector<2x16xf32>
    %145 = arith.addf %142, %144 : vector<2x16xf32>
    %cst_110 = arith.constant 2.500000e-01 : f32
    %146 = vector.broadcast %cst_110 : f32 to vector<2x16xf32>
    %147 = arith.mulf %145, %146 : vector<2x16xf32>
    %cst_111 = arith.constant 0.000000e+00 : f32
    %148 = vector.broadcast %cst_111 : f32 to vector<2x16xf32>
    %149 = arith.maximumf %147, %148 : vector<2x16xf32>
    %c2_112 = arith.constant 2 : index
    %c0_113 = arith.constant 0 : index
    %c0_114 = arith.constant 0 : index
    %150 = vector.load %arg8[%c2_112, %c0_113, %c0_114] : memref<16x16x512xf32, #tpu.memory_space<vmem>>, vector<1x16x512xf32>
    %151 = vector.shape_cast %150 : vector<1x16x512xf32> to vector<16x512xf32>
    %cst_115 = arith.constant dense<0.000000e+00> : vector<2x512xf32>
    %152 = tpu.matmul %149, %151, %cst_115 {dimension_numbers = #tpu.dot_dimension_numbers<[1], [0], [0], [1], [0, 0, 1, 1], [], []>} : vector<2x16xf32>, vector<16x512xf32>, vector<2x512xf32> -> vector<2x512xf32>
    %153 = arith.addf %134, %152 : vector<2x512xf32>
    %154 = vector.extract_strided_slice %95 {offsets = [0, 12, 0], sizes = [2, 1, 16], strides = [1, 1, 1]} : vector<2x64x16xf32> to vector<2x1x16xf32>
    %155 = vector.shape_cast %154 : vector<2x1x16xf32> to vector<2x16xf32>
    %156 = vector.extract_strided_slice %95 {offsets = [0, 13, 0], sizes = [2, 1, 16], strides = [1, 1, 1]} : vector<2x64x16xf32> to vector<2x1x16xf32>
    %157 = vector.shape_cast %156 : vector<2x1x16xf32> to vector<2x16xf32>
    %158 = arith.addf %155, %157 : vector<2x16xf32>
    %159 = vector.extract_strided_slice %95 {offsets = [0, 14, 0], sizes = [2, 1, 16], strides = [1, 1, 1]} : vector<2x64x16xf32> to vector<2x1x16xf32>
    %160 = vector.shape_cast %159 : vector<2x1x16xf32> to vector<2x16xf32>
    %161 = arith.addf %158, %160 : vector<2x16xf32>
    %162 = vector.extract_strided_slice %95 {offsets = [0, 15, 0], sizes = [2, 1, 16], strides = [1, 1, 1]} : vector<2x64x16xf32> to vector<2x1x16xf32>
    %163 = vector.shape_cast %162 : vector<2x1x16xf32> to vector<2x16xf32>
    %164 = arith.addf %161, %163 : vector<2x16xf32>
    %cst_116 = arith.constant 2.500000e-01 : f32
    %165 = vector.broadcast %cst_116 : f32 to vector<2x16xf32>
    %166 = arith.mulf %164, %165 : vector<2x16xf32>
    %cst_117 = arith.constant 0.000000e+00 : f32
    %167 = vector.broadcast %cst_117 : f32 to vector<2x16xf32>
    %168 = arith.maximumf %166, %167 : vector<2x16xf32>
    %c3_118 = arith.constant 3 : index
    %c0_119 = arith.constant 0 : index
    %c0_120 = arith.constant 0 : index
    %169 = vector.load %arg8[%c3_118, %c0_119, %c0_120] : memref<16x16x512xf32, #tpu.memory_space<vmem>>, vector<1x16x512xf32>
    %170 = vector.shape_cast %169 : vector<1x16x512xf32> to vector<16x512xf32>
    %cst_121 = arith.constant dense<0.000000e+00> : vector<2x512xf32>
    %171 = tpu.matmul %168, %170, %cst_121 {dimension_numbers = #tpu.dot_dimension_numbers<[1], [0], [0], [1], [0, 0, 1, 1], [], []>} : vector<2x16xf32>, vector<16x512xf32>, vector<2x512xf32> -> vector<2x512xf32>
    %172 = arith.addf %153, %171 : vector<2x512xf32>
    %173 = vector.extract_strided_slice %95 {offsets = [0, 16, 0], sizes = [2, 1, 16], strides = [1, 1, 1]} : vector<2x64x16xf32> to vector<2x1x16xf32>
    %174 = vector.shape_cast %173 : vector<2x1x16xf32> to vector<2x16xf32>
    %175 = vector.extract_strided_slice %95 {offsets = [0, 17, 0], sizes = [2, 1, 16], strides = [1, 1, 1]} : vector<2x64x16xf32> to vector<2x1x16xf32>
    %176 = vector.shape_cast %175 : vector<2x1x16xf32> to vector<2x16xf32>
    %177 = arith.addf %174, %176 : vector<2x16xf32>
    %178 = vector.extract_strided_slice %95 {offsets = [0, 18, 0], sizes = [2, 1, 16], strides = [1, 1, 1]} : vector<2x64x16xf32> to vector<2x1x16xf32>
    %179 = vector.shape_cast %178 : vector<2x1x16xf32> to vector<2x16xf32>
    %180 = arith.addf %177, %179 : vector<2x16xf32>
    %181 = vector.extract_strided_slice %95 {offsets = [0, 19, 0], sizes = [2, 1, 16], strides = [1, 1, 1]} : vector<2x64x16xf32> to vector<2x1x16xf32>
    %182 = vector.shape_cast %181 : vector<2x1x16xf32> to vector<2x16xf32>
    %183 = arith.addf %180, %182 : vector<2x16xf32>
    %cst_122 = arith.constant 2.500000e-01 : f32
    %184 = vector.broadcast %cst_122 : f32 to vector<2x16xf32>
    %185 = arith.mulf %183, %184 : vector<2x16xf32>
    %cst_123 = arith.constant 0.000000e+00 : f32
    %186 = vector.broadcast %cst_123 : f32 to vector<2x16xf32>
    %187 = arith.maximumf %185, %186 : vector<2x16xf32>
    %c4_124 = arith.constant 4 : index
    %c0_125 = arith.constant 0 : index
    %c0_126 = arith.constant 0 : index
    %188 = vector.load %arg8[%c4_124, %c0_125, %c0_126] : memref<16x16x512xf32, #tpu.memory_space<vmem>>, vector<1x16x512xf32>
    %189 = vector.shape_cast %188 : vector<1x16x512xf32> to vector<16x512xf32>
    %cst_127 = arith.constant dense<0.000000e+00> : vector<2x512xf32>
    %190 = tpu.matmul %187, %189, %cst_127 {dimension_numbers = #tpu.dot_dimension_numbers<[1], [0], [0], [1], [0, 0, 1, 1], [], []>} : vector<2x16xf32>, vector<16x512xf32>, vector<2x512xf32> -> vector<2x512xf32>
    %191 = arith.addf %172, %190 : vector<2x512xf32>
    %192 = vector.extract_strided_slice %95 {offsets = [0, 20, 0], sizes = [2, 1, 16], strides = [1, 1, 1]} : vector<2x64x16xf32> to vector<2x1x16xf32>
    %193 = vector.shape_cast %192 : vector<2x1x16xf32> to vector<2x16xf32>
    %194 = vector.extract_strided_slice %95 {offsets = [0, 21, 0], sizes = [2, 1, 16], strides = [1, 1, 1]} : vector<2x64x16xf32> to vector<2x1x16xf32>
    %195 = vector.shape_cast %194 : vector<2x1x16xf32> to vector<2x16xf32>
    %196 = arith.addf %193, %195 : vector<2x16xf32>
    %197 = vector.extract_strided_slice %95 {offsets = [0, 22, 0], sizes = [2, 1, 16], strides = [1, 1, 1]} : vector<2x64x16xf32> to vector<2x1x16xf32>
    %198 = vector.shape_cast %197 : vector<2x1x16xf32> to vector<2x16xf32>
    %199 = arith.addf %196, %198 : vector<2x16xf32>
    %200 = vector.extract_strided_slice %95 {offsets = [0, 23, 0], sizes = [2, 1, 16], strides = [1, 1, 1]} : vector<2x64x16xf32> to vector<2x1x16xf32>
    %201 = vector.shape_cast %200 : vector<2x1x16xf32> to vector<2x16xf32>
    %202 = arith.addf %199, %201 : vector<2x16xf32>
    %cst_128 = arith.constant 2.500000e-01 : f32
    %203 = vector.broadcast %cst_128 : f32 to vector<2x16xf32>
    %204 = arith.mulf %202, %203 : vector<2x16xf32>
    %cst_129 = arith.constant 0.000000e+00 : f32
    %205 = vector.broadcast %cst_129 : f32 to vector<2x16xf32>
    %206 = arith.maximumf %204, %205 : vector<2x16xf32>
    %c5_130 = arith.constant 5 : index
    %c0_131 = arith.constant 0 : index
    %c0_132 = arith.constant 0 : index
    %207 = vector.load %arg8[%c5_130, %c0_131, %c0_132] : memref<16x16x512xf32, #tpu.memory_space<vmem>>, vector<1x16x512xf32>
    %208 = vector.shape_cast %207 : vector<1x16x512xf32> to vector<16x512xf32>
    %cst_133 = arith.constant dense<0.000000e+00> : vector<2x512xf32>
    %209 = tpu.matmul %206, %208, %cst_133 {dimension_numbers = #tpu.dot_dimension_numbers<[1], [0], [0], [1], [0, 0, 1, 1], [], []>} : vector<2x16xf32>, vector<16x512xf32>, vector<2x512xf32> -> vector<2x512xf32>
    %210 = arith.addf %191, %209 : vector<2x512xf32>
    %211 = vector.extract_strided_slice %95 {offsets = [0, 24, 0], sizes = [2, 1, 16], strides = [1, 1, 1]} : vector<2x64x16xf32> to vector<2x1x16xf32>
    %212 = vector.shape_cast %211 : vector<2x1x16xf32> to vector<2x16xf32>
    %213 = vector.extract_strided_slice %95 {offsets = [0, 25, 0], sizes = [2, 1, 16], strides = [1, 1, 1]} : vector<2x64x16xf32> to vector<2x1x16xf32>
    %214 = vector.shape_cast %213 : vector<2x1x16xf32> to vector<2x16xf32>
    %215 = arith.addf %212, %214 : vector<2x16xf32>
    %216 = vector.extract_strided_slice %95 {offsets = [0, 26, 0], sizes = [2, 1, 16], strides = [1, 1, 1]} : vector<2x64x16xf32> to vector<2x1x16xf32>
    %217 = vector.shape_cast %216 : vector<2x1x16xf32> to vector<2x16xf32>
    %218 = arith.addf %215, %217 : vector<2x16xf32>
    %219 = vector.extract_strided_slice %95 {offsets = [0, 27, 0], sizes = [2, 1, 16], strides = [1, 1, 1]} : vector<2x64x16xf32> to vector<2x1x16xf32>
    %220 = vector.shape_cast %219 : vector<2x1x16xf32> to vector<2x16xf32>
    %221 = arith.addf %218, %220 : vector<2x16xf32>
    %cst_134 = arith.constant 2.500000e-01 : f32
    %222 = vector.broadcast %cst_134 : f32 to vector<2x16xf32>
    %223 = arith.mulf %221, %222 : vector<2x16xf32>
    %cst_135 = arith.constant 0.000000e+00 : f32
    %224 = vector.broadcast %cst_135 : f32 to vector<2x16xf32>
    %225 = arith.maximumf %223, %224 : vector<2x16xf32>
    %c6_136 = arith.constant 6 : index
    %c0_137 = arith.constant 0 : index
    %c0_138 = arith.constant 0 : index
    %226 = vector.load %arg8[%c6_136, %c0_137, %c0_138] : memref<16x16x512xf32, #tpu.memory_space<vmem>>, vector<1x16x512xf32>
    %227 = vector.shape_cast %226 : vector<1x16x512xf32> to vector<16x512xf32>
    %cst_139 = arith.constant dense<0.000000e+00> : vector<2x512xf32>
    %228 = tpu.matmul %225, %227, %cst_139 {dimension_numbers = #tpu.dot_dimension_numbers<[1], [0], [0], [1], [0, 0, 1, 1], [], []>} : vector<2x16xf32>, vector<16x512xf32>, vector<2x512xf32> -> vector<2x512xf32>
    %229 = arith.addf %210, %228 : vector<2x512xf32>
    %230 = vector.extract_strided_slice %95 {offsets = [0, 28, 0], sizes = [2, 1, 16], strides = [1, 1, 1]} : vector<2x64x16xf32> to vector<2x1x16xf32>
    %231 = vector.shape_cast %230 : vector<2x1x16xf32> to vector<2x16xf32>
    %232 = vector.extract_strided_slice %95 {offsets = [0, 29, 0], sizes = [2, 1, 16], strides = [1, 1, 1]} : vector<2x64x16xf32> to vector<2x1x16xf32>
    %233 = vector.shape_cast %232 : vector<2x1x16xf32> to vector<2x16xf32>
    %234 = arith.addf %231, %233 : vector<2x16xf32>
    %235 = vector.extract_strided_slice %95 {offsets = [0, 30, 0], sizes = [2, 1, 16], strides = [1, 1, 1]} : vector<2x64x16xf32> to vector<2x1x16xf32>
    %236 = vector.shape_cast %235 : vector<2x1x16xf32> to vector<2x16xf32>
    %237 = arith.addf %234, %236 : vector<2x16xf32>
    %238 = vector.extract_strided_slice %95 {offsets = [0, 31, 0], sizes = [2, 1, 16], strides = [1, 1, 1]} : vector<2x64x16xf32> to vector<2x1x16xf32>
    %239 = vector.shape_cast %238 : vector<2x1x16xf32> to vector<2x16xf32>
    %240 = arith.addf %237, %239 : vector<2x16xf32>
    %cst_140 = arith.constant 2.500000e-01 : f32
    %241 = vector.broadcast %cst_140 : f32 to vector<2x16xf32>
    %242 = arith.mulf %240, %241 : vector<2x16xf32>
    %cst_141 = arith.constant 0.000000e+00 : f32
    %243 = vector.broadcast %cst_141 : f32 to vector<2x16xf32>
    %244 = arith.maximumf %242, %243 : vector<2x16xf32>
    %c7_142 = arith.constant 7 : index
    %c0_143 = arith.constant 0 : index
    %c0_144 = arith.constant 0 : index
    %245 = vector.load %arg8[%c7_142, %c0_143, %c0_144] : memref<16x16x512xf32, #tpu.memory_space<vmem>>, vector<1x16x512xf32>
    %246 = vector.shape_cast %245 : vector<1x16x512xf32> to vector<16x512xf32>
    %cst_145 = arith.constant dense<0.000000e+00> : vector<2x512xf32>
    %247 = tpu.matmul %244, %246, %cst_145 {dimension_numbers = #tpu.dot_dimension_numbers<[1], [0], [0], [1], [0, 0, 1, 1], [], []>} : vector<2x16xf32>, vector<16x512xf32>, vector<2x512xf32> -> vector<2x512xf32>
    %248 = arith.addf %229, %247 : vector<2x512xf32>
    %249 = vector.extract_strided_slice %95 {offsets = [0, 32, 0], sizes = [2, 1, 16], strides = [1, 1, 1]} : vector<2x64x16xf32> to vector<2x1x16xf32>
    %250 = vector.shape_cast %249 : vector<2x1x16xf32> to vector<2x16xf32>
    %251 = vector.extract_strided_slice %95 {offsets = [0, 33, 0], sizes = [2, 1, 16], strides = [1, 1, 1]} : vector<2x64x16xf32> to vector<2x1x16xf32>
    %252 = vector.shape_cast %251 : vector<2x1x16xf32> to vector<2x16xf32>
    %253 = arith.addf %250, %252 : vector<2x16xf32>
    %254 = vector.extract_strided_slice %95 {offsets = [0, 34, 0], sizes = [2, 1, 16], strides = [1, 1, 1]} : vector<2x64x16xf32> to vector<2x1x16xf32>
    %255 = vector.shape_cast %254 : vector<2x1x16xf32> to vector<2x16xf32>
    %256 = arith.addf %253, %255 : vector<2x16xf32>
    %257 = vector.extract_strided_slice %95 {offsets = [0, 35, 0], sizes = [2, 1, 16], strides = [1, 1, 1]} : vector<2x64x16xf32> to vector<2x1x16xf32>
    %258 = vector.shape_cast %257 : vector<2x1x16xf32> to vector<2x16xf32>
    %259 = arith.addf %256, %258 : vector<2x16xf32>
    %cst_146 = arith.constant 2.500000e-01 : f32
    %260 = vector.broadcast %cst_146 : f32 to vector<2x16xf32>
    %261 = arith.mulf %259, %260 : vector<2x16xf32>
    %cst_147 = arith.constant 0.000000e+00 : f32
    %262 = vector.broadcast %cst_147 : f32 to vector<2x16xf32>
    %263 = arith.maximumf %261, %262 : vector<2x16xf32>
    %c8_148 = arith.constant 8 : index
    %c0_149 = arith.constant 0 : index
    %c0_150 = arith.constant 0 : index
    %264 = vector.load %arg8[%c8_148, %c0_149, %c0_150] : memref<16x16x512xf32, #tpu.memory_space<vmem>>, vector<1x16x512xf32>
    %265 = vector.shape_cast %264 : vector<1x16x512xf32> to vector<16x512xf32>
    %cst_151 = arith.constant dense<0.000000e+00> : vector<2x512xf32>
    %266 = tpu.matmul %263, %265, %cst_151 {dimension_numbers = #tpu.dot_dimension_numbers<[1], [0], [0], [1], [0, 0, 1, 1], [], []>} : vector<2x16xf32>, vector<16x512xf32>, vector<2x512xf32> -> vector<2x512xf32>
    %267 = arith.addf %248, %266 : vector<2x512xf32>
    %268 = vector.extract_strided_slice %95 {offsets = [0, 36, 0], sizes = [2, 1, 16], strides = [1, 1, 1]} : vector<2x64x16xf32> to vector<2x1x16xf32>
    %269 = vector.shape_cast %268 : vector<2x1x16xf32> to vector<2x16xf32>
    %270 = vector.extract_strided_slice %95 {offsets = [0, 37, 0], sizes = [2, 1, 16], strides = [1, 1, 1]} : vector<2x64x16xf32> to vector<2x1x16xf32>
    %271 = vector.shape_cast %270 : vector<2x1x16xf32> to vector<2x16xf32>
    %272 = arith.addf %269, %271 : vector<2x16xf32>
    %273 = vector.extract_strided_slice %95 {offsets = [0, 38, 0], sizes = [2, 1, 16], strides = [1, 1, 1]} : vector<2x64x16xf32> to vector<2x1x16xf32>
    %274 = vector.shape_cast %273 : vector<2x1x16xf32> to vector<2x16xf32>
    %275 = arith.addf %272, %274 : vector<2x16xf32>
    %276 = vector.extract_strided_slice %95 {offsets = [0, 39, 0], sizes = [2, 1, 16], strides = [1, 1, 1]} : vector<2x64x16xf32> to vector<2x1x16xf32>
    %277 = vector.shape_cast %276 : vector<2x1x16xf32> to vector<2x16xf32>
    %278 = arith.addf %275, %277 : vector<2x16xf32>
    %cst_152 = arith.constant 2.500000e-01 : f32
    %279 = vector.broadcast %cst_152 : f32 to vector<2x16xf32>
    %280 = arith.mulf %278, %279 : vector<2x16xf32>
    %cst_153 = arith.constant 0.000000e+00 : f32
    %281 = vector.broadcast %cst_153 : f32 to vector<2x16xf32>
    %282 = arith.maximumf %280, %281 : vector<2x16xf32>
    %c9_154 = arith.constant 9 : index
    %c0_155 = arith.constant 0 : index
    %c0_156 = arith.constant 0 : index
    %283 = vector.load %arg8[%c9_154, %c0_155, %c0_156] : memref<16x16x512xf32, #tpu.memory_space<vmem>>, vector<1x16x512xf32>
    %284 = vector.shape_cast %283 : vector<1x16x512xf32> to vector<16x512xf32>
    %cst_157 = arith.constant dense<0.000000e+00> : vector<2x512xf32>
    %285 = tpu.matmul %282, %284, %cst_157 {dimension_numbers = #tpu.dot_dimension_numbers<[1], [0], [0], [1], [0, 0, 1, 1], [], []>} : vector<2x16xf32>, vector<16x512xf32>, vector<2x512xf32> -> vector<2x512xf32>
    %286 = arith.addf %267, %285 : vector<2x512xf32>
    %287 = vector.extract_strided_slice %95 {offsets = [0, 40, 0], sizes = [2, 1, 16], strides = [1, 1, 1]} : vector<2x64x16xf32> to vector<2x1x16xf32>
    %288 = vector.shape_cast %287 : vector<2x1x16xf32> to vector<2x16xf32>
    %289 = vector.extract_strided_slice %95 {offsets = [0, 41, 0], sizes = [2, 1, 16], strides = [1, 1, 1]} : vector<2x64x16xf32> to vector<2x1x16xf32>
    %290 = vector.shape_cast %289 : vector<2x1x16xf32> to vector<2x16xf32>
    %291 = arith.addf %288, %290 : vector<2x16xf32>
    %292 = vector.extract_strided_slice %95 {offsets = [0, 42, 0], sizes = [2, 1, 16], strides = [1, 1, 1]} : vector<2x64x16xf32> to vector<2x1x16xf32>
    %293 = vector.shape_cast %292 : vector<2x1x16xf32> to vector<2x16xf32>
    %294 = arith.addf %291, %293 : vector<2x16xf32>
    %295 = vector.extract_strided_slice %95 {offsets = [0, 43, 0], sizes = [2, 1, 16], strides = [1, 1, 1]} : vector<2x64x16xf32> to vector<2x1x16xf32>
    %296 = vector.shape_cast %295 : vector<2x1x16xf32> to vector<2x16xf32>
    %297 = arith.addf %294, %296 : vector<2x16xf32>
    %cst_158 = arith.constant 2.500000e-01 : f32
    %298 = vector.broadcast %cst_158 : f32 to vector<2x16xf32>
    %299 = arith.mulf %297, %298 : vector<2x16xf32>
    %cst_159 = arith.constant 0.000000e+00 : f32
    %300 = vector.broadcast %cst_159 : f32 to vector<2x16xf32>
    %301 = arith.maximumf %299, %300 : vector<2x16xf32>
    %c10_160 = arith.constant 10 : index
    %c0_161 = arith.constant 0 : index
    %c0_162 = arith.constant 0 : index
    %302 = vector.load %arg8[%c10_160, %c0_161, %c0_162] : memref<16x16x512xf32, #tpu.memory_space<vmem>>, vector<1x16x512xf32>
    %303 = vector.shape_cast %302 : vector<1x16x512xf32> to vector<16x512xf32>
    %cst_163 = arith.constant dense<0.000000e+00> : vector<2x512xf32>
    %304 = tpu.matmul %301, %303, %cst_163 {dimension_numbers = #tpu.dot_dimension_numbers<[1], [0], [0], [1], [0, 0, 1, 1], [], []>} : vector<2x16xf32>, vector<16x512xf32>, vector<2x512xf32> -> vector<2x512xf32>
    %305 = arith.addf %286, %304 : vector<2x512xf32>
    %306 = vector.extract_strided_slice %95 {offsets = [0, 44, 0], sizes = [2, 1, 16], strides = [1, 1, 1]} : vector<2x64x16xf32> to vector<2x1x16xf32>
    %307 = vector.shape_cast %306 : vector<2x1x16xf32> to vector<2x16xf32>
    %308 = vector.extract_strided_slice %95 {offsets = [0, 45, 0], sizes = [2, 1, 16], strides = [1, 1, 1]} : vector<2x64x16xf32> to vector<2x1x16xf32>
    %309 = vector.shape_cast %308 : vector<2x1x16xf32> to vector<2x16xf32>
    %310 = arith.addf %307, %309 : vector<2x16xf32>
    %311 = vector.extract_strided_slice %95 {offsets = [0, 46, 0], sizes = [2, 1, 16], strides = [1, 1, 1]} : vector<2x64x16xf32> to vector<2x1x16xf32>
    %312 = vector.shape_cast %311 : vector<2x1x16xf32> to vector<2x16xf32>
    %313 = arith.addf %310, %312 : vector<2x16xf32>
    %314 = vector.extract_strided_slice %95 {offsets = [0, 47, 0], sizes = [2, 1, 16], strides = [1, 1, 1]} : vector<2x64x16xf32> to vector<2x1x16xf32>
    %315 = vector.shape_cast %314 : vector<2x1x16xf32> to vector<2x16xf32>
    %316 = arith.addf %313, %315 : vector<2x16xf32>
    %cst_164 = arith.constant 2.500000e-01 : f32
    %317 = vector.broadcast %cst_164 : f32 to vector<2x16xf32>
    %318 = arith.mulf %316, %317 : vector<2x16xf32>
    %cst_165 = arith.constant 0.000000e+00 : f32
    %319 = vector.broadcast %cst_165 : f32 to vector<2x16xf32>
    %320 = arith.maximumf %318, %319 : vector<2x16xf32>
    %c11_166 = arith.constant 11 : index
    %c0_167 = arith.constant 0 : index
    %c0_168 = arith.constant 0 : index
    %321 = vector.load %arg8[%c11_166, %c0_167, %c0_168] : memref<16x16x512xf32, #tpu.memory_space<vmem>>, vector<1x16x512xf32>
    %322 = vector.shape_cast %321 : vector<1x16x512xf32> to vector<16x512xf32>
    %cst_169 = arith.constant dense<0.000000e+00> : vector<2x512xf32>
    %323 = tpu.matmul %320, %322, %cst_169 {dimension_numbers = #tpu.dot_dimension_numbers<[1], [0], [0], [1], [0, 0, 1, 1], [], []>} : vector<2x16xf32>, vector<16x512xf32>, vector<2x512xf32> -> vector<2x512xf32>
    %324 = arith.addf %305, %323 : vector<2x512xf32>
    %325 = vector.extract_strided_slice %95 {offsets = [0, 48, 0], sizes = [2, 1, 16], strides = [1, 1, 1]} : vector<2x64x16xf32> to vector<2x1x16xf32>
    %326 = vector.shape_cast %325 : vector<2x1x16xf32> to vector<2x16xf32>
    %327 = vector.extract_strided_slice %95 {offsets = [0, 49, 0], sizes = [2, 1, 16], strides = [1, 1, 1]} : vector<2x64x16xf32> to vector<2x1x16xf32>
    %328 = vector.shape_cast %327 : vector<2x1x16xf32> to vector<2x16xf32>
    %329 = arith.addf %326, %328 : vector<2x16xf32>
    %330 = vector.extract_strided_slice %95 {offsets = [0, 50, 0], sizes = [2, 1, 16], strides = [1, 1, 1]} : vector<2x64x16xf32> to vector<2x1x16xf32>
    %331 = vector.shape_cast %330 : vector<2x1x16xf32> to vector<2x16xf32>
    %332 = arith.addf %329, %331 : vector<2x16xf32>
    %333 = vector.extract_strided_slice %95 {offsets = [0, 51, 0], sizes = [2, 1, 16], strides = [1, 1, 1]} : vector<2x64x16xf32> to vector<2x1x16xf32>
    %334 = vector.shape_cast %333 : vector<2x1x16xf32> to vector<2x16xf32>
    %335 = arith.addf %332, %334 : vector<2x16xf32>
    %cst_170 = arith.constant 2.500000e-01 : f32
    %336 = vector.broadcast %cst_170 : f32 to vector<2x16xf32>
    %337 = arith.mulf %335, %336 : vector<2x16xf32>
    %cst_171 = arith.constant 0.000000e+00 : f32
    %338 = vector.broadcast %cst_171 : f32 to vector<2x16xf32>
    %339 = arith.maximumf %337, %338 : vector<2x16xf32>
    %c12 = arith.constant 12 : index
    %c0_172 = arith.constant 0 : index
    %c0_173 = arith.constant 0 : index
    %340 = vector.load %arg8[%c12, %c0_172, %c0_173] : memref<16x16x512xf32, #tpu.memory_space<vmem>>, vector<1x16x512xf32>
    %341 = vector.shape_cast %340 : vector<1x16x512xf32> to vector<16x512xf32>
    %cst_174 = arith.constant dense<0.000000e+00> : vector<2x512xf32>
    %342 = tpu.matmul %339, %341, %cst_174 {dimension_numbers = #tpu.dot_dimension_numbers<[1], [0], [0], [1], [0, 0, 1, 1], [], []>} : vector<2x16xf32>, vector<16x512xf32>, vector<2x512xf32> -> vector<2x512xf32>
    %343 = arith.addf %324, %342 : vector<2x512xf32>
    %344 = vector.extract_strided_slice %95 {offsets = [0, 52, 0], sizes = [2, 1, 16], strides = [1, 1, 1]} : vector<2x64x16xf32> to vector<2x1x16xf32>
    %345 = vector.shape_cast %344 : vector<2x1x16xf32> to vector<2x16xf32>
    %346 = vector.extract_strided_slice %95 {offsets = [0, 53, 0], sizes = [2, 1, 16], strides = [1, 1, 1]} : vector<2x64x16xf32> to vector<2x1x16xf32>
    %347 = vector.shape_cast %346 : vector<2x1x16xf32> to vector<2x16xf32>
    %348 = arith.addf %345, %347 : vector<2x16xf32>
    %349 = vector.extract_strided_slice %95 {offsets = [0, 54, 0], sizes = [2, 1, 16], strides = [1, 1, 1]} : vector<2x64x16xf32> to vector<2x1x16xf32>
    %350 = vector.shape_cast %349 : vector<2x1x16xf32> to vector<2x16xf32>
    %351 = arith.addf %348, %350 : vector<2x16xf32>
    %352 = vector.extract_strided_slice %95 {offsets = [0, 55, 0], sizes = [2, 1, 16], strides = [1, 1, 1]} : vector<2x64x16xf32> to vector<2x1x16xf32>
    %353 = vector.shape_cast %352 : vector<2x1x16xf32> to vector<2x16xf32>
    %354 = arith.addf %351, %353 : vector<2x16xf32>
    %cst_175 = arith.constant 2.500000e-01 : f32
    %355 = vector.broadcast %cst_175 : f32 to vector<2x16xf32>
    %356 = arith.mulf %354, %355 : vector<2x16xf32>
    %cst_176 = arith.constant 0.000000e+00 : f32
    %357 = vector.broadcast %cst_176 : f32 to vector<2x16xf32>
    %358 = arith.maximumf %356, %357 : vector<2x16xf32>
    %c13 = arith.constant 13 : index
    %c0_177 = arith.constant 0 : index
    %c0_178 = arith.constant 0 : index
    %359 = vector.load %arg8[%c13, %c0_177, %c0_178] : memref<16x16x512xf32, #tpu.memory_space<vmem>>, vector<1x16x512xf32>
    %360 = vector.shape_cast %359 : vector<1x16x512xf32> to vector<16x512xf32>
    %cst_179 = arith.constant dense<0.000000e+00> : vector<2x512xf32>
    %361 = tpu.matmul %358, %360, %cst_179 {dimension_numbers = #tpu.dot_dimension_numbers<[1], [0], [0], [1], [0, 0, 1, 1], [], []>} : vector<2x16xf32>, vector<16x512xf32>, vector<2x512xf32> -> vector<2x512xf32>
    %362 = arith.addf %343, %361 : vector<2x512xf32>
    %363 = vector.extract_strided_slice %95 {offsets = [0, 56, 0], sizes = [2, 1, 16], strides = [1, 1, 1]} : vector<2x64x16xf32> to vector<2x1x16xf32>
    %364 = vector.shape_cast %363 : vector<2x1x16xf32> to vector<2x16xf32>
    %365 = vector.extract_strided_slice %95 {offsets = [0, 57, 0], sizes = [2, 1, 16], strides = [1, 1, 1]} : vector<2x64x16xf32> to vector<2x1x16xf32>
    %366 = vector.shape_cast %365 : vector<2x1x16xf32> to vector<2x16xf32>
    %367 = arith.addf %364, %366 : vector<2x16xf32>
    %368 = vector.extract_strided_slice %95 {offsets = [0, 58, 0], sizes = [2, 1, 16], strides = [1, 1, 1]} : vector<2x64x16xf32> to vector<2x1x16xf32>
    %369 = vector.shape_cast %368 : vector<2x1x16xf32> to vector<2x16xf32>
    %370 = arith.addf %367, %369 : vector<2x16xf32>
    %371 = vector.extract_strided_slice %95 {offsets = [0, 59, 0], sizes = [2, 1, 16], strides = [1, 1, 1]} : vector<2x64x16xf32> to vector<2x1x16xf32>
    %372 = vector.shape_cast %371 : vector<2x1x16xf32> to vector<2x16xf32>
    %373 = arith.addf %370, %372 : vector<2x16xf32>
    %cst_180 = arith.constant 2.500000e-01 : f32
    %374 = vector.broadcast %cst_180 : f32 to vector<2x16xf32>
    %375 = arith.mulf %373, %374 : vector<2x16xf32>
    %cst_181 = arith.constant 0.000000e+00 : f32
    %376 = vector.broadcast %cst_181 : f32 to vector<2x16xf32>
    %377 = arith.maximumf %375, %376 : vector<2x16xf32>
    %c14 = arith.constant 14 : index
    %c0_182 = arith.constant 0 : index
    %c0_183 = arith.constant 0 : index
    %378 = vector.load %arg8[%c14, %c0_182, %c0_183] : memref<16x16x512xf32, #tpu.memory_space<vmem>>, vector<1x16x512xf32>
    %379 = vector.shape_cast %378 : vector<1x16x512xf32> to vector<16x512xf32>
    %cst_184 = arith.constant dense<0.000000e+00> : vector<2x512xf32>
    %380 = tpu.matmul %377, %379, %cst_184 {dimension_numbers = #tpu.dot_dimension_numbers<[1], [0], [0], [1], [0, 0, 1, 1], [], []>} : vector<2x16xf32>, vector<16x512xf32>, vector<2x512xf32> -> vector<2x512xf32>
    %381 = arith.addf %362, %380 : vector<2x512xf32>
    %382 = vector.extract_strided_slice %95 {offsets = [0, 60, 0], sizes = [2, 1, 16], strides = [1, 1, 1]} : vector<2x64x16xf32> to vector<2x1x16xf32>
    %383 = vector.shape_cast %382 : vector<2x1x16xf32> to vector<2x16xf32>
    %384 = vector.extract_strided_slice %95 {offsets = [0, 61, 0], sizes = [2, 1, 16], strides = [1, 1, 1]} : vector<2x64x16xf32> to vector<2x1x16xf32>
    %385 = vector.shape_cast %384 : vector<2x1x16xf32> to vector<2x16xf32>
    %386 = arith.addf %383, %385 : vector<2x16xf32>
    %387 = vector.extract_strided_slice %95 {offsets = [0, 62, 0], sizes = [2, 1, 16], strides = [1, 1, 1]} : vector<2x64x16xf32> to vector<2x1x16xf32>
    %388 = vector.shape_cast %387 : vector<2x1x16xf32> to vector<2x16xf32>
    %389 = arith.addf %386, %388 : vector<2x16xf32>
    %390 = vector.extract_strided_slice %95 {offsets = [0, 63, 0], sizes = [2, 1, 16], strides = [1, 1, 1]} : vector<2x64x16xf32> to vector<2x1x16xf32>
    %391 = vector.shape_cast %390 : vector<2x1x16xf32> to vector<2x16xf32>
    %392 = arith.addf %389, %391 : vector<2x16xf32>
    %cst_185 = arith.constant 2.500000e-01 : f32
    %393 = vector.broadcast %cst_185 : f32 to vector<2x16xf32>
    %394 = arith.mulf %392, %393 : vector<2x16xf32>
    %cst_186 = arith.constant 0.000000e+00 : f32
    %395 = vector.broadcast %cst_186 : f32 to vector<2x16xf32>
    %396 = arith.maximumf %394, %395 : vector<2x16xf32>
    %c15 = arith.constant 15 : index
    %c0_187 = arith.constant 0 : index
    %c0_188 = arith.constant 0 : index
    %397 = vector.load %arg8[%c15, %c0_187, %c0_188] : memref<16x16x512xf32, #tpu.memory_space<vmem>>, vector<1x16x512xf32>
    %398 = vector.shape_cast %397 : vector<1x16x512xf32> to vector<16x512xf32>
    %cst_189 = arith.constant dense<0.000000e+00> : vector<2x512xf32>
    %399 = tpu.matmul %396, %398, %cst_189 {dimension_numbers = #tpu.dot_dimension_numbers<[1], [0], [0], [1], [0, 0, 1, 1], [], []>} : vector<2x16xf32>, vector<16x512xf32>, vector<2x512xf32> -> vector<2x512xf32>
    %400 = arith.addf %381, %399 : vector<2x512xf32>
    %c0_190 = arith.constant 0 : index
    %c0_191 = arith.constant 0 : index
    %401 = vector.load %arg9[%c0_190, %c0_191] : memref<1x512xf32, #tpu.memory_space<vmem>>, vector<1x512xf32>
    %402 = vector.broadcast %401 : vector<1x512xf32> to vector<2x512xf32>
    %403 = arith.addf %400, %402 : vector<2x512xf32>
    %cst_192 = arith.constant 0.000000e+00 : f32
    %404 = vector.broadcast %cst_192 : f32 to vector<2x512xf32>
    %405 = arith.maximumf %403, %404 : vector<2x512xf32>
    %c0_193 = arith.constant 0 : index
    %c0_194 = arith.constant 0 : index
    %406 = vector.load %arg10[%c0_193, %c0_194] : memref<512x256xf32, #tpu.memory_space<vmem>>, vector<512x256xf32>
    %cst_195 = arith.constant dense<0.000000e+00> : vector<2x256xf32>
    %407 = tpu.matmul %405, %406, %cst_195 {dimension_numbers = #tpu.dot_dimension_numbers<[1], [0], [0], [1], [0, 0, 1, 1], [], []>} : vector<2x512xf32>, vector<512x256xf32>, vector<2x256xf32> -> vector<2x256xf32>
    %c0_196 = arith.constant 0 : index
    %c0_197 = arith.constant 0 : index
    %408 = vector.load %arg11[%c0_196, %c0_197] : memref<1x256xf32, #tpu.memory_space<vmem>>, vector<1x256xf32>
    %409 = vector.broadcast %408 : vector<1x256xf32> to vector<2x256xf32>
    %410 = arith.addf %407, %409 : vector<2x256xf32>
    %cst_198 = arith.constant 0.000000e+00 : f32
    %411 = vector.broadcast %cst_198 : f32 to vector<2x256xf32>
    %412 = arith.maximumf %410, %411 : vector<2x256xf32>
    %c0_199 = arith.constant 0 : index
    %c0_200 = arith.constant 0 : index
    %413 = vector.load %arg12[%c0_199, %c0_200] : memref<256x10xf32, #tpu.memory_space<vmem>>, vector<256x10xf32>
    %cst_201 = arith.constant dense<0.000000e+00> : vector<2x10xf32>
    %414 = tpu.matmul %412, %413, %cst_201 {dimension_numbers = #tpu.dot_dimension_numbers<[1], [0], [0], [1], [0, 0, 1, 1], [], []>} : vector<2x256xf32>, vector<256x10xf32>, vector<2x10xf32> -> vector<2x10xf32>
    %c0_202 = arith.constant 0 : index
    %c0_203 = arith.constant 0 : index
    %415 = vector.load %arg13[%c0_202, %c0_203] : memref<1x10xf32, #tpu.memory_space<vmem>>, vector<1x10xf32>
    %416 = vector.broadcast %415 : vector<1x10xf32> to vector<2x10xf32>
    %417 = arith.addf %414, %416 : vector<2x10xf32>
    %c0_204 = arith.constant 0 : index
    %c0_205 = arith.constant 0 : index
    %418 = vector.load %arg14[%c0_204, %c0_205] : memref<2x10xf32, #tpu.memory_space<vmem>>, vector<2x10xf32>
    tpu.vector_store %arg14[%c0_204, %c0_205], %417 {strides = array<i32>} : memref<2x10xf32, #tpu.memory_space<vmem>>, vector<2x10xf32>,
    return
  }
  func.func @transform_0(%arg0: i32) -> (i32, i32, i32) {
    %c0_i32 = arith.constant 0 : i32
    %c0_i32_0 = arith.constant 0 : i32
    %c0_i32_1 = arith.constant 0 : i32
    return %arg0, %c0_i32, %c0_i32_0 : i32, i32, i32
  }
  func.func @transform_1(%arg0: i32) -> (i32, i32) {
    %c0_i32 = arith.constant 0 : i32
    %c0_i32_0 = arith.constant 0 : i32
    %c0_i32_1 = arith.constant 0 : i32
    return %c0_i32, %c0_i32_0 : i32, i32
  }
  func.func @transform_2(%arg0: i32) -> (i32, i32) {
    %c0_i32 = arith.constant 0 : i32
    %c0_i32_0 = arith.constant 0 : i32
    %c0_i32_1 = arith.constant 0 : i32
    return %c0_i32, %c0_i32_0 : i32, i32
  }
  func.func @transform_3(%arg0: i32) -> (i32, i32, i32) {
    %c0_i32 = arith.constant 0 : i32
    %c0_i32_0 = arith.constant 0 : i32
    %c0_i32_1 = arith.constant 0 : i32
    %c0_i32_2 = arith.constant 0 : i32
    return %c0_i32, %c0_i32_0, %c0_i32_1 : i32, i32, i32
  }
  func.func @transform_4(%arg0: i32) -> (i32, i32) {
    %c0_i32 = arith.constant 0 : i32
    %c0_i32_0 = arith.constant 0 : i32
    %c0_i32_1 = arith.constant 0 : i32
    return %c0_i32, %c0_i32_0 : i32, i32
  }
  func.func @transform_5(%arg0: i32) -> (i32, i32, i32) {
    %c0_i32 = arith.constant 0 : i32
    %c0_i32_0 = arith.constant 0 : i32
    %c0_i32_1 = arith.constant 0 : i32
    %c0_i32_2 = arith.constant 0 : i32
    return %c0_i32, %c0_i32_0, %c0_i32_1 : i32, i32, i32
  }
  func.func @transform_6(%arg0: i32) -> (i32, i32) {
    %c0_i32 = arith.constant 0 : i32
    %c0_i32_0 = arith.constant 0 : i32
    %c0_i32_1 = arith.constant 0 : i32
    return %c0_i32, %c0_i32_0 : i32, i32
  }
  func.func @transform_7(%arg0: i32) -> (i32, i32, i32) {
    %c0_i32 = arith.constant 0 : i32
    %c0_i32_0 = arith.constant 0 : i32
    %c0_i32_1 = arith.constant 0 : i32
    %c0_i32_2 = arith.constant 0 : i32
    return %c0_i32, %c0_i32_0, %c0_i32_1 : i32, i32, i32
  }
  func.func @transform_8(%arg0: i32) -> (i32, i32) {
    %c0_i32 = arith.constant 0 : i32
    %c0_i32_0 = arith.constant 0 : i32
    %c0_i32_1 = arith.constant 0 : i32
    return %c0_i32, %c0_i32_0 : i32, i32
  }
  func.func @transform_9(%arg0: i32) -> (i32, i32) {
    %c0_i32 = arith.constant 0 : i32
    %c0_i32_0 = arith.constant 0 : i32
    %c0_i32_1 = arith.constant 0 : i32
    return %c0_i32, %c0_i32_0 : i32, i32
  }
  func.func @transform_10(%arg0: i32) -> (i32, i32) {
    %c0_i32 = arith.constant 0 : i32
    %c0_i32_0 = arith.constant 0 : i32
    %c0_i32_1 = arith.constant 0 : i32
    return %c0_i32, %c0_i32_0 : i32, i32
  }
  func.func @transform_11(%arg0: i32) -> (i32, i32) {
    %c0_i32 = arith.constant 0 : i32
    %c0_i32_0 = arith.constant 0 : i32
    %c0_i32_1 = arith.constant 0 : i32
    return %c0_i32, %c0_i32_0 : i32, i32
  }
  func.func @transform_12(%arg0: i32) -> (i32, i32) {
    %c0_i32 = arith.constant 0 : i32
    %c0_i32_0 = arith.constant 0 : i32
    %c0_i32_1 = arith.constant 0 : i32
    return %c0_i32, %c0_i32_0 : i32, i32
  }
  func.func @transform_13(%arg0: i32) -> (i32, i32) {
    %c0_i32 = arith.constant 0 : i32
    %c0_i32_0 = arith.constant 0 : i32
    return %arg0, %c0_i32 : i32, i32
  }
}

</mosaic_0001>

<bundles_post_ra>
// kernel: tpu_custom_call.1
= control target key start
LH: loop header
LB: loop body
LE: loop exit
PB: predicated region body
PF: predicated region fallthrough
CT: control target
= control target key end

     0   :  { %18 = vsyncpa [#allocation4], 0  ;;  %s8983_s0 = inlined_call_operand.vmem [shape: f32[2,64,7], index: 0, kind: input, shape index: {}]   ;;  %s8984_s1 = inlined_call_operand.vmem [shape: f32[7,16], index: 1, kind: input, shape index: {}]   ;;  %s8985_s2 = inlined_call_operand.vmem [shape: f32[1,16], index: 2, kind: input, shape index: {}]   ;;  %s8986_s3 = inlined_call_operand.vmem [shape: f32[7,16,16], index: 3, kind: input, shape index: {}]   ;;  %s8987_s4 = inlined_call_operand.vmem [shape: f32[1,16], index: 4, kind: input, shape index: {}]   ;;  %s8988_s5 = inlined_call_operand.vmem [shape: f32[5,16,16], index: 5, kind: input, shape index: {}]   ;;  %s8989_s6 = inlined_call_operand.vmem [shape: f32[1,16], index: 6, kind: input, shape index: {}]   ;;  %s8990_s7 = inlined_call_operand.hbm [shape: f32[16,16,512], index: 7, kind: input, shape index: {}]   ;;  %s8991_s8 = inlined_call_operand.vmem [shape: f32[1,512], index: 8, kind: input, shape index: {}]   ;;  %s8992_s9 = inlined_call_operand.hbm [shape: f32[512,256], index: 9, kind: input, shape index: {}]   ;;  %s8993_s10 = inlined_call_operand.vmem [shape: f32[1,256], index: 10, kind: input, shape index: {}]   ;;  %s8994_s11 = inlined_call_operand.vmem [shape: f32[256,10], index: 11, kind: input, shape index: {}]   ;;  %s8995_s12 = inlined_call_operand.vmem [shape: f32[1,10], index: 12, kind: input, shape index: {}]   ;;  %s8996_s13 = inlined_call_operand.hbm [shape: f32[2,10], index: 13, kind: output, shape index: {}]  }
   0x1   :  { %19 = vsyncpa [#allocation7], 0 }
   0x2   :  { %20 = vsyncpa [#allocation5], 0  ;;  %s7890_s25 = smov [#allocation3]   ;;  %s7818_s29 = scalar_lea.hbm %s8990_s7, 16384 }
   0x3   :  { %s40_s26 = sshll.u32 %s7890_s25, 4  ;;  %p7819_p0 = scmp.ne.s32.totalorder %s8990_s7, %s7818_s29  ;;  %s41_s26 = int_to_ptr.vmem [resolvable:$true] %s40_s26 }
   0x4   :  { %p7822_p1 = scmp.lt.u32.totalorder %s7818_s29, %s8990_s7 }
   0x6   :  { %p7824_p2 = pnand %p7822_p1, %p7819_p0 }
   0x8   :  { %7827 = shalt.err (!%p7824_p2)
}
   0x9   :  { %s7828_s17 = scalar_lea.vmem %s41_s26, 16384  ;;  %p7833_p4 = scmp.lt.s32.totalorder %s41_s26, %s41_s26 }
   0xa   :  { %p7829_p3 = scmp.ne.s32.totalorder %s41_s26, %s7828_s17  ;;  %p7834_p5 = scmp.lt.s32.totalorder %s7828_s17, %s7828_s17 }
   0xc   :  { %p7835_p6 = por %p7834_p5, %p7833_p4 }
   0xe   :  { %p7836_p7 = pnand %p7835_p6, %p7829_p3 }
  0x10   :  { %7839 = shalt.err (!%p7836_p7)
}
  0x11   :  { %s7891_s18 = smov 512   ;;  %s7892_s19 = smov 32  }
  0x12   :  { %46 = dma.hbm_to_vmem [thread:$0]  %s8990_s7, 16384, %s41_s26, [#allocation4], %s7891_s18, %s7891_s18, %s7892_s19  }
  0x13   :  { %s7893_s22 = smov [#allocation6]   ;;  %s7840_s27 = scalar_lea.hbm %s8992_s9, 16384 }
  0x14   :  { %s54_s23 = sshll.u32 %s7893_s22, 4  ;;  %p7841_p8 = scmp.ne.s32.totalorder %s8992_s9, %s7840_s27  ;;  %s55_s23 = int_to_ptr.vmem [resolvable:$true] %s54_s23 }
  0x15   :  { %p7844_p9 = scmp.lt.u32.totalorder %s7840_s27, %s8992_s9 }
  0x17   :  { %p7846_p10 = pnand %p7844_p9, %p7841_p8 }
  0x19   :  { %7849 = shalt.err (!%p7846_p10)
}
  0x1a   :  { %s7850_s15 = scalar_lea.vmem %s55_s23, 16384  ;;  %p7855_p12 = scmp.lt.s32.totalorder %s55_s23, %s55_s23 }
  0x1b   :  { %p7851_p11 = scmp.ne.s32.totalorder %s55_s23, %s7850_s15  ;;  %p7856_p13 = scmp.lt.s32.totalorder %s7850_s15, %s7850_s15 }
  0x1d   :  { %p7857_p0 = por %p7856_p13, %p7855_p12 }
  0x1f   :  { %p7858_p1 = pnand %p7857_p0, %p7851_p11 }
  0x21   :  { %7861 = shalt.err (!%p7858_p1)
}
  0x22   :  { %s7894_s7 = smov 256   ;;  %s7895_s26 = smov 16  }
  0x23   :  { %60 = dma.hbm_to_vmem [thread:$0]  %s8992_s9, 16384, %s55_s23, [#allocation7], %s7894_s7, %s7894_s7, %s7895_s26  }
  0x24   :  { %7884 = dma.done.wait [#allocation4], 16384  }
  0x25   :  { %7885 = vsyncadd [#allocation4], 4294950912 }
  0x26   :  { %7886 = dma.done.wait [#allocation7], 16384  }
  0x27   :  { %7887 = vsyncadd [#allocation7], 4294950912  ;;  %vm151_vm0 = vcmask 1046528   ;;  %vm102_vm1 = vcmask 56320   ;;  %v94_v0 = vld [vmem:[%s8984_s1] sm:$0x7f] }
  0x28   :  { %v78_v1 = vld [vmem:[%s8983_s0] sm:$0xff]  ;;  %v79_v2 = vld [vmem:[%s8983_s0 + $0x8] sm:$0xff]  ;;  %6854 = vmatprep.subr.msk.mxu0 %vm151_vm0, %v94_v0  ;;  %v80_v3 = vld [vmem:[%s8983_s0 + $0x10] sm:$0xff]  ;;  %7552 = vmatprep.subr.msk.mxu1 %vm151_vm0, %v94_v0  ;;  %vm73_vm2 = vcmask 130048   ;;  %v8997_v19 = vmov 0.0   ;;  %vm3173_vm3 = vcmask 1041409  }
  0x29   :  { %6856 = vmatprep.mubr.msk.f32.mxu0 %vm102_vm1, %v78_v1  ;;  %6855 = vmatpush3.msk.msra.mxu0 %vm151_vm0, %v94_v0  ;;  %v88_v4 = vld [vmem:[%s8983_s0 + $0x50] sm:$0xff]  ;;  %v89_v5 = vld [vmem:[%s8983_s0 + $0x58] sm:$0xff]  ;;  %v90_v7 = vld [vmem:[%s8983_s0 + $0x60] sm:$0xff]  ;;  %74 = vst.msk [vmem:[#allocation2] sm:$0xff] %vm73_vm2, %v8997_v19  ;;  %vm6303_vm4 = vcmask 74752  }
  0x2a   :  { %6857 = vmatmul.mubr.msk.f32.vlgmr.msra.gmra.mrb[0].mxu0 %vm102_vm1, %v79_v2  ;;  %7553 = vmatpush3.msk.msra.mxu1 %vm151_vm0, %v94_v0  ;;  %v81_v6 = vld [vmem:[%s8983_s0 + $0x18] sm:$0xff]  ;;  %v82_v8 = vld [vmem:[%s8983_s0 + $0x20] sm:$0xff]  ;;  %v91_v9 = vld [vmem:[%s8983_s0 + $0x68] sm:$0xff]  ;;  %75 = vst.msk [vmem:[#allocation2 + $0x50] sm:$0xff] %vm73_vm2, %v8997_v19 }
  0x2b   :  { %6859 = vmatprep.mubr.msk.f32.mxu0 %vm102_vm1, %v80_v3  ;;  %6871 = vmatprep.mubr.msk.f32.mxu1 %vm102_vm1, %v88_v4  ;;  %v92_v10 = vld [vmem:[%s8983_s0 + $0x70] sm:$0xff]  ;;  %v83_v11 = vld [vmem:[%s8983_s0 + $0x28] sm:$0xff]  ;;  %v93_v13 = vld [vmem:[%s8983_s0 + $0x78] sm:$0xff]  ;;  %76 = vst.msk [vmem:[#allocation2 + $0x48] sm:$0xff] %vm73_vm2, %v8997_v19 }
  0x2c   :  { %6872 = vmatmul.mubr.msk.f32.vlgmr.msra.gmra.mrb[0].mxu1 %vm102_vm1, %v89_v5  ;;  %v84_v12 = vld [vmem:[%s8983_s0 + $0x30] sm:$0xff]  ;;  %v85_v14 = vld [vmem:[%s8983_s0 + $0x38] sm:$0xff]  ;;  %v86_v15 = vld [vmem:[%s8983_s0 + $0x40] sm:$0xff]  ;;  %77 = vst.msk [vmem:[#allocation2 + $0x98] sm:$0xff] %vm73_vm2, %v8997_v19 }
  0x2d   :  { %6874 = vmatprep.mubr.msk.f32.mxu1 %vm102_vm1, %v90_v7  ;;  %v87_v16 = vld [vmem:[%s8983_s0 + $0x48] sm:$0xff]  ;;  %v349_v17 = vld [vmem:[%s8986_s3] sm:$0xff]  ;;  %v6356_v21 = vld [vmem:[%s8986_s3 + $0x10] sm:$0xff] }
  0x2e   :  { %6860 = vmatmul.mubr.msk.f32.gmra.mrb[2].mxu0 %vm102_vm1, %v81_v6  ;;  %v350_v18 = vld [vmem:[%s8986_s3 + $0x8] sm:$0xff]  ;;  %v6357_v22 = vld [vmem:[%s8986_s3 + $0x18] sm:$0xff]  ;;  %v8082_v24 = vld [vmem:[%s8985_s2] ss:$0 sm:$0xff] }
  0x2f   :  { %6862 = vmatprep.mubr.msk.f32.mxu0 %vm102_vm1, %v82_v8  ;;  %v7216_v20 = vpack.c.bf16 %v350_v18, %v349_v17  ;;  %v7220_v23 = vpack.c.bf16 %v6357_v22, %v6356_v21  ;;  %v6374_v54 = vld [vmem:[%s8986_s3 + $0x20] sm:$0xff]  ;;  %v6375_v55 = vld [vmem:[%s8986_s3 + $0x28] sm:$0xff] }
  0x30   :  { %6875 = vmatmul.mubr.msk.f32.gmra.mrb[2].mxu1 %vm102_vm1, %v91_v9  ;;  %v7224_v3 = vpack.c.bf16 %v6375_v55, %v6374_v54 }
  0x31   :  { %6877 = vmatprep.mubr.msk.f32.mxu1 %vm102_vm1, %v92_v10  ;;  %7217 = vmatprep.subr.bf16.mxu1 %v7216_v20 }
  0x32   :  { %6863 = vmatmul.mubr.msk.f32.gmra.mrb[4].mxu0 %vm102_vm1, %v83_v11  ;;  %7219 = vmatpush3.bf16.msra.mxu1 %v7216_v20 }
  0x33   :  { %6865 = vmatprep.mubr.msk.f32.mxu0 %vm102_vm1, %v84_v12  ;;  %7221 = vmatprep.subr.bf16.mxu1 %v7220_v23 }
  0x34   :  { %6878 = vmatmul.mubr.msk.f32.gmra.mrb[4].mxu1 %vm102_vm1, %v93_v13 }
  0x36   :  { %6866 = vmatmul.mubr.msk.f32.gmra.mrb[6].mxu0 %vm102_vm1, %v85_v14 }
  0x37   :  { %6868 = vmatprep.mubr.msk.f32.mxu0 %vm102_vm1, %v86_v15 }
  0x3a   :  { %6869 = vmatmul.mubr.msk.f32.gmra.mrb[8].mxu0 %vm102_vm1, %v87_v16 }
  0xfd   :  { %v6858_v25 = vpop.f32.mrb[0].mxu0 }
  0xfe   :  { %v8085_v26 = vadd.f32 %v6858_v25, %v8082_v24  ;;  %v221_v27 = vpop.f32.mrb[1].mxu0 }
  0xff   :  { %v8088_v28 = vadd.f32 %v8082_v24, %v221_v27  ;;  %v6873_v29 = vpop.f32.mrb[0].mxu1 }
 0x100   :  { %v301_v30 = vmax.f32 %v8085_v26, 0.0  ;;  %v8092_v31 = vadd.f32 %v6873_v29, %v8082_v24  ;;  %v271_v32 = vpop.f32.mrb[1].mxu1 }
 0x101   :  { %v300_v33 = vmax.f32 %v8088_v28, 0.0  ;;  %v6861_v34 = vpop.f32.mrb[2].mxu0  ;;  %v8096_v35 = vadd.f32 %v8082_v24, %v271_v32 }
 0x102   :  { %317 = vst.msk [vmem:[#allocation2 + $0x10] sm:$0xff] %vm73_vm2, %v301_v30  ;;  %v8102_v36 = vadd.f32 %v6861_v34, %v8082_v24  ;;  %v231_v37 = vpop.f32.mrb[3].mxu0  ;;  %v311_v38 = vmax.f32 %v8092_v31, 0.0  ;;  %v6392_v34 = vld [vmem:[%s8986_s3 + $0x30] sm:$0xff] }
 0x103   :  { %316 = vst.msk [vmem:[#allocation2 + $0x8] sm:$0xff] %vm73_vm2, %v300_v33  ;;  %v8109_v39 = vadd.f32 %v8082_v24, %v231_v37  ;;  %v310_v40 = vmax.f32 %v8096_v35, 0.0  ;;  %v6876_v41 = vpop.f32.mrb[2].mxu1  ;;  %v6393_v37 = vld [vmem:[%s8986_s3 + $0x38] sm:$0xff] }
 0x104   :  { %v303_v42 = vmax.f32 %v8102_v36, 0.0  ;;  %327 = vst.msk [vmem:[#allocation2 + $0x70] sm:$0xff] %vm73_vm2, %v311_v38  ;;  %v8117_v43 = vadd.f32 %v6876_v41, %v8082_v24  ;;  %v281_v44 = vpop.f32.mrb[3].mxu1 }
 0x105   :  { %v302_v45 = vmax.f32 %v8109_v39, 0.0  ;;  %v6864_v46 = vpop.f32.mrb[4].mxu0  ;;  %326 = vst.msk [vmem:[#allocation2 + $0x68] sm:$0xff] %vm73_vm2, %v310_v40  ;;  %v8124_v47 = vadd.f32 %v8082_v24, %v281_v44  ;;  %v7228_v44 = vpack.c.bf16 %v6393_v37, %v6392_v34 }
 0x106   :  { %319 = vst.msk [vmem:[#allocation2 + $0x20] sm:$0xff] %vm73_vm2, %v303_v42  ;;  %v8130_v48 = vadd.f32 %v6864_v46, %v8082_v24  ;;  %v241_v49 = vpop.f32.mrb[5].mxu0  ;;  %v313_v50 = vmax.f32 %v8117_v43, 0.0 }
 0x107   :  { %318 = vst.msk [vmem:[#allocation2 + $0x18] sm:$0xff] %vm73_vm2, %v302_v45  ;;  %v8137_v51 = vadd.f32 %v8082_v24, %v241_v49  ;;  %v9002_v52 = vmax.f32 %v8124_v47, 0.0  ;;  %v6879_v53 = vpop.f32.mrb[4].mxu1 }
 0x108   :  { %v305_v56 = vmax.f32 %v8130_v48, 0.0  ;;  %329 = vst.msk [vmem:[#allocation2 + $0x80] sm:$0xff] %vm73_vm2, %v313_v50  ;;  %v8151_v57 = vadd.f32 %v6879_v53, %v8082_v24  ;;  %v291_v58 = vpop.f32.mrb[5].mxu1 }
 0x109   :  { %v304_v59 = vmax.f32 %v8137_v51, 0.0  ;;  %v6867_v60 = vpop.f32.mrb[6].mxu0  ;;  %328 = vst.msk [vmem:[#allocation2 + $0x78] sm:$0xff] %vm73_vm2, %v9002_v52  ;;  %v8158_v61 = vadd.f32 %v8082_v24, %v291_v58 }
 0x10a   :  { %321 = vst.msk [vmem:[#allocation2 + $0x30] sm:$0xff] %vm73_vm2, %v305_v56  ;;  %v8164_v62 = vadd.f32 %v6867_v60, %v8082_v24  ;;  %v251_v63 = vpop.f32.mrb[7].mxu0  ;;  %v333_v0 = vld [vmem:[#allocation2 + $0x5] sm:$0xff]  ;;  %v334_v1 = vld [vmem:[#allocation2 + $0xd] sm:$0xff]  ;;  %v9001_v2 = vmax.f32 %v8151_v57, 0.0 }
 0x10b   :  { %320 = vst.msk [vmem:[#allocation2 + $0x28] sm:$0xff] %vm73_vm2, %v304_v59  ;;  %v8171_v4 = vadd.f32 %v8082_v24, %v251_v63  ;;  %6884 = vmatprep.mubr.msk.f32.mxu1 %vm73_vm2, %v333_v0  ;;  %v9000_v5 = vmax.f32 %v8158_v61, 0.0  ;;  %v566_v41 = vld [vmem:[#allocation2 + $0x6] sm:$0xff]  ;;  %v567_v46 = vld [vmem:[#allocation2 + $0xe] sm:$0xff] }
 0x10c   :  { %v307_v6 = vmax.f32 %v8164_v62, 0.0  ;;  %6885 = vmatmul.mubr.msk.f32.vlgmr.msra.gmra.mrb[6].mxu1 %vm73_vm2, %v334_v1  ;;  %331 = vst.msk [vmem:[#allocation2 + $0x90] sm:$0xff] %vm73_vm2, %v9001_v2 }
 0x10d   :  { %v306_v7 = vmax.f32 %v8171_v4, 0.0  ;;  %7223 = vmatpush3.bf16.msra.mxu1 %v7220_v23  ;;  %v6870_v8 = vpop.f32.mrb[8].mxu0  ;;  %330 = vst.msk [vmem:[#allocation2 + $0x88] sm:$0xff] %vm73_vm2, %v9000_v5 }
 0x10e   :  { %323 = vst.msk [vmem:[#allocation2 + $0x40] sm:$0xff] %vm73_vm2, %v307_v6  ;;  %v8188_v9 = vadd.f32 %v6870_v8, %v8082_v24  ;;  %v261_v10 = vpop.f32.mrb[9].mxu0  ;;  %v335_v11 = vld [vmem:[#allocation2 + $0x15] sm:$0xff]  ;;  %v336_v12 = vld [vmem:[#allocation2 + $0x1d] sm:$0xff]  ;;  %7225 = vmatprep.subr.bf16.mxu1 %v7224_v3 }
 0x10f   :  { %322 = vst.msk [vmem:[#allocation2 + $0x38] sm:$0xff] %vm73_vm2, %v306_v7  ;;  %v8194_v13 = vadd.f32 %v8082_v24, %v261_v10  ;;  %6887 = vmatprep.mubr.msk.f32.mxu1 %vm73_vm2, %v335_v11  ;;  %v344_v24 = vld [vmem:[#allocation2 + $0x6d] sm:$0xff]  ;;  %v568_v49 = vld [vmem:[#allocation2 + $0x16] sm:$0xff]  ;;  %v569_v53 = vld [vmem:[#allocation2 + $0x1e] sm:$0xff] }
 0x110   :  { %v309_v14 = vmax.f32 %v8188_v9, 0.0  ;;  %6888 = vmatmul.mubr.msk.f32.gmra.mrb[8].mxu1 %vm73_vm2, %v336_v12  ;;  %v345_v25 = vld [vmem:[#allocation2 + $0x75] sm:$0xff]  ;;  %v346_v27 = vld [vmem:[#allocation2 + $0x7d] sm:$0xff] }
 0x111   :  { %v308_v15 = vmax.f32 %v8194_v13, 0.0  ;;  %v578_v8 = vld [vmem:[#allocation2 + $0x76] sm:$0xff]  ;;  %v579_v10 = vld [vmem:[#allocation2 + $0x7e] sm:$0xff] }
 0x112   :  { %325 = vst.msk [vmem:[#allocation2 + $0x60] sm:$0xff] %vm73_vm2, %v309_v14  ;;  %v337_v16 = vld [vmem:[#allocation2 + $0x25] sm:$0xff]  ;;  %v338_v17 = vld [vmem:[#allocation2 + $0x2d] sm:$0xff] }
 0x113   :  { %324 = vst.msk [vmem:[#allocation2 + $0x58] sm:$0xff] %vm73_vm2, %v308_v15  ;;  %6890 = vmatprep.mubr.msk.f32.mxu1 %vm73_vm2, %v337_v16  ;;  %v570_v54 = vld [vmem:[#allocation2 + $0x26] sm:$0xff]  ;;  %v571_v55 = vld [vmem:[#allocation2 + $0x2e] sm:$0xff] }
 0x114   :  { %6891 = vmatmul.mubr.msk.f32.gmra.mrb[10].mxu1 %vm73_vm2, %v338_v17  ;;  %v347_v29 = vld [vmem:[#allocation2 + $0x85] sm:$0xff]  ;;  %v348_v32 = vld [vmem:[#allocation2 + $0x8d] sm:$0xff] }
 0x115   :  { %v580_v11 = vld [vmem:[#allocation2 + $0x86] sm:$0xff]  ;;  %v581_v12 = vld [vmem:[#allocation2 + $0x8e] sm:$0xff] }
 0x116   :  { %v339_v18 = vld [vmem:[#allocation2 + $0x35] sm:$0xff]  ;;  %v340_v20 = vld [vmem:[#allocation2 + $0x3d] sm:$0xff]  ;;  %v6411_v17 = vld [vmem:[%s8986_s3 + $0x48] sm:$0xff] }
 0x117   :  { %6893 = vmatprep.mubr.msk.f32.mxu1 %vm73_vm2, %v339_v18  ;;  %v572_v58 = vld [vmem:[#allocation2 + $0x36] sm:$0xff]  ;;  %v573_v60 = vld [vmem:[#allocation2 + $0x3e] sm:$0xff]  ;;  %v794_v18 = vld [vmem:[#allocation2 + $0x7] sm:$0xff] }
 0x118   :  { %6894 = vmatmul.mubr.msk.f32.gmra.mrb[12].mxu1 %vm73_vm2, %v340_v20  ;;  %v6410_v16 = vld [vmem:[%s8986_s3 + $0x40] sm:$0xff] }
 0x119   :  { %v343_v23 = vld [vmem:[#allocation2 + $0x65] sm:$0xff]  ;;  %v7232_v20 = vpack.c.bf16 %v6411_v17, %v6410_v16  ;;  %v1028_v16 = vld [vmem:[#allocation2 + $0x38] sm:$0xff] }
 0x11a   :  { %v341_v21 = vld [vmem:[#allocation2 + $0x55] sm:$0xff]  ;;  %v342_v22 = vld [vmem:[#allocation2 + $0x5d] sm:$0xff]  ;;  %v576_v1 = vld [vmem:[#allocation2 + $0x66] sm:$0xff] }
 0x11b   :  { %6896 = vmatprep.mubr.msk.f32.mxu1 %vm73_vm2, %v341_v21  ;;  %v574_v63 = vld [vmem:[#allocation2 + $0x56] sm:$0xff]  ;;  %v575_v0 = vld [vmem:[#allocation2 + $0x5e] sm:$0xff]  ;;  %v804_v37 = vld [vmem:[#allocation2 + $0x67] sm:$0xff] }
 0x11c   :  { %6897 = vmatmul.mubr.msk.f32.gmra.mrb[14].mxu1 %vm73_vm2, %v342_v22  ;;  %v795_v21 = vld [vmem:[#allocation2 + $0xf] sm:$0xff]  ;;  %v796_v22 = vld [vmem:[#allocation2 + $0x17] sm:$0xff]  ;;  %v803_v34 = vld [vmem:[#allocation2 + $0x5f] sm:$0xff] }
 0x11d   :  { %6899 = vmatprep.mubr.msk.f32.mxu1 %vm73_vm2, %v343_v23  ;;  %v797_v23 = vld [vmem:[#allocation2 + $0x1f] sm:$0xff] }
 0x11e   :  { %v1029_v17 = vld [vmem:[#allocation2 + $0x40] sm:$0xff] }
 0x120   :  { %6900 = vmatmul.mubr.msk.f32.gmra.mrb[16].mxu1 %vm73_vm2, %v344_v24  ;;  %v798_v24 = vld [vmem:[#allocation2 + $0x27] sm:$0xff] }
 0x121   :  { %6902 = vmatprep.mubr.msk.f32.mxu1 %vm73_vm2, %v345_v25  ;;  %v799_v25 = vld [vmem:[#allocation2 + $0x2f] sm:$0xff] }
 0x124   :  { %6903 = vmatmul.mubr.msk.f32.gmra.mrb[18].mxu1 %vm73_vm2, %v346_v27  ;;  %v800_v27 = vld [vmem:[#allocation2 + $0x37] sm:$0xff] }
 0x125   :  { %6905 = vmatprep.mubr.msk.f32.mxu1 %vm73_vm2, %v347_v29  ;;  %v801_v29 = vld [vmem:[#allocation2 + $0x3f] sm:$0xff] }
 0x128   :  { %6906 = vmatmul.mubr.msk.f32.gmra.mrb[20].mxu1 %vm73_vm2, %v348_v32  ;;  %v802_v32 = vld [vmem:[#allocation2 + $0x57] sm:$0xff] }
 0x129   :  { %6912 = vmatprep.mubr.msk.f32.mxu1 %vm73_vm2, %v566_v41  ;;  %v805_v41 = vld [vmem:[#allocation2 + $0x6f] sm:$0xff] }
 0x12c   :  { %6913 = vmatmul.mubr.msk.f32.vlgmr.msra.gmra.mrb[6].mxu1 %vm73_vm2, %v567_v46  ;;  %v807_v46 = vld [vmem:[#allocation2 + $0x7f] sm:$0xff] }
 0x12d   :  { %7227 = vmatpush3.bf16.msra.mxu1 %v7224_v3  ;;  %6915 = vmatprep.mubr.msk.f32.mxu1 %vm73_vm2, %v568_v49  ;;  %v577_v3 = vld [vmem:[#allocation2 + $0x6e] sm:$0xff] }
 0x12e   :  { %7229 = vmatprep.subr.bf16.mxu1 %v7228_v44  ;;  %v808_v49 = vld [vmem:[#allocation2 + $0x87] sm:$0xff] }
 0x130   :  { %6916 = vmatmul.mubr.msk.f32.gmra.mrb[8].mxu1 %vm73_vm2, %v569_v53  ;;  %v809_v53 = vld [vmem:[#allocation2 + $0x8f] sm:$0xff] }
 0x131   :  { %6918 = vmatprep.mubr.msk.f32.mxu1 %vm73_vm2, %v570_v54  ;;  %v6428_v54 = vld [vmem:[%s8986_s3 + $0x50] sm:$0xff] }
 0x134   :  { %6919 = vmatmul.mubr.msk.f32.gmra.mrb[10].mxu1 %vm73_vm2, %v571_v55  ;;  %v6429_v55 = vld [vmem:[%s8986_s3 + $0x58] sm:$0xff] }
 0x135   :  { %6921 = vmatprep.mubr.msk.f32.mxu1 %vm73_vm2, %v572_v58  ;;  %v1022_v58 = vld [vmem:[#allocation2 + $0x8] sm:$0xff] }
 0x138   :  { %6922 = vmatmul.mubr.msk.f32.gmra.mrb[12].mxu1 %vm73_vm2, %v573_v60  ;;  %v1983_v60 = vld [vmem:[%s8988_s5] sm:$0xff] }
 0x139   :  { %6924 = vmatprep.mubr.msk.f32.mxu1 %vm73_vm2, %v574_v63  ;;  %v1984_v63 = vld [vmem:[%s8988_s5 + $0x8] sm:$0xff] }
 0x13c   :  { %6925 = vmatmul.mubr.msk.f32.gmra.mrb[14].mxu1 %vm73_vm2, %v575_v0  ;;  %v7244_v0 = vpack.c.bf16 %v1984_v63, %v1983_v60  ;;  %v1259_v60 = vld [vmem:[#allocation2 + $0x61] sm:$0xff]  ;;  %v1260_v63 = vld [vmem:[#allocation2 + $0x69] sm:$0xff] }
 0x13d   :  { %6927 = vmatprep.mubr.msk.f32.mxu1 %vm73_vm2, %v576_v1  ;;  %v7236_v1 = vpack.c.bf16 %v6429_v55, %v6428_v54  ;;  %v1256_v54 = vld [vmem:[#allocation2 + $0x39] sm:$0xff]  ;;  %v1257_v55 = vld [vmem:[#allocation2 + $0x41] sm:$0xff] }
 0x13e   :  { %7245 = vmatprep.subr.bf16.mxu0 %v7244_v0 }
 0x13f   :  { %7247 = vmatpush3.bf16.msra.mxu0 %v7244_v0  ;;  %v1261_v0 = vld [vmem:[#allocation2 + $0x71] sm:$0xff] }
 0x140   :  { %6928 = vmatmul.mubr.msk.f32.gmra.mrb[16].mxu1 %vm73_vm2, %v577_v3  ;;  %v1023_v3 = vld [vmem:[#allocation2 + $0x10] sm:$0xff] }
 0x141   :  { %6930 = vmatprep.mubr.msk.f32.mxu1 %vm73_vm2, %v578_v8  ;;  %v1024_v8 = vld [vmem:[#allocation2 + $0x18] sm:$0xff] }
 0x144   :  { %6931 = vmatmul.mubr.msk.f32.gmra.mrb[18].mxu1 %vm73_vm2, %v579_v10  ;;  %v1025_v10 = vld [vmem:[#allocation2 + $0x20] sm:$0xff] }
 0x145   :  { %6933 = vmatprep.mubr.msk.f32.mxu1 %vm73_vm2, %v580_v11  ;;  %v1026_v11 = vld [vmem:[#allocation2 + $0x28] sm:$0xff] }
 0x148   :  { %6934 = vmatmul.mubr.msk.f32.gmra.mrb[20].mxu1 %vm73_vm2, %v581_v12  ;;  %v1027_v12 = vld [vmem:[#allocation2 + $0x30] sm:$0xff] }
 0x149   :  { %6940 = vmatprep.mubr.msk.f32.mxu1 %vm73_vm2, %v794_v18  ;;  %v1030_v18 = vld [vmem:[#allocation2 + $0x58] sm:$0xff] }
 0x14c   :  { %6941 = vmatmul.mubr.msk.f32.vlgmr.msra.gmra.mrb[6].mxu1 %vm73_vm2, %v795_v21  ;;  %v1032_v21 = vld [vmem:[#allocation2 + $0x68] sm:$0xff] }
 0x14d   :  { %7231 = vmatpush3.bf16.msra.mxu1 %v7228_v44  ;;  %6943 = vmatprep.mubr.msk.f32.mxu1 %vm73_vm2, %v796_v22  ;;  %v806_v44 = vld [vmem:[#allocation2 + $0x77] sm:$0xff] }
 0x14e   :  { %7233 = vmatprep.subr.bf16.mxu1 %v7232_v20  ;;  %v1033_v22 = vld [vmem:[#allocation2 + $0x70] sm:$0xff] }
 0x150   :  { %6944 = vmatmul.mubr.msk.f32.gmra.mrb[8].mxu1 %vm73_vm2, %v797_v23  ;;  %v1034_v23 = vld [vmem:[#allocation2 + $0x78] sm:$0xff] }
 0x151   :  { %6946 = vmatprep.mubr.msk.f32.mxu1 %vm73_vm2, %v798_v24  ;;  %v1035_v24 = vld [vmem:[#allocation2 + $0x80] sm:$0xff] }
 0x154   :  { %6947 = vmatmul.mubr.msk.f32.gmra.mrb[10].mxu1 %vm73_vm2, %v799_v25  ;;  %v1036_v25 = vld [vmem:[#allocation2 + $0x88] sm:$0xff] }
 0x155   :  { %6949 = vmatprep.mubr.msk.f32.mxu1 %vm73_vm2, %v800_v27  ;;  %v1037_v27 = vld [vmem:[#allocation2 + $0x90] sm:$0xff] }
 0x158   :  { %6950 = vmatmul.mubr.msk.f32.gmra.mrb[12].mxu1 %vm73_vm2, %v801_v29  ;;  %v6446_v29 = vld [vmem:[%s8986_s3 + $0x60] sm:$0xff] }
 0x159   :  { %6952 = vmatprep.mubr.msk.f32.mxu1 %vm73_vm2, %v802_v32  ;;  %v6447_v32 = vld [vmem:[%s8986_s3 + $0x68] sm:$0xff] }
 0x15c   :  { %6953 = vmatmul.mubr.msk.f32.gmra.mrb[14].mxu1 %vm73_vm2, %v803_v34  ;;  %v1250_v34 = vld [vmem:[#allocation2 + $0x9] sm:$0xff] }
 0x15d   :  { %6955 = vmatprep.mubr.msk.f32.mxu1 %vm73_vm2, %v804_v37  ;;  %v7240_v37 = vpack.c.bf16 %v6447_v32, %v6446_v29  ;;  %v1490_v29 = vld [vmem:[#allocation2 + $0x7a] sm:$0xff]  ;;  %v1491_v32 = vld [vmem:[#allocation2 + $0x82] sm:$0xff] }
 0x160   :  { %6956 = vmatmul.mubr.msk.f32.gmra.mrb[16].mxu1 %vm73_vm2, %v805_v41  ;;  %v1251_v41 = vld [vmem:[#allocation2 + $0x11] sm:$0xff] }
 0x161   :  { %6958 = vmatprep.mubr.msk.f32.mxu1 %vm73_vm2, %v806_v44  ;;  %v1252_v44 = vld [vmem:[#allocation2 + $0x19] sm:$0xff] }
 0x164   :  { %6959 = vmatmul.mubr.msk.f32.gmra.mrb[18].mxu1 %vm73_vm2, %v807_v46  ;;  %v1253_v46 = vld [vmem:[#allocation2 + $0x21] sm:$0xff] }
 0x165   :  { %6961 = vmatprep.mubr.msk.f32.mxu1 %vm73_vm2, %v808_v49  ;;  %v1254_v49 = vld [vmem:[#allocation2 + $0x29] sm:$0xff] }
 0x168   :  { %6962 = vmatmul.mubr.msk.f32.gmra.mrb[20].mxu1 %vm73_vm2, %v809_v53  ;;  %v1255_v53 = vld [vmem:[#allocation2 + $0x31] sm:$0xff] }
 0x169   :  { %6968 = vmatprep.mubr.msk.f32.mxu1 %vm73_vm2, %v1022_v58  ;;  %v1258_v58 = vld [vmem:[#allocation2 + $0x59] sm:$0xff] }
 0x16c   :  { %6969 = vmatmul.mubr.msk.f32.vlgmr.msra.gmra.mrb[6].mxu1 %vm73_vm2, %v1023_v3  ;;  %v1263_v3 = vld [vmem:[#allocation2 + $0x81] sm:$0xff] }
 0x16d   :  { %7235 = vmatpush3.bf16.msra.mxu1 %v7232_v20  ;;  %6971 = vmatprep.mubr.msk.f32.mxu1 %vm73_vm2, %v1024_v8  ;;  %v1031_v20 = vld [vmem:[#allocation2 + $0x60] sm:$0xff]  ;;  %v1264_v8 = vld [vmem:[#allocation2 + $0x89] sm:$0xff] }
 0x16e   :  { %7237 = vmatprep.subr.bf16.mxu1 %v7236_v1 }
 0x170   :  { %6972 = vmatmul.mubr.msk.f32.gmra.mrb[8].mxu1 %vm73_vm2, %v1025_v10  ;;  %v1265_v10 = vld [vmem:[#allocation2 + $0x91] sm:$0xff] }
 0x171   :  { %6974 = vmatprep.mubr.msk.f32.mxu1 %vm73_vm2, %v1026_v11  ;;  %v1478_v11 = vld [vmem:[#allocation2 + $0xa] sm:$0xff] }
 0x174   :  { %6975 = vmatmul.mubr.msk.f32.gmra.mrb[10].mxu1 %vm73_vm2, %v1027_v12  ;;  %v1479_v12 = vld [vmem:[#allocation2 + $0x12] sm:$0xff] }
 0x175   :  { %6977 = vmatprep.mubr.msk.f32.mxu1 %vm73_vm2, %v1028_v16  ;;  %v1480_v16 = vld [vmem:[#allocation2 + $0x1a] sm:$0xff] }
 0x178   :  { %6978 = vmatmul.mubr.msk.f32.gmra.mrb[12].mxu1 %vm73_vm2, %v1029_v17  ;;  %v1481_v17 = vld [vmem:[#allocation2 + $0x22] sm:$0xff] }
 0x179   :  { %6980 = vmatprep.mubr.msk.f32.mxu1 %vm73_vm2, %v1030_v18  ;;  %v1482_v18 = vld [vmem:[#allocation2 + $0x2a] sm:$0xff] }
 0x17c   :  { %6981 = vmatmul.mubr.msk.f32.gmra.mrb[14].mxu1 %vm73_vm2, %v1031_v20  ;;  %v1483_v20 = vld [vmem:[#allocation2 + $0x32] sm:$0xff] }
 0x17d   :  { %6983 = vmatprep.mubr.msk.f32.mxu1 %vm73_vm2, %v1032_v21  ;;  %v1484_v21 = vld [vmem:[#allocation2 + $0x3a] sm:$0xff] }
 0x180   :  { %6984 = vmatmul.mubr.msk.f32.gmra.mrb[16].mxu1 %vm73_vm2, %v1033_v22  ;;  %v1485_v22 = vld [vmem:[#allocation2 + $0x42] sm:$0xff] }
 0x181   :  { %6986 = vmatprep.mubr.msk.f32.mxu1 %vm73_vm2, %v1034_v23  ;;  %v1486_v23 = vld [vmem:[#allocation2 + $0x5a] sm:$0xff] }
 0x184   :  { %6987 = vmatmul.mubr.msk.f32.gmra.mrb[18].mxu1 %vm73_vm2, %v1035_v24  ;;  %v1487_v24 = vld [vmem:[#allocation2 + $0x62] sm:$0xff] }
 0x185   :  { %6989 = vmatprep.mubr.msk.f32.mxu1 %vm73_vm2, %v1036_v25  ;;  %v1488_v25 = vld [vmem:[#allocation2 + $0x6a] sm:$0xff] }
 0x188   :  { %6990 = vmatmul.mubr.msk.f32.gmra.mrb[20].mxu1 %vm73_vm2, %v1037_v27  ;;  %v1489_v27 = vld [vmem:[#allocation2 + $0x72] sm:$0xff] }
 0x189   :  { %6996 = vmatprep.mubr.msk.f32.mxu1 %vm73_vm2, %v1250_v34  ;;  %v1492_v34 = vld [vmem:[#allocation2 + $0x8a] sm:$0xff] }
 0x18c   :  { %6997 = vmatmul.mubr.msk.f32.vlgmr.msra.gmra.mrb[6].mxu1 %vm73_vm2, %v1251_v41  ;;  %v1706_v41 = vld [vmem:[#allocation2 + $0xb] sm:$0xff] }
 0x18d   :  { %7239 = vmatpush3.bf16.msra.mxu1 %v7236_v1  ;;  %6999 = vmatprep.mubr.msk.f32.mxu1 %vm73_vm2, %v1252_v44  ;;  %v1262_v1 = vld [vmem:[#allocation2 + $0x79] sm:$0xff] }
 0x18e   :  { %7241 = vmatprep.subr.bf16.mxu1 %v7240_v37  ;;  %v1707_v44 = vld [vmem:[#allocation2 + $0x13] sm:$0xff] }
 0x190   :  { %7000 = vmatmul.mubr.msk.f32.gmra.mrb[8].mxu1 %vm73_vm2, %v1253_v46  ;;  %v1708_v46 = vld [vmem:[#allocation2 + $0x1b] sm:$0xff] }
 0x191   :  { %7002 = vmatprep.mubr.msk.f32.mxu1 %vm73_vm2, %v1254_v49  ;;  %v1709_v49 = vld [vmem:[#allocation2 + $0x23] sm:$0xff] }
 0x194   :  { %7003 = vmatmul.mubr.msk.f32.gmra.mrb[10].mxu1 %vm73_vm2, %v1255_v53  ;;  %v1710_v53 = vld [vmem:[#allocation2 + $0x2b] sm:$0xff] }
 0x195   :  { %7005 = vmatprep.mubr.msk.f32.mxu1 %vm73_vm2, %v1256_v54  ;;  %v1711_v54 = vld [vmem:[#allocation2 + $0x33] sm:$0xff] }
 0x198   :  { %7006 = vmatmul.mubr.msk.f32.gmra.mrb[12].mxu1 %vm73_vm2, %v1257_v55  ;;  %v1712_v55 = vld [vmem:[#allocation2 + $0x3b] sm:$0xff] }
 0x199   :  { %7008 = vmatprep.mubr.msk.f32.mxu1 %vm73_vm2, %v1258_v58  ;;  %v1713_v58 = vld [vmem:[#allocation2 + $0x43] sm:$0xff] }
 0x19c   :  { %7009 = vmatmul.mubr.msk.f32.gmra.mrb[14].mxu1 %vm73_vm2, %v1259_v60  ;;  %v1714_v60 = vld [vmem:[#allocation2 + $0x5b] sm:$0xff] }
 0x19d   :  { %7011 = vmatprep.mubr.msk.f32.mxu1 %vm73_vm2, %v1260_v63  ;;  %v1715_v63 = vld [vmem:[#allocation2 + $0x63] sm:$0xff] }
 0x1a0   :  { %7012 = vmatmul.mubr.msk.f32.gmra.mrb[16].mxu1 %vm73_vm2, %v1261_v0  ;;  %v1716_v0 = vld [vmem:[#allocation2 + $0x6b] sm:$0xff] }
 0x1a1   :  { %7014 = vmatprep.mubr.msk.f32.mxu1 %vm73_vm2, %v1262_v1  ;;  %v1717_v1 = vld [vmem:[#allocation2 + $0x73] sm:$0xff] }
 0x1a4   :  { %7015 = vmatmul.mubr.msk.f32.gmra.mrb[18].mxu1 %vm73_vm2, %v1263_v3  ;;  %v1718_v3 = vld [vmem:[#allocation2 + $0x7b] sm:$0xff] }
 0x1a5   :  { %7017 = vmatprep.mubr.msk.f32.mxu1 %vm73_vm2, %v1264_v8  ;;  %v1719_v8 = vld [vmem:[#allocation2 + $0x83] sm:$0xff] }
 0x1a8   :  { %7018 = vmatmul.mubr.msk.f32.gmra.mrb[20].mxu1 %vm73_vm2, %v1265_v10  ;;  %v1720_v10 = vld [vmem:[#allocation2 + $0x8b] sm:$0xff] }
 0x1a9   :  { %7024 = vmatprep.mubr.msk.f32.mxu1 %vm73_vm2, %v1478_v11  ;;  %v1721_v11 = vld [vmem:[#allocation2 + $0x93] sm:$0xff] }
 0x1ac   :  { %7025 = vmatmul.mubr.msk.f32.vlgmr.msra.gmra.mrb[6].mxu1 %vm73_vm2, %v1479_v12  ;;  %v6481_v12 = vld [vmem:[%s8988_s5 + $0x10] sm:$0xff] }
 0x1ad   :  { %7243 = vmatpush3.bf16.msra.mxu1 %v7240_v37  ;;  %7027 = vmatprep.mubr.msk.f32.mxu1 %vm73_vm2, %v1480_v16  ;;  %v1493_v37 = vld [vmem:[#allocation2 + $0x92] sm:$0xff] }
 0x1ae   :  { %v6482_v16 = vld [vmem:[%s8988_s5 + $0x18] sm:$0xff] }
 0x1b0   :  { %7028 = vmatmul.mubr.msk.f32.gmra.mrb[8].mxu1 %vm73_vm2, %v1481_v17  ;;  %v7248_v17 = vpack.c.bf16 %v6482_v16, %v6481_v12 }
 0x1b1   :  { %7030 = vmatprep.mubr.msk.f32.mxu1 %vm73_vm2, %v1482_v18  ;;  %v8353_v18 = vld [vmem:[%s8987_s4] ss:$0 sm:$0xff] }
 0x1b2   :  { %7249 = vmatprep.subr.bf16.mxu0 %v7248_v17 }
 0x1b4   :  { %7031 = vmatmul.mubr.msk.f32.gmra.mrb[10].mxu1 %vm73_vm2, %v1483_v20 }
 0x1b5   :  { %7033 = vmatprep.mubr.msk.f32.mxu1 %vm73_vm2, %v1484_v21 }
 0x1b8   :  { %7034 = vmatmul.mubr.msk.f32.gmra.mrb[12].mxu1 %vm73_vm2, %v1485_v22 }
 0x1b9   :  { %7036 = vmatprep.mubr.msk.f32.mxu1 %vm73_vm2, %v1486_v23 }
 0x1bc   :  { %7037 = vmatmul.mubr.msk.f32.gmra.mrb[14].mxu1 %vm73_vm2, %v1487_v24 }
 0x1bd   :  { %7039 = vmatprep.mubr.msk.f32.mxu1 %vm73_vm2, %v1488_v25 }
 0x1c0   :  { %7040 = vmatmul.mubr.msk.f32.gmra.mrb[16].mxu1 %vm73_vm2, %v1489_v27 }
 0x1c1   :  { %7042 = vmatprep.mubr.msk.f32.mxu1 %vm73_vm2, %v1490_v29 }
 0x1c4   :  { %7043 = vmatmul.mubr.msk.f32.gmra.mrb[18].mxu1 %vm73_vm2, %v1491_v32 }
 0x1c5   :  { %7045 = vmatprep.mubr.msk.f32.mxu1 %vm73_vm2, %v1492_v34 }
 0x1c8   :  { %7046 = vmatmul.mubr.msk.f32.gmra.mrb[20].mxu1 %vm73_vm2, %v1493_v37 }
 0x1c9   :  { %7052 = vmatprep.mubr.msk.f32.mxu1 %vm73_vm2, %v1706_v41 }
 0x1cc   :  { %7053 = vmatmul.mubr.msk.f32.vlgmr.msra.gmra.mrb[6].mxu1 %vm73_vm2, %v1707_v44 }
 0x1cd   :  { %7055 = vmatprep.mubr.msk.f32.mxu1 %vm73_vm2, %v1708_v46 }
 0x1d0   :  { %7056 = vmatmul.mubr.msk.f32.gmra.mrb[8].mxu1 %vm73_vm2, %v1709_v49 }
 0x1d1   :  { %7058 = vmatprep.mubr.msk.f32.mxu1 %vm73_vm2, %v1710_v53 }
 0x1d4   :  { %7059 = vmatmul.mubr.msk.f32.gmra.mrb[10].mxu1 %vm73_vm2, %v1711_v54  ;;  %v6499_v54 = vld [vmem:[%s8988_s5 + $0x20] sm:$0xff] }
 0x1d5   :  { %7061 = vmatprep.mubr.msk.f32.mxu1 %vm73_vm2, %v1712_v55  ;;  %v6500_v55 = vld [vmem:[%s8988_s5 + $0x28] sm:$0xff] }
 0x1d8   :  { %7062 = vmatmul.mubr.msk.f32.gmra.mrb[12].mxu1 %vm73_vm2, %v1713_v58 }
 0x1d9   :  { %7064 = vmatprep.mubr.msk.f32.mxu1 %vm73_vm2, %v1714_v60 }
 0x1dc   :  { %7065 = vmatmul.mubr.msk.f32.gmra.mrb[14].mxu1 %vm73_vm2, %v1715_v63 }
 0x1dd   :  { %7067 = vmatprep.mubr.msk.f32.mxu1 %vm73_vm2, %v1716_v0 }
 0x1e0   :  { %7068 = vmatmul.mubr.msk.f32.gmra.mrb[16].mxu1 %vm73_vm2, %v1717_v1 }
 0x1e1   :  { %7070 = vmatprep.mubr.msk.f32.mxu1 %vm73_vm2, %v1718_v3 }
 0x1e4   :  { %7071 = vmatmul.mubr.msk.f32.gmra.mrb[18].mxu1 %vm73_vm2, %v1719_v8 }
 0x1e5   :  { %7073 = vmatprep.mubr.msk.f32.mxu1 %vm73_vm2, %v1720_v10  ;;  %v8373_v10 = vpack.c.bf16 %v6500_v55, %v6499_v54 }
 0x1e8   :  { %7074 = vmatmul.mubr.msk.f32.gmra.mrb[20].mxu1 %vm73_vm2, %v1721_v11 }
 0x29f   :  { %v7054_v20 = vpop.f32.mrb[6].mxu1 }
 0x2a0   :  { %v7554_v21 = vadd.f32 %v7054_v20, %v8353_v18  ;;  %v1839_v22 = vpop.f32.mrb[7].mxu1 }
 0x2a1   :  { %v7555_v23 = vadd.f32 %v8353_v18, %v1839_v22 }
 0x2a2   :  { %v1935_v24 = vmax.f32 %v7554_v21, 0.0 }
 0x2a3   :  { %v1934_v25 = vmax.f32 %v7555_v23, 0.0  ;;  %v7057_v27 = vpop.f32.mrb[8].mxu1 }
 0x2a4   :  { %1951 = vst.msk [vmem:[#allocation2 + $0x10] sm:$0xff] %vm73_vm2, %v1935_v24  ;;  %v7556_v29 = vadd.f32 %v7057_v27, %v8353_v18  ;;  %v1849_v32 = vpop.f32.mrb[9].mxu1 }
 0x2a5   :  { %1950 = vst.msk [vmem:[#allocation2 + $0x8] sm:$0xff] %vm73_vm2, %v1934_v25  ;;  %v7557_v34 = vadd.f32 %v8353_v18, %v1849_v32 }
 0x2a6   :  { %v1937_v37 = vmax.f32 %v7556_v29, 0.0 }
 0x2a7   :  { %v1936_v41 = vmax.f32 %v7557_v34, 0.0  ;;  %v7060_v44 = vpop.f32.mrb[10].mxu1 }
 0x2a8   :  { %1953 = vst.msk [vmem:[#allocation2 + $0x20] sm:$0xff] %vm73_vm2, %v1937_v37  ;;  %v7558_v46 = vadd.f32 %v7060_v44, %v8353_v18  ;;  %v1859_v49 = vpop.f32.mrb[11].mxu1 }
 0x2a9   :  { %1952 = vst.msk [vmem:[#allocation2 + $0x18] sm:$0xff] %vm73_vm2, %v1936_v41  ;;  %v7559_v53 = vadd.f32 %v8353_v18, %v1859_v49 }
 0x2aa   :  { %v1939_v58 = vmax.f32 %v7558_v46, 0.0 }
 0x2ab   :  { %v1938_v60 = vmax.f32 %v7559_v53, 0.0  ;;  %v7063_v63 = vpop.f32.mrb[12].mxu1 }
 0x2ac   :  { %1955 = vst.msk [vmem:[#allocation2 + $0x30] sm:$0xff] %vm73_vm2, %v1939_v58  ;;  %v7560_v0 = vadd.f32 %v7063_v63, %v8353_v18  ;;  %v1869_v1 = vpop.f32.mrb[13].mxu1  ;;  %v1967_v3 = vld [vmem:[#allocation2 + $0x6] sm:$0xff]  ;;  %v1968_v8 = vld [vmem:[#allocation2 + $0xe] sm:$0xff] }
 0x2ad   :  { %1954 = vst.msk [vmem:[#allocation2 + $0x28] sm:$0xff] %vm73_vm2, %v1938_v60  ;;  %v7561_v11 = vadd.f32 %v8353_v18, %v1869_v1  ;;  %7080 = vmatprep.mubr.msk.f32.mxu0 %vm73_vm2, %v1967_v3 }
 0x2ae   :  { %v1941_v12 = vmax.f32 %v7560_v0, 0.0  ;;  %7081 = vmatmul.mubr.msk.f32.vlgmr.msra.gmra.mrb[10].mxu0 %vm73_vm2, %v1968_v8 }
 0x2af   :  { %v1940_v16 = vmax.f32 %v7561_v11, 0.0  ;;  %7251 = vmatpush3.bf16.msra.mxu0 %v7248_v17  ;;  %v7066_v20 = vpop.f32.mrb[14].mxu1 }
 0x2b0   :  { %1957 = vst.msk [vmem:[#allocation2 + $0x40] sm:$0xff] %vm73_vm2, %v1941_v12  ;;  %v7562_v21 = vadd.f32 %v7066_v20, %v8353_v18  ;;  %v1879_v22 = vpop.f32.mrb[15].mxu1  ;;  %v1969_v23 = vld [vmem:[#allocation2 + $0x16] sm:$0xff]  ;;  %v1970_v24 = vld [vmem:[#allocation2 + $0x1e] sm:$0xff]  ;;  %7253 = vmatprep.subr.bf16.mxu0 %v8373_v10 }
 0x2b1   :  { %1956 = vst.msk [vmem:[#allocation2 + $0x38] sm:$0xff] %vm73_vm2, %v1940_v16  ;;  %v7563_v25 = vadd.f32 %v8353_v18, %v1879_v22  ;;  %7083 = vmatprep.mubr.msk.f32.mxu0 %vm73_vm2, %v1969_v23 }
 0x2b2   :  { %v1943_v27 = vmax.f32 %v7562_v21, 0.0  ;;  %7084 = vmatmul.mubr.msk.f32.gmra.mrb[12].mxu0 %vm73_vm2, %v1970_v24 }
 0x2b3   :  { %v1942_v17 = vmax.f32 %v7563_v25, 0.0  ;;  %v7069_v29 = vpop.f32.mrb[16].mxu1 }
 0x2b4   :  { %1959 = vst.msk [vmem:[#allocation2 + $0x60] sm:$0xff] %vm73_vm2, %v1943_v27  ;;  %v7564_v32 = vadd.f32 %v7069_v29, %v8353_v18  ;;  %v1889_v34 = vpop.f32.mrb[17].mxu1  ;;  %v1971_v37 = vld [vmem:[#allocation2 + $0x26] sm:$0xff]  ;;  %v1972_v41 = vld [vmem:[#allocation2 + $0x2e] sm:$0xff] }
 0x2b5   :  { %1958 = vst.msk [vmem:[#allocation2 + $0x58] sm:$0xff] %vm73_vm2, %v1942_v17  ;;  %v7565_v44 = vadd.f32 %v8353_v18, %v1889_v34  ;;  %7086 = vmatprep.mubr.msk.f32.mxu0 %vm73_vm2, %v1971_v37  ;;  %v6517_v29 = vld [vmem:[%s8988_s5 + $0x30] sm:$0xff]  ;;  %v2200_v34 = vld [vmem:[#allocation2 + $0x7] sm:$0xff] }
 0x2b6   :  { %v1945_v46 = vmax.f32 %v7564_v32, 0.0  ;;  %7087 = vmatmul.mubr.msk.f32.gmra.mrb[14].mxu0 %vm73_vm2, %v1972_v41  ;;  %v6518_v32 = vld [vmem:[%s8988_s5 + $0x38] sm:$0xff]  ;;  %v2201_v41 = vld [vmem:[#allocation2 + $0xf] sm:$0xff] }
 0x2b7   :  { %v1944_v49 = vmax.f32 %v7565_v44, 0.0  ;;  %v7072_v53 = vpop.f32.mrb[18].mxu1  ;;  %v7256_v37 = vpack.c.bf16 %v6518_v32, %v6517_v29  ;;  %v2202_v44 = vld [vmem:[#allocation2 + $0x17] sm:$0xff] }
 0x2b8   :  { %1961 = vst.msk [vmem:[#allocation2 + $0x70] sm:$0xff] %vm73_vm2, %v1945_v46  ;;  %v7566_v54 = vadd.f32 %v7072_v53, %v8353_v18  ;;  %v1899_v55 = vpop.f32.mrb[19].mxu1  ;;  %v1973_v58 = vld [vmem:[#allocation2 + $0x36] sm:$0xff]  ;;  %v1974_v60 = vld [vmem:[#allocation2 + $0x3e] sm:$0xff] }
 0x2b9   :  { %1960 = vst.msk [vmem:[#allocation2 + $0x68] sm:$0xff] %vm73_vm2, %v1944_v49  ;;  %v7567_v63 = vadd.f32 %v8353_v18, %v1899_v55  ;;  %7089 = vmatprep.mubr.msk.f32.mxu0 %vm73_vm2, %v1973_v58  ;;  %v2203_v46 = vld [vmem:[#allocation2 + $0x1f] sm:$0xff]  ;;  %v2204_v49 = vld [vmem:[#allocation2 + $0x27] sm:$0xff]  ;;  %v2205_v53 = vld [vmem:[#allocation2 + $0x2f] sm:$0xff] }
 0x2ba   :  { %v1947_v0 = vmax.f32 %v7566_v54, 0.0  ;;  %7090 = vmatmul.mubr.msk.f32.gmra.mrb[16].mxu0 %vm73_vm2, %v1974_v60  ;;  %v2206_v54 = vld [vmem:[#allocation2 + $0x37] sm:$0xff]  ;;  %v2207_v55 = vld [vmem:[#allocation2 + $0x3f] sm:$0xff] }
 0x2bb   :  { %v1946_v1 = vmax.f32 %v7567_v63, 0.0  ;;  %v7075_v3 = vpop.f32.mrb[20].mxu1  ;;  %v2437_v29 = vld [vmem:[#allocation2 + $0x60] sm:$0xff] }
 0x2bc   :  { %1963 = vst.msk [vmem:[#allocation2 + $0x80] sm:$0xff] %vm73_vm2, %v1947_v0  ;;  %v7568_v8 = vadd.f32 %v7075_v3, %v8353_v18  ;;  %v1909_v11 = vpop.f32.mrb[21].mxu1  ;;  %v1975_v12 = vld [vmem:[#allocation2 + $0x56] sm:$0xff]  ;;  %v1976_v16 = vld [vmem:[#allocation2 + $0x5e] sm:$0xff] }
 0x2bd   :  { %1962 = vst.msk [vmem:[#allocation2 + $0x78] sm:$0xff] %vm73_vm2, %v1946_v1  ;;  %v7569_v20 = vadd.f32 %v8353_v18, %v1909_v11  ;;  %7092 = vmatprep.mubr.msk.f32.mxu0 %vm73_vm2, %v1975_v12  ;;  %v2208_v58 = vld [vmem:[#allocation2 + $0x57] sm:$0xff]  ;;  %v6535_v11 = vld [vmem:[%s8988_s5 + $0x40] sm:$0xff]  ;;  %v6536_v12 = vld [vmem:[%s8988_s5 + $0x48] sm:$0xff] }
 0x2be   :  { %v1949_v21 = vmax.f32 %v7568_v8, 0.0  ;;  %7093 = vmatmul.mubr.msk.f32.gmra.mrb[18].mxu0 %vm73_vm2, %v1976_v16  ;;  %v2428_v16 = vld [vmem:[#allocation2 + $0x8] sm:$0xff] }
 0x2bf   :  { %v1948_v22 = vmax.f32 %v7569_v20, 0.0  ;;  %v7260_v20 = vpack.c.bf16 %v6536_v12, %v6535_v11 }
 0x2c0   :  { %1965 = vst.msk [vmem:[#allocation2 + $0x90] sm:$0xff] %vm73_vm2, %v1949_v21  ;;  %v1977_v23 = vld [vmem:[#allocation2 + $0x66] sm:$0xff]  ;;  %v1978_v24 = vld [vmem:[#allocation2 + $0x6e] sm:$0xff] }
 0x2c1   :  { %1964 = vst.msk [vmem:[#allocation2 + $0x88] sm:$0xff] %vm73_vm2, %v1948_v22  ;;  %7095 = vmatprep.mubr.msk.f32.mxu0 %vm73_vm2, %v1977_v23  ;;  %v2210_v60 = vld [vmem:[#allocation2 + $0x67] sm:$0xff]  ;;  %v2211_v63 = vld [vmem:[#allocation2 + $0x6f] sm:$0xff]  ;;  %v2430_v22 = vld [vmem:[#allocation2 + $0x18] sm:$0xff] }
 0x2c2   :  { %7096 = vmatmul.mubr.msk.f32.gmra.mrb[20].mxu0 %vm73_vm2, %v1978_v24  ;;  %v2429_v21 = vld [vmem:[#allocation2 + $0x10] sm:$0xff]  ;;  %v2431_v23 = vld [vmem:[#allocation2 + $0x20] sm:$0xff]  ;;  %v2432_v24 = vld [vmem:[#allocation2 + $0x28] sm:$0xff] }
 0x2c3   :  { %v2438_v32 = vld [vmem:[#allocation2 + $0x68] sm:$0xff] }
 0x2c4   :  { %v1979_v25 = vld [vmem:[#allocation2 + $0x76] sm:$0xff]  ;;  %v1980_v27 = vld [vmem:[#allocation2 + $0x7e] sm:$0xff] }
 0x2c5   :  { %7098 = vmatprep.mubr.msk.f32.mxu0 %vm73_vm2, %v1979_v25  ;;  %v2212_v0 = vld [vmem:[#allocation2 + $0x77] sm:$0xff]  ;;  %v2213_v1 = vld [vmem:[#allocation2 + $0x7f] sm:$0xff] }
 0x2c6   :  { %7099 = vmatmul.mubr.msk.f32.gmra.mrb[22].mxu0 %vm73_vm2, %v1980_v27  ;;  %v2433_v25 = vld [vmem:[#allocation2 + $0x30] sm:$0xff]  ;;  %v2434_v27 = vld [vmem:[#allocation2 + $0x38] sm:$0xff] }
 0x2c7   :  { %v2668_v11 = vld [vmem:[#allocation2 + $0x79] sm:$0xff] }
 0x2c8   :  { %v1981_v18 = vld [vmem:[#allocation2 + $0x86] sm:$0xff]  ;;  %v1982_v17 = vld [vmem:[#allocation2 + $0x8e] sm:$0xff] }
 0x2c9   :  { %7101 = vmatprep.mubr.msk.f32.mxu0 %vm73_vm2, %v1981_v18  ;;  %v2214_v3 = vld [vmem:[#allocation2 + $0x87] sm:$0xff]  ;;  %v2215_v8 = vld [vmem:[#allocation2 + $0x8f] sm:$0xff] }
 0x2ca   :  { %7102 = vmatmul.mubr.msk.f32.gmra.mrb[24].mxu0 %vm73_vm2, %v1982_v17  ;;  %v2435_v18 = vld [vmem:[#allocation2 + $0x40] sm:$0xff]  ;;  %v2436_v17 = vld [vmem:[#allocation2 + $0x58] sm:$0xff] }
 0x2cb   :  { %7108 = vmatprep.mubr.msk.f32.mxu0 %vm73_vm2, %v2200_v34  ;;  %v2439_v34 = vld [vmem:[#allocation2 + $0x70] sm:$0xff]  ;;  %v2669_v12 = vld [vmem:[#allocation2 + $0x81] sm:$0xff] }
 0x2ce   :  { %7109 = vmatmul.mubr.msk.f32.vlgmr.msra.gmra.mrb[10].mxu0 %vm73_vm2, %v2201_v41  ;;  %v2441_v41 = vld [vmem:[#allocation2 + $0x80] sm:$0xff] }
 0x2cf   :  { %7255 = vmatpush3.bf16.msra.mxu0 %v8373_v10  ;;  %7111 = vmatprep.mubr.msk.f32.mxu0 %vm73_vm2, %v2202_v44  ;;  %v2209_v10 = vld [vmem:[#allocation2 + $0x5f] sm:$0xff]  ;;  %v2442_v44 = vld [vmem:[#allocation2 + $0x88] sm:$0xff] }
 0x2d0   :  { %7257 = vmatprep.subr.bf16.mxu0 %v7256_v37 }
 0x2d2   :  { %7112 = vmatmul.mubr.msk.f32.gmra.mrb[12].mxu0 %vm73_vm2, %v2203_v46  ;;  %v2443_v46 = vld [vmem:[#allocation2 + $0x90] sm:$0xff] }
 0x2d3   :  { %7114 = vmatprep.mubr.msk.f32.mxu0 %vm73_vm2, %v2204_v49  ;;  %v2656_v49 = vld [vmem:[#allocation2 + $0x9] sm:$0xff] }
 0x2d6   :  { %7115 = vmatmul.mubr.msk.f32.gmra.mrb[14].mxu0 %vm73_vm2, %v2205_v53  ;;  %v2657_v53 = vld [vmem:[#allocation2 + $0x11] sm:$0xff] }
 0x2d7   :  { %7117 = vmatprep.mubr.msk.f32.mxu0 %vm73_vm2, %v2206_v54  ;;  %v2658_v54 = vld [vmem:[#allocation2 + $0x19] sm:$0xff] }
 0x2da   :  { %7118 = vmatmul.mubr.msk.f32.gmra.mrb[16].mxu0 %vm73_vm2, %v2207_v55  ;;  %v2659_v55 = vld [vmem:[#allocation2 + $0x21] sm:$0xff] }
 0x2db   :  { %7120 = vmatprep.mubr.msk.f32.mxu0 %vm73_vm2, %v2208_v58  ;;  %v2660_v58 = vld [vmem:[#allocation2 + $0x29] sm:$0xff] }
 0x2de   :  { %7121 = vmatmul.mubr.msk.f32.gmra.mrb[18].mxu0 %vm73_vm2, %v2209_v10  ;;  %v2661_v10 = vld [vmem:[#allocation2 + $0x31] sm:$0xff] }
 0x2df   :  { %7123 = vmatprep.mubr.msk.f32.mxu0 %vm73_vm2, %v2210_v60  ;;  %v2662_v60 = vld [vmem:[#allocation2 + $0x39] sm:$0xff] }
 0x2e2   :  { %7124 = vmatmul.mubr.msk.f32.gmra.mrb[20].mxu0 %vm73_vm2, %v2211_v63  ;;  %v2663_v63 = vld [vmem:[#allocation2 + $0x41] sm:$0xff] }
 0x2e3   :  { %7126 = vmatprep.mubr.msk.f32.mxu0 %vm73_vm2, %v2212_v0  ;;  %v2664_v0 = vld [vmem:[#allocation2 + $0x59] sm:$0xff] }
 0x2e6   :  { %7127 = vmatmul.mubr.msk.f32.gmra.mrb[22].mxu0 %vm73_vm2, %v2213_v1  ;;  %v2665_v1 = vld [vmem:[#allocation2 + $0x61] sm:$0xff] }
 0x2e7   :  { %7129 = vmatprep.mubr.msk.f32.mxu0 %vm73_vm2, %v2214_v3  ;;  %v2666_v3 = vld [vmem:[#allocation2 + $0x69] sm:$0xff] }
 0x2ea   :  { %7130 = vmatmul.mubr.msk.f32.gmra.mrb[24].mxu0 %vm73_vm2, %v2215_v8  ;;  %v2667_v8 = vld [vmem:[#allocation2 + $0x71] sm:$0xff] }
 0x2eb   :  { %7136 = vmatprep.mubr.msk.f32.mxu0 %vm73_vm2, %v2428_v16  ;;  %v2670_v16 = vld [vmem:[#allocation2 + $0x89] sm:$0xff] }
 0x2ee   :  { %7137 = vmatmul.mubr.msk.f32.vlgmr.msra.gmra.mrb[10].mxu0 %vm73_vm2, %v2429_v21  ;;  %v2884_v21 = vld [vmem:[#allocation2 + $0xa] sm:$0xff] }
 0x2ef   :  { %7259 = vmatpush3.bf16.msra.mxu0 %v7256_v37  ;;  %7139 = vmatprep.mubr.msk.f32.mxu0 %vm73_vm2, %v2430_v22  ;;  %v2440_v37 = vld [vmem:[#allocation2 + $0x78] sm:$0xff] }
 0x2f0   :  { %7261 = vmatprep.subr.bf16.mxu0 %v7260_v20  ;;  %v2885_v22 = vld [vmem:[#allocation2 + $0x12] sm:$0xff] }
 0x2f2   :  { %7140 = vmatmul.mubr.msk.f32.gmra.mrb[12].mxu0 %vm73_vm2, %v2431_v23  ;;  %v2886_v23 = vld [vmem:[#allocation2 + $0x1a] sm:$0xff] }
 0x2f3   :  { %7142 = vmatprep.mubr.msk.f32.mxu0 %vm73_vm2, %v2432_v24  ;;  %v2887_v24 = vld [vmem:[#allocation2 + $0x22] sm:$0xff] }
 0x2f6   :  { %7143 = vmatmul.mubr.msk.f32.gmra.mrb[14].mxu0 %vm73_vm2, %v2433_v25  ;;  %v2888_v25 = vld [vmem:[#allocation2 + $0x2a] sm:$0xff] }
 0x2f7   :  { %7145 = vmatprep.mubr.msk.f32.mxu0 %vm73_vm2, %v2434_v27  ;;  %v2889_v27 = vld [vmem:[#allocation2 + $0x32] sm:$0xff] }
 0x2fa   :  { %7146 = vmatmul.mubr.msk.f32.gmra.mrb[16].mxu0 %vm73_vm2, %v2435_v18  ;;  %v2890_v18 = vld [vmem:[#allocation2 + $0x3a] sm:$0xff] }
 0x2fb   :  { %7148 = vmatprep.mubr.msk.f32.mxu0 %vm73_vm2, %v2436_v17  ;;  %v2891_v17 = vld [vmem:[#allocation2 + $0x42] sm:$0xff] }
 0x2fe   :  { %7149 = vmatmul.mubr.msk.f32.gmra.mrb[18].mxu0 %vm73_vm2, %v2437_v29  ;;  %v2892_v29 = vld [vmem:[#allocation2 + $0x5a] sm:$0xff] }
 0x2ff   :  { %7151 = vmatprep.mubr.msk.f32.mxu0 %vm73_vm2, %v2438_v32  ;;  %v2893_v32 = vld [vmem:[#allocation2 + $0x62] sm:$0xff] }
 0x302   :  { %7152 = vmatmul.mubr.msk.f32.gmra.mrb[20].mxu0 %vm73_vm2, %v2439_v34  ;;  %v2894_v34 = vld [vmem:[#allocation2 + $0x6a] sm:$0xff] }
 0x303   :  { %7154 = vmatprep.mubr.msk.f32.mxu0 %vm73_vm2, %v2440_v37  ;;  %v2895_v37 = vld [vmem:[#allocation2 + $0x72] sm:$0xff] }
 0x306   :  { %7155 = vmatmul.mubr.msk.f32.gmra.mrb[22].mxu0 %vm73_vm2, %v2441_v41  ;;  %v2896_v41 = vld [vmem:[#allocation2 + $0x7a] sm:$0xff] }
 0x307   :  { %7157 = vmatprep.mubr.msk.f32.mxu0 %vm73_vm2, %v2442_v44  ;;  %v2897_v44 = vld [vmem:[#allocation2 + $0x82] sm:$0xff] }
 0x30a   :  { %7158 = vmatmul.mubr.msk.f32.gmra.mrb[24].mxu0 %vm73_vm2, %v2443_v46  ;;  %v2898_v46 = vld [vmem:[#allocation2 + $0x8a] sm:$0xff] }
 0x30b   :  { %7164 = vmatprep.mubr.msk.f32.mxu0 %vm73_vm2, %v2656_v49  ;;  %v2899_v49 = vld [vmem:[#allocation2 + $0x92] sm:$0xff] }
 0x30e   :  { %7165 = vmatmul.mubr.msk.f32.vlgmr.msra.gmra.mrb[10].mxu0 %vm73_vm2, %v2657_v53  ;;  %v3162_v53 = vld [vmem:[#allocation3 + $0x48] sm:$0xff] }
 0x30f   :  { %7263 = vmatpush3.bf16.msra.mxu0 %v7260_v20  ;;  %7167 = vmatprep.mubr.msk.f32.mxu0 %vm73_vm2, %v2658_v54  ;;  %v2671_v20 = vld [vmem:[#allocation2 + $0x91] sm:$0xff]  ;;  %v3166_v54 = vld [vmem:[#allocation3 + $0x68] sm:$0xff] }
 0x312   :  { %7168 = vmatmul.mubr.msk.f32.gmra.mrb[12].mxu0 %vm73_vm2, %v2659_v55  ;;  %v3161_v55 = vld [vmem:[#allocation3 + $0x40] sm:$0xff] }
 0x313   :  { %7170 = vmatprep.mubr.msk.f32.mxu0 %vm73_vm2, %v2660_v58  ;;  %v7264_v58 = vpack.c.bf16 %v3166_v54, %v3162_v53  ;;  %v8531_v54 = vld [vmem:[#allocation3 + $0xa8] sm:$0xff] }
 0x315   :  { %7265 = vmatprep.subr.bf16.mxu0 %v7264_v58  ;;  %v8535_v58 = vld [vmem:[#allocation3 + $0xa0] sm:$0xff] }
 0x316   :  { %7171 = vmatmul.mubr.msk.f32.gmra.mrb[14].mxu0 %vm73_vm2, %v2661_v10  ;;  %v3165_v10 = vld [vmem:[#allocation3 + $0x60] sm:$0xff] }
 0x317   :  { %7173 = vmatprep.mubr.msk.f32.mxu0 %vm73_vm2, %v2662_v60  ;;  %v7266_v60 = vpack.c.bf16 %v3165_v10, %v3161_v55  ;;  %v8533_v55 = vld [vmem:[#allocation3 + $0x80] sm:$0xff] }
 0x31a   :  { %7174 = vmatmul.mubr.msk.f32.gmra.mrb[16].mxu0 %vm73_vm2, %v2663_v63  ;;  %v3164_v63 = vld [vmem:[#allocation3 + $0x58] sm:$0xff] }
 0x31b   :  { %7176 = vmatprep.mubr.msk.f32.mxu0 %vm73_vm2, %v2664_v0  ;;  %v3168_v0 = vld [vmem:[#allocation3 + $0x78] sm:$0xff] }
 0x31e   :  { %7177 = vmatmul.mubr.msk.f32.gmra.mrb[18].mxu0 %vm73_vm2, %v2665_v1  ;;  %v7268_v1 = vpack.c.bf16 %v3168_v0, %v3164_v63 }
 0x31f   :  { %7179 = vmatprep.mubr.msk.f32.mxu0 %vm73_vm2, %v2666_v3  ;;  %v8493_v3 = vld [vmem:[%s8989_s6] ss:$0 sm:$0xff] }
 0x322   :  { %7180 = vmatmul.mubr.msk.f32.gmra.mrb[20].mxu0 %vm73_vm2, %v2667_v8 }
 0x323   :  { %7182 = vmatprep.mubr.msk.f32.mxu0 %vm73_vm2, %v2668_v11 }
 0x326   :  { %7183 = vmatmul.mubr.msk.f32.gmra.mrb[22].mxu0 %vm73_vm2, %v2669_v12 }
 0x327   :  { %7185 = vmatprep.mubr.msk.f32.mxu0 %vm73_vm2, %v2670_v16 }
 0x32a   :  { %7186 = vmatmul.mubr.msk.f32.gmra.mrb[24].mxu0 %vm73_vm2, %v2671_v20  ;;  %v8497_v20 = vld [vmem:[#allocation3 + $0x50] sm:$0xff] }
 0x32b   :  { %7192 = vmatprep.mubr.msk.f32.mxu0 %vm73_vm2, %v2884_v21  ;;  %v8499_v21 = vld [vmem:[#allocation3 + $0x70] sm:$0xff] }
 0x32e   :  { %7193 = vmatmul.mubr.msk.f32.vlgmr.msra.gmra.mrb[10].mxu0 %vm73_vm2, %v2885_v22  ;;  %v8501_v22 = vld [vmem:[#allocation3 + $0x8] sm:$0xff] }
 0x32f   :  { %7195 = vmatprep.mubr.msk.f32.mxu0 %vm73_vm2, %v2886_v23  ;;  %7267 = vmatpush1.bf16.msra.mxu0 %v7266_v60 }
 0x330   :  { %7269 = vmatprep.subr.bf16.mxu0 %v7268_v1 }
 0x332   :  { %7196 = vmatmul.mubr.msk.f32.gmra.mrb[12].mxu0 %vm73_vm2, %v2887_v24  ;;  %v8505_v24 = vld [vmem:[#allocation3 + $0x28] sm:$0xff] }
 0x333   :  { %7198 = vmatprep.mubr.msk.f32.mxu0 %vm73_vm2, %v2888_v25  ;;  %v8507_v25 = vld [vmem:[#allocation3] sm:$0xff] }
 0x336   :  { %7199 = vmatmul.mubr.msk.f32.gmra.mrb[14].mxu0 %vm73_vm2, %v2889_v27  ;;  %v8509_v27 = vld [vmem:[#allocation3 + $0x20] sm:$0xff] }
 0x337   :  { %7201 = vmatprep.mubr.msk.f32.mxu0 %vm73_vm2, %v2890_v18 }
 0x33a   :  { %7202 = vmatmul.mubr.msk.f32.gmra.mrb[16].mxu0 %vm73_vm2, %v2891_v17 }
 0x33b   :  { %7204 = vmatprep.mubr.msk.f32.mxu0 %vm73_vm2, %v2892_v29  ;;  %v8513_v29 = vld [vmem:[#allocation3 + $0x18] sm:$0xff] }
 0x33e   :  { %7205 = vmatmul.mubr.msk.f32.gmra.mrb[18].mxu0 %vm73_vm2, %v2893_v32  ;;  %v8515_v32 = vld [vmem:[#allocation3 + $0x38] sm:$0xff] }
 0x33f   :  { %7207 = vmatprep.mubr.msk.f32.mxu0 %vm73_vm2, %v2894_v34 }
 0x342   :  { %7208 = vmatmul.mubr.msk.f32.gmra.mrb[20].mxu0 %vm73_vm2, %v2895_v37 }
 0x343   :  { %7210 = vmatprep.mubr.msk.f32.mxu0 %vm73_vm2, %v2896_v41 }
 0x346   :  { %7211 = vmatmul.mubr.msk.f32.gmra.mrb[22].mxu0 %vm73_vm2, %v2897_v44  ;;  %v8522_v44 = vld [vmem:[#allocation3 + $0x30] sm:$0xff] }
 0x347   :  { %7213 = vmatprep.mubr.msk.f32.mxu0 %vm73_vm2, %v2898_v46  ;;  %v8524_v46 = vld [vmem:[#allocation3 + $0x88] sm:$0xff] }
 0x34a   :  { %7214 = vmatmul.mubr.msk.f32.gmra.mrb[24].mxu0 %vm73_vm2, %v2899_v49 }
 0x34b   :  { %3241 = vmatprep.mubr.f32.mxu0 %v8997_v19 }
 0x401   :  { %v7194_v8 = vpop.f32.mrb[10].mxu0 }
 0x402   :  { %v7570_v11 = vadd.f32 %v7194_v8, %v8493_v3  ;;  %v3017_v12 = vpop.f32.mrb[11].mxu0 }
 0x403   :  { %v7571_v16 = vadd.f32 %v8493_v3, %v3017_v12 }
 0x404   :  { %v3113_v23 = vadd.f32 %v7570_v11, %v301_v30  ;;  %v8520_v30 = vld [vmem:[#allocation3 + $0x10] sm:$0xff] }
 0x405   :  { %v3112_v18 = vadd.f32 %v7571_v16, %v300_v33  ;;  %v7197_v17 = vpop.f32.mrb[12].mxu0 }
 0x406   :  { %v3467_v34 = vrot.slane %v3113_v23, 1  ;;  %v7572_v37 = vadd.f32 %v7197_v17, %v8493_v3  ;;  %v3027_v41 = vpop.f32.mrb[13].mxu0  ;;  %v3473_v60 = vrot.slane %v3113_v23, 2  ;;  %v8549_v17 = vld [vmem:[#allocation3 + $0x98] sm:$0xff] }
 0x407   :  { %v3130_v28 = vrot.slane %v3112_v18, 1  ;;  %v7573_v33 = vadd.f32 %v8493_v3, %v3027_v41  ;;  %v3136_v8 = vrot.slane %v3112_v18, 2 }
 0x408   :  { %v3471_v10 = vadd.f32 %v3467_v34, %v3113_v23  ;;  %v8539_v63 = vadd.f32 %v7572_v37, %v303_v42  ;;  %v8551_v34 = vld [vmem:[#allocation3 + $0xb8] sm:$0xff] }
 0x409   :  { %v3134_v1 = vadd.f32 %v3130_v28, %v3112_v18  ;;  %v8545_v11 = vadd.f32 %v7573_v33, %v302_v45  ;;  %v7200_v12 = vpop.f32.mrb[14].mxu0  ;;  %v3479_v45 = vrot.slane %v3113_v23, 3  ;;  %v3142_v33 = vrot.slane %v3112_v18, 3 }
 0x40a   :  { %v3477_v36 = vadd.f32 %v3473_v60, %v3471_v10  ;;  %v4157_v42 = vrot.slane %v8539_v63, 1  ;;  %v3037_v37 = vpop.f32.mrb[15].mxu0  ;;  %v7574_v53 = vadd.f32 %v7200_v12, %v8493_v3  ;;  %v4163_v41 = vrot.slane %v8539_v63, 2 }
 0x40b   :  { %v3140_v28 = vadd.f32 %v3136_v8, %v3134_v1  ;;  %v3812_v0 = vrot.slane %v8545_v11, 1  ;;  %v7575_v10 = vadd.f32 %v8493_v3, %v3037_v37  ;;  %v3818_v18 = vrot.slane %v8545_v11, 2 }
 0x40c   :  { %v4161_v16 = vadd.f32 %v4157_v42, %v8539_v63  ;;  %v3483_v23 = vadd.f32 %v3479_v45, %v3477_v36  ;;  %v8569_v1 = vadd.f32 %v7574_v53, %v305_v56 }
 0x40d   :  { %v3146_v49 = vadd.f32 %v3142_v33, %v3140_v28  ;;  %v3816_v19 = vadd.f32 %v3812_v0, %v8545_v11  ;;  %v7203_v39 = vpop.f32.mrb[16].mxu0  ;;  %v8573_v8 = vadd.f32 %v7575_v10, %v304_v59  ;;  %v4169_v28 = vrot.slane %v8539_v63, 3 }
 0x40e   :  { %v7576_v12 = vadd.f32 %v7203_v39, %v8493_v3  ;;  %v3047_v42 = vpop.f32.mrb[17].mxu0  ;;  %v3824_v0 = vrot.slane %v8545_v11, 3  ;;  %v4167_v45 = vadd.f32 %v4163_v41, %v4161_v16  ;;  %v4847_v48 = vrot.slane %v8569_v1, 1 }
 0x40f   :  { %v8576_v37 = vmul.f32 0.25, %v3146_v49  ;;  %v7577_v36 = vadd.f32 %v8493_v3, %v3047_v42  ;;  %v3822_v33 = vadd.f32 %v3818_v18, %v3816_v19  ;;  %v4502_v56 = vrot.slane %v8573_v8, 1 }
 0x410   :  { %v4853_v51 = vrot.slane %v8569_v1, 2  ;;  %v8587_v49 = vadd.f32 %v7576_v12, %v307_v6  ;;  %v8589_v63 = vmul.f32 0.25, %v3483_v23  ;;  %v4851_v11 = vadd.f32 %v4847_v48, %v8569_v1 }
 0x411   :  { %v7206_v53 = vpop.f32.mrb[18].mxu0  ;;  %v4506_v16 = vadd.f32 %v4502_v56, %v8573_v8  ;;  %v8595_v19 = vadd.f32 %v7577_v36, %v306_v7  ;;  %v8999_v10 = vmax.f32 %v8576_v37, 0.0  ;;  %v4508_v62 = vrot.slane %v8573_v8, 2 }
 0x412   :  { %v7578_v41 = vadd.f32 %v7206_v53, %v8493_v3  ;;  %v3057_v39 = vpop.f32.mrb[19].mxu0  ;;  %v5537_v6 = vrot.slane %v8587_v49, 1  ;;  %v8602_v18 = vadd.f32 %v4853_v51, %v4851_v11  ;;  %v5543_v42 = vrot.slane %v8587_v49, 2 }
 0x413   :  { %v7579_v23 = vadd.f32 %v8493_v3, %v3057_v39  ;;  %v5192_v4 = vrot.slane %v8595_v19, 1  ;;  %v8607_v7 = vadd.f32 %v4508_v62, %v4506_v16  ;;  %v5198_v11 = vrot.slane %v8595_v19, 2 }
 0x414   :  { %v5541_v36 = vadd.f32 %v5537_v6, %v8587_v49  ;;  %v3121_v48 = vadd.f32 %v7578_v41, %v309_v14  ;;  %v8622_v9 = vrot.slane %v8999_v10, 4  ;;  %v3487_v13 = vmax.f32 %v8589_v63, 0.0 }
 0x415   :  { %v3120_v56 = vadd.f32 %v7579_v23, %v308_v15  ;;  %v7209_v53 = vpop.f32.mrb[20].mxu0  ;;  %v5196_v51 = vadd.f32 %v5192_v4, %v8595_v19  ;;  %v3828_v10 = vadd.f32 %v3824_v0, %v3822_v33  ;;  %v4173_v5 = vadd.f32 %v4169_v28, %v4167_v45 }
 0x416   :  { %v7580_v60 = vadd.f32 %v7209_v53, %v8493_v3  ;;  %v3067_v59 = vpop.f32.mrb[21].mxu0  ;;  %v8618_v16 = vadd.f32 %v5543_v42, %v5541_v36  ;;  %v3468_v62 = vrot.slane %v3121_v48, 1  ;;  %v3474_v15 = vrot.slane %v3121_v48, 2 }
 0x417   :  { %v8625_v14 = vadd.f32 %v5198_v11, %v5196_v51  ;;  %v3480_v41 = vrot.slane %v3121_v48, 3  ;;  %v3131_v6 = vrot.slane %v3120_v56, 1  ;;  %v3137_v4 = vrot.slane %v3120_v56, 2 }
 0x418   :  { %v3472_v23 = vadd.f32 %v3468_v62, %v3121_v48  ;;  %v3123_v53 = vadd.f32 %v7580_v60, %v311_v38  ;;  %v7581_v42 = vadd.f32 %v8493_v3, %v3067_v59  ;;  %v3143_v51 = vrot.slane %v3120_v56, 3 }
 0x419   :  { %v7212_v36 = vpop.f32.mrb[22].mxu0  ;;  %v3135_v39 = vadd.f32 %v3131_v6, %v3120_v56  ;;  %v8633_v52 = vrot.slane %v3487_v13, 4  ;;  %v8640_v6 = vmul.f32 0.25, %v3828_v10 }
 0x41a   :  { %v7582_v12 = vadd.f32 %v7212_v36, %v8493_v3  ;;  %v3077_v26 = vpop.f32.mrb[23].mxu0  ;;  %v3478_v2 = vadd.f32 %v3474_v15, %v3472_v23  ;;  %v4158_v11 = vrot.slane %v3123_v53, 1  ;;  %v3122_v31 = vadd.f32 %v7581_v42, %v310_v40 }
 0x41b   :  { %v3141_v48 = vadd.f32 %v3137_v4, %v3135_v39  ;;  %v7583_v60 = vadd.f32 %v8493_v3, %v3077_v26  ;;  %v4164_v28 = vrot.slane %v3123_v53, 2  ;;  %v4170_v45 = vrot.slane %v3123_v53, 3 }
 0x41c   :  { %v3125_v38 = vadd.f32 %v7582_v12, %v313_v50  ;;  %v3484_v59 = vadd.f32 %v3480_v41, %v3478_v2  ;;  %v4162_v0 = vadd.f32 %v4158_v11, %v3123_v53  ;;  %v3813_v62 = vrot.slane %v3122_v31, 1 }
 0x41d   :  { %v7215_v33 = vpop.f32.mrb[24].mxu0  ;;  %v3147_v56 = vadd.f32 %v3143_v51, %v3141_v48  ;;  %v8642_v39 = vmul.f32 0.25, %v4173_v5  ;;  %v3819_v40 = vrot.slane %v3122_v31, 2  ;;  %v3825_v23 = vrot.slane %v3122_v31, 3 }
 0x41e   :  { %v3087_v15 = vpop.f32.mrb[25].mxu0  ;;  %v4168_v35 = vadd.f32 %v4164_v28, %v4162_v0  ;;  %v4848_v43 = vrot.slane %v3125_v38, 1  ;;  %v3817_v12 = vadd.f32 %v3813_v62, %v3122_v31  ;;  %v9003_v26 = vmax.f32 %v8124_v47, 0.0 }
 0x41f   :  { %v3149_v50 = vmul.f32 0.25, %v3147_v56  ;;  %v7584_v41 = vadd.f32 %v7215_v33, %v8493_v3  ;;  %v4854_v53 = vrot.slane %v3125_v38, 2  ;;  %v4860_v42 = vrot.slane %v3125_v38, 3 }
 0x420   :  { %v3124_v2 = vadd.f32 %v7583_v60, %v9003_v26  ;;  %v4852_v4 = vadd.f32 %v4848_v43, %v3125_v38  ;;  %v7585_v36 = vadd.f32 %v8493_v3, %v3087_v15  ;;  %v3823_v51 = vadd.f32 %v3819_v40, %v3817_v12 }
 0x421   :  { %v3151_v10 = vmax.f32 %v3149_v50, 0.0  ;;  %v3486_v11 = vmul.f32 0.25, %v3484_v59  ;;  %v9004_v28 = vmax.f32 %v8151_v57, 0.0  ;;  %v9005_v47 = vmax.f32 %v8158_v61, 0.0 }
 0x422   :  { %v4503_v5 = vrot.slane %v3124_v2, 1  ;;  %v4858_v48 = vadd.f32 %v4854_v53, %v4852_v4  ;;  %v4509_v0 = vrot.slane %v3124_v2, 2  ;;  %v3829_v60 = vadd.f32 %v3825_v23, %v3823_v51 }
 0x423   :  { %v8650_v56 = vadd.f32 %v7584_v41, %v9004_v28  ;;  %v3126_v31 = vadd.f32 %v7585_v36, %v9005_v47  ;;  %v3172_v62 = vrot.slane %v3151_v10, 3  ;;  %v3319_v43 = vrot.slane %v3151_v10, 7 }
 0x424   :  { %v4507_v33 = vadd.f32 %v4503_v5, %v3124_v2  ;;  %v4174_v38 = vadd.f32 %v4170_v45, %v4168_v35  ;;  %v4864_v26 = vadd.f32 %v4860_v42, %v4858_v48  ;;  %v4515_v3 = vrot.slane %v3124_v2, 3 }
 0x425   :  { %v5538_v15 = vrot.slane %v8650_v56, 1  ;;  %v5544_v59 = vrot.slane %v8650_v56, 2  ;;  %v5193_v50 = vrot.slane %v3126_v31, 1  ;;  %v5199_v12 = vrot.slane %v3126_v31, 2 }
 0x426   :  { %v4513_v40 = vadd.f32 %v4509_v0, %v4507_v33  ;;  %v3174_v61 = vsel %vm3173_vm3, %v3172_v62, %v8622_v9  ;;  %v9006_v23 = vmax.f32 %v8576_v37, 0.0  ;;  %v3488_v45 = vmax.f32 %v3486_v11, 0.0 }
 0x427   :  { %v5542_v57 = vadd.f32 %v5538_v15, %v8650_v56  ;;  %v5197_v35 = vadd.f32 %v5193_v50, %v3126_v31  ;;  %v5205_v2 = vrot.slane %v3126_v31, 3  ;;  %6553 = vmatmul.mubr.msk.f32.vlgmr.msra.gmra.mrb[26].mxu0 %vm73_vm2, %v3174_v61  ;;  %v3831_v4 = vmul.f32 0.25, %v3829_v60 }
 0x428   :  { %v8662_v41 = vsel %vm3173_vm3, %v3319_v43, %v9006_v23  ;;  %v3832_v53 = vmax.f32 %v8640_v6, 0.0  ;;  %v4519_v42 = vadd.f32 %v4515_v3, %v4513_v40  ;;  %v9007_v36 = vpack.c.bf16 %v8499_v21, %v8497_v20 }
 0x429   :  { %v9008_v10 = vmov 0.0   ;;  %v3500_v9 = vrot.slane %v3488_v45, 7  ;;  %v3660_v37 = vrot.slane %v3488_v45, 3  ;;  %v4176_v51 = vmul.f32 0.25, %v4174_v38 }
 0x42a   :  { %7271 = vmatpush1.bf16.msra.mxu0 %v9007_v36  ;;  %3312 = vmatprep.mubr.f32.mxu0 %v9008_v10  ;;  %v5548_v5 = vadd.f32 %v5544_v59, %v5542_v57  ;;  %v5203_v48 = vadd.f32 %v5199_v12, %v5197_v35  ;;  %v9009_v11 = vpack.c.bf16 %v8505_v24, %v8501_v22  ;;  %v3833_v0 = vmax.f32 %v3831_v4, 0.0  ;;  %v3492_v35 = vld [vmem:[#allocation3 + $0x90] sm:$0xff]  ;;  %v3656_v36 = vld [vmem:[#allocation3 + $0xe8] sm:$0xff] }
 0x42b   :  { %v4177_v28 = vmax.f32 %v8642_v39, 0.0  ;;  %v8677_v6 = vsel %vm3173_vm3, %v3500_v9, %v3487_v13  ;;  %v8681_v20 = vsel %vm3173_vm3, %v3660_v37, %v8633_v52  ;;  %v4004_v21 = vrot.slane %v3832_v53, 4 }
 0x42c   :  { %7273 = vmatprep.subr.bf16.mxu0 %v9009_v11  ;;  %v4178_v47 = vmax.f32 %v4176_v51, 0.0  ;;  %v5209_v31 = vadd.f32 %v5205_v2, %v5203_v48  ;;  %v3845_v60 = vrot.slane %v3833_v0, 7  ;;  %v4005_v22 = vrot.slane %v3833_v0, 3  ;;  %v3496_v2 = vld [vmem:[#allocation3 + $0xb0] sm:$0xff]  ;;  %v3655_v0 = vld [vmem:[#allocation3 + $0xe0] sm:$0xff] }
 0x42d   :  { %6554 = vmatmul.mubr.msk.f32.vlgmr.msra.gmra.mrb[28].mxu0 %vm73_vm2, %v3174_v61  ;;  %v4349_v24 = vrot.slane %v4177_v28, 4  ;;  %v9010_v39 = vpack.c.bf16 %v8509_v27, %v8507_v25  ;;  %v9011_v52 = vrot.slane %v8573_v8, 3  ;;  %v4521_v62 = vmul.f32 0.25, %v4519_v42  ;;  %v3652_v42 = vld [vmem:[#allocation3 + $0xc8] sm:$0xff] }
 0x42e   :  { %3387 = vmatprep.mubr.f32.mxu0 %v9008_v10  ;;  %v4190_v63 = vrot.slane %v4178_v47, 7  ;;  %v4350_v13 = vrot.slane %v4178_v47, 3  ;;  %v9012_v43 = vpack.c.bf16 %v8515_v32, %v8513_v29  ;;  %v8695_v38 = vsel %vm3173_vm3, %v3845_v60, %v3832_v53  ;;  %v5911_v47 = vld [vmem:[#allocation6 + $0x8] sm:$0xff] }
 0x42f   :  { %7275 = vmatpush1.bf16.msra.mxu0 %v9010_v39  ;;  %v4518_v33 = vadd.f32 %v9011_v52, %v8607_v7  ;;  %v8698_v3 = vsel %vm3173_vm3, %v4005_v22, %v4004_v21  ;;  %v9013_v25 = vrot.slane %v8569_v1, 3  ;;  %v4866_v15 = vmul.f32 0.25, %v4864_v26  ;;  %v5910_v39 = vld [vmem:[#allocation6] sm:$0xff] }
 0x430   :  { %7277 = vmatprep.subr.bf16.mxu0 %v9012_v43  ;;  %v8704_v40 = vsel %vm3173_vm3, %v4190_v63, %v4177_v28  ;;  %v8707_v8 = vsel %vm3173_vm3, %v4350_v13, %v4349_v24  ;;  %v4523_v29 = vmax.f32 %v4521_v62, 0.0  ;;  %v9014_v50 = vrot.slane %v8595_v19, 3  ;;  %v3654_v28 = vld [vmem:[#allocation3 + $0xd8] sm:$0xff]  ;;  %v5912_v63 = vld [vmem:[#allocation6 + $0x10] sm:$0xff]  ;;  %v5915_v62 = vld [vmem:[#allocation6 + $0x28] sm:$0xff] }
 0x431   :  { %v4863_v27 = vadd.f32 %v9013_v25, %v8602_v18  ;;  %v4520_v7 = vmul.f32 0.25, %v4518_v33  ;;  %v4868_v59 = vmax.f32 %v4866_v15, 0.0  ;;  %v5211_v1 = vmul.f32 0.25, %v5209_v31  ;;  %v5913_v24 = vld [vmem:[#allocation6 + $0x18] sm:$0xff] }
 0x432   :  { %6555 = vmatmul.mubr.msk.f32.vlgmr.msra.gmra.mrb[26].mxu0 %vm73_vm2, %v8662_v41  ;;  %v5208_v12 = vadd.f32 %v9014_v50, %v8625_v14  ;;  %v5550_v18 = vrot.slane %v8650_v56, 3  ;;  %v9015_v26 = vpack.c.bf16 %v8522_v44, %v8520_v30  ;;  %v4535_v61 = vrot.slane %v4523_v29, 7  ;;  %v3658_v13 = vld [vmem:[#allocation3 + $0xf8] sm:$0xff]  ;;  %v3657_v50 = vld [vmem:[#allocation3 + $0xf0] sm:$0xff] }
 0x433   :  { %v4865_v32 = vmul.f32 0.25, %v4863_v27  ;;  %3458 = vmatprep.mubr.f32.mxu0 %v9008_v10  ;;  %v4522_v57 = vmax.f32 %v4520_v7, 0.0  ;;  %v4695_v23 = vrot.slane %v4523_v29, 3  ;;  %v9016_v45 = vpack.c.bf16 %v8531_v54, %v8524_v46  ;;  %v3651_v46 = vld [vmem:[#allocation3 + $0xc0] sm:$0xff]  ;;  %v5917_v43 = vld [vmem:[#allocation6 + $0x38] sm:$0xff]  ;;  %v5916_v29 = vld [vmem:[#allocation6 + $0x30] sm:$0xff] }
 0x434   :  { %7279 = vmatpush1.bf16.msra.mxu0 %v9015_v26  ;;  %v4880_v14 = vrot.slane %v4868_v59, 7  ;;  %v5040_v4 = vrot.slane %v4868_v59, 3  ;;  %v5210_v53 = vmul.f32 0.25, %v5208_v12  ;;  %v5554_v56 = vadd.f32 %v5550_v18, %v5548_v5  ;;  %v5914_v7 = vld [vmem:[#allocation6 + $0x20] sm:$0xff]  ;;  %v3653_v59 = vld [vmem:[#allocation3 + $0xd0] sm:$0xff]  ;;  %v3836_v12 = vld [vmem:[#allocation3 + $0x108] sm:$0xff] }
 0x435   :  { %7281 = vmatprep.subr.bf16.mxu0 %v9016_v45  ;;  %v4867_v19 = vmax.f32 %v4865_v32, 0.0  ;;  %v8723_v30 = vsel %vm3173_vm3, %v4535_v61, %v4522_v57  ;;  %v4694_v44 = vrot.slane %v4522_v57, 4  ;;  %v5213_v9 = vmax.f32 %v5211_v1, 0.0  ;;  %v3840_v26 = vld [vmem:[#allocation3 + $0x128] sm:$0xff]  ;;  %v5921_v45 = vld [vmem:[#allocation6 + $0x58] sm:$0xff] }
 0x436   :  { %v5549_v37 = vrot.slane %v8587_v49, 3  ;;  %v5212_v48 = vmax.f32 %v5210_v53, 0.0  ;;  %v9017_v5 = vpack.c.bf16 %v8535_v58, %v8533_v55  ;;  %v7286_v11 = vpack.c.bf16 %v3496_v2, %v3492_v35  ;;  %v5920_v53 = vld [vmem:[#allocation6 + $0x50] sm:$0xff] }
 0x437   :  { %6556 = vmatmul.mubr.msk.f32.vlgmr.msra.gmra.mrb[28].mxu0 %vm73_vm2, %v8662_v41  ;;  %v8729_v54 = vsel %vm3173_vm3, %v4880_v14, %v4867_v19  ;;  %v5039_v51 = vrot.slane %v4867_v19, 4  ;;  %v8736_v49 = vsel %vm3173_vm3, %v4695_v23, %v4694_v44  ;;  %v5225_v21 = vrot.slane %v5213_v9, 7  ;;  %v5919_v23 = vld [vmem:[#allocation6 + $0x48] sm:$0xff]  ;;  %v3838_v44 = vld [vmem:[#allocation3 + $0x118] sm:$0xff] }
 0x438   :  { %7283 = vmatpush1.bf16.msra.mxu0 %v9017_v5  ;;  %3568 = vmatprep.mubr.f32.mxu0 %v9008_v10  ;;  %v5385_v41 = vrot.slane %v5213_v9, 3  ;;  %v9018_v31 = vpack.c.bf16 %v8551_v34, %v8549_v17  ;;  %v7288_v60 = vpack.c.bf16 %v3656_v36, %v3652_v42  ;;  %v5384_v55 = vrot.slane %v5212_v48, 4  ;;  %v3835_v42 = vld [vmem:[#allocation3 + $0x100] sm:$0xff] }
 0x439   :  { %v8742_v22 = vsel %vm3173_vm3, %v5040_v4, %v5039_v51  ;;  %v5553_v58 = vadd.f32 %v5549_v37, %v8618_v16  ;;  %v8746_v52 = vsel %vm3173_vm3, %v5225_v21, %v5212_v48  ;;  %v5556_v33 = vmul.f32 0.25, %v5554_v56  ;;  %v5918_v4 = vld [vmem:[#allocation6 + $0x40] sm:$0xff]  ;;  %v3842_v37 = vld [vmem:[#allocation3 + $0x138] sm:$0xff]  ;;  %v3837_v21 = vld [vmem:[#allocation3 + $0x110] sm:$0xff] }
 0x43a   :  { %7285 = vmatprep.subr.bf16.mxu0 %v9018_v31  ;;  %v8751_v17 = vsel %vm3173_vm3, %v5385_v41, %v5384_v55  ;;  %v7290_v16 = vpack.c.bf16 %v3655_v0, %v3651_v46  ;;  %v7392_v27 = vpack.c.bf16 %v5913_v24, %v5911_v47  ;;  %v7394_v15 = vpack.c.bf16 %v5912_v63, %v5910_v39  ;;  %v3839_v36 = vld [vmem:[#allocation3 + $0x120] sm:$0xff]  ;;  %v5923_v46 = vld [vmem:[#allocation6 + $0x68] sm:$0xff]  ;;  %v5925_v51 = vld [vmem:[#allocation6 + $0x78] sm:$0xff] }
 0x43b   :  { %6557 = vmatmul.mubr.msk.f32.vlgmr.msra.gmra.mrb[26].mxu0 %vm73_vm2, %v8677_v6  ;;  %v5555_v34 = vmul.f32 0.25, %v5553_v58  ;;  %v5558_v25 = vmax.f32 %v5556_v33, 0.0  ;;  %v7292_v32 = vpack.c.bf16 %v3658_v13, %v3654_v28  ;;  %v7396_v18 = vpack.c.bf16 %v5917_v43, %v5915_v62  ;;  %v5924_v0 = vld [vmem:[#allocation6 + $0x70] sm:$0xff]  ;;  %v3997_v47 = vld [vmem:[#allocation3 + $0x148] sm:$0xff]  ;;  %v5929_v58 = vld [vmem:[#allocation6 + $0x98] sm:$0xff] }
 0x43c   :  { %7287 = vmatpush1.bf16.msra.mxu0 %v7286_v11  ;;  %3639 = vmatprep.mubr.f32.mxu0 %v9008_v10  ;;  %v7398_v2 = vpack.c.bf16 %v5916_v29, %v5914_v7  ;;  %v7294_v19 = vpack.c.bf16 %v3657_v50, %v3653_v59  ;;  %v7296_v56 = vpack.c.bf16 %v3840_v26, %v3836_v12  ;;  %v5922_v11 = vld [vmem:[#allocation6 + $0x60] sm:$0xff]  ;;  %v3841_v41 = vld [vmem:[#allocation3 + $0x130] sm:$0xff]  ;;  %v5927_v55 = vld [vmem:[#allocation6 + $0x88] sm:$0xff] }
 0x43d   :  { %7289 = vmatprep.subr.bf16.mxu0 %v7288_v60  ;;  %v5557_v1 = vmax.f32 %v5555_v34, 0.0  ;;  %v5570_v57 = vrot.slane %v5558_v25, 7  ;;  %v5730_v61 = vrot.slane %v5558_v25, 3  ;;  %7393 = vmatprep.subr.bf16.mxu1 %v7392_v27  ;;  %v7402_v48 = vpack.c.bf16 %v5920_v53, %v5918_v4  ;;  %v4001_v60 = vld [vmem:[#allocation3 + $0x168] sm:$0xff]  ;;  %v5926_v63 = vld [vmem:[#allocation6 + $0x80] sm:$0xff]  ;;  %v5928_v13 = vld [vmem:[#allocation6 + $0x90] sm:$0xff] }
 0x43e   :  { %7395 = vmatpush1.bf16.msra.mxu1 %v7394_v15  ;;  %v7298_v5 = vpack.c.bf16 %v3839_v36, %v3835_v42  ;;  %v7300_v28 = vpack.c.bf16 %v3842_v37, %v3838_v44  ;;  %v7404_v31 = vpack.c.bf16 %v5925_v51, %v5923_v46  ;;  %v7406_v24 = vpack.c.bf16 %v5924_v0, %v5922_v11  ;;  %v3996_v62 = vld [vmem:[#allocation3 + $0x140] sm:$0xff]  ;;  %v3999_v34 = vld [vmem:[#allocation3 + $0x158] sm:$0xff]  ;;  %v5931_v27 = vld [vmem:[#allocation6 + $0xa8] sm:$0xff] }
 0x43f   :  { %6558 = vmatmul.mubr.msk.f32.vlgmr.msra.gmra.mrb[28].mxu0 %vm73_vm2, %v8677_v6  ;;  %v5729_v35 = vrot.slane %v5557_v1, 4  ;;  %v8758_v14 = vsel %vm3173_vm3, %v5570_v57, %v5557_v1  ;;  %7397 = vmatprep.subr.bf16.mxu1 %v7396_v18  ;;  %v7400_v6 = vpack.c.bf16 %v5921_v45, %v5919_v23  ;;  %v7302_v39 = vpack.c.bf16 %v3841_v41, %v3837_v21  ;;  %v4000_v43 = vld [vmem:[#allocation3 + $0x160] sm:$0xff]  ;;  %v4003_v25 = vld [vmem:[#allocation3 + $0x178] sm:$0xff]  ;;  %v3998_v50 = vld [vmem:[#allocation3 + $0x150] sm:$0xff] }
 0x440   :  { %7291 = vmatpush1.bf16.msra.mxu0 %v7290_v16  ;;  %3728 = vmatprep.mubr.f32.mxu0 %v9008_v10  ;;  %v7304_v33 = vpack.c.bf16 %v4001_v60, %v3997_v47  ;;  %v7408_v16 = vpack.c.bf16 %v5929_v58, %v5927_v55  ;;  %v5933_v15 = vld [vmem:[#allocation6 + $0xb8] sm:$0xff]  ;;  %v7306_v7 = vpack.c.bf16 %v4000_v43, %v3996_v62  ;;  %v5930_v29 = vld [vmem:[#allocation6 + $0xa0] sm:$0xff]  ;;  %v4002_v12 = vld [vmem:[#allocation3 + $0x170] sm:$0xff] }
 0x441   :  { %7293 = vmatprep.subr.bf16.mxu0 %v7292_v32  ;;  %v8761_v9 = vsel %vm3173_vm3, %v5730_v61, %v5729_v35  ;;  %v5932_v32 = vld [vmem:[#allocation6 + $0xb0] sm:$0xff]  ;;  %v7308_v59 = vpack.c.bf16 %v4003_v25, %v3999_v34  ;;  %v4181_v1 = vld [vmem:[#allocation3 + $0x188] sm:$0xff]  ;;  %v7412_v18 = vpack.c.bf16 %v5933_v15, %v5931_v27  ;;  %v5937_v61 = vld [vmem:[#allocation6 + $0xd8] sm:$0xff]  ;;  %v7310_v45 = vpack.c.bf16 %v4002_v12, %v3998_v50 }
 0x442   :  { %7399 = vmatpush1.bf16.msra.mxu1 %v7398_v2  ;;  %v4185_v26 = vld [vmem:[#allocation3 + $0x1a8] sm:$0xff]  ;;  %v7414_v23 = vpack.c.bf16 %v5932_v32, %v5930_v29  ;;  %v5934_v35 = vld [vmem:[#allocation6 + $0xc0] sm:$0xff]  ;;  %v5936_v2 = vld [vmem:[#allocation6 + $0xd0] sm:$0xff] }
 0x443   :  { %6559 = vmatmul.mubr.msk.f32.vlgmr.msra.gmra.mrb[26].mxu0 %vm73_vm2, %v8681_v20  ;;  %7401 = vmatprep.subr.bf16.mxu1 %v7400_v6  ;;  %v5935_v57 = vld [vmem:[#allocation6 + $0xc8] sm:$0xff]  ;;  %v4180_v4 = vld [vmem:[#allocation3 + $0x180] sm:$0xff]  ;;  %v4187_v36 = vld [vmem:[#allocation3 + $0x1b8] sm:$0xff] }
 0x444   :  { %7295 = vmatpush1.bf16.msra.mxu0 %v7294_v19  ;;  %3799 = vmatprep.mubr.f32.mxu0 %v9008_v10  ;;  %v7312_v19 = vpack.c.bf16 %v4185_v26, %v4181_v1  ;;  %v4184_v53 = vld [vmem:[#allocation3 + $0x1a0] sm:$0xff]  ;;  %v7416_v42 = vpack.c.bf16 %v5937_v61, %v5935_v57  ;;  %v5939_v44 = vld [vmem:[#allocation6 + $0xe8] sm:$0xff]  ;;  %v5941_v6 = vld [vmem:[#allocation6 + $0xf8] sm:$0xff] }
 0x445   :  { %7297 = vmatprep.subr.bf16.mxu0 %v7296_v56  ;;  %v4183_v56 = vld [vmem:[#allocation3 + $0x198] sm:$0xff]  ;;  %v7314_v37 = vpack.c.bf16 %v4184_v53, %v4180_v4  ;;  %v5938_v46 = vld [vmem:[#allocation6 + $0xe0] sm:$0xff]  ;;  %v5940_v51 = vld [vmem:[#allocation6 + $0xf0] sm:$0xff] }
 0x446   :  { %7403 = vmatpush1.bf16.msra.mxu1 %v7402_v48  ;;  %v7316_v48 = vpack.c.bf16 %v4187_v36, %v4183_v56  ;;  %v4186_v11 = vld [vmem:[#allocation3 + $0x1b0] sm:$0xff]  ;;  %v4342_v0 = vld [vmem:[#allocation3 + $0x1c8] sm:$0xff]  ;;  %v5945_v47 = vld [vmem:[#allocation6 + $0x118] sm:$0xff] }
 0x447   :  { %6560 = vmatmul.mubr.msk.f32.vlgmr.msra.gmra.mrb[28].mxu0 %vm73_vm2, %v8681_v20  ;;  %7405 = vmatprep.subr.bf16.mxu1 %v7404_v31  ;;  %v7410_v20 = vpack.c.bf16 %v5928_v13, %v5926_v63  ;;  %v4346_v21 = vld [vmem:[#allocation3 + $0x1e8] sm:$0xff]  ;;  %v7422_v31 = vpack.c.bf16 %v5940_v51, %v5938_v46  ;;  %v5942_v55 = vld [vmem:[#allocation6 + $0x100] sm:$0xff]  ;;  %v5944_v58 = vld [vmem:[#allocation6 + $0x110] sm:$0xff] }
 0x448   :  { %7299 = vmatpush1.bf16.msra.mxu0 %v7298_v5  ;;  %3913 = vmatprep.mubr.f32.mxu0 %v9008_v10  ;;  %v4182_v5 = vld [vmem:[#allocation3 + $0x190] sm:$0xff]  ;;  %v5943_v41 = vld [vmem:[#allocation6 + $0x108] sm:$0xff]  ;;  %v4345_v63 = vld [vmem:[#allocation3 + $0x1e0] sm:$0xff] }
 0x449   :  { %7301 = vmatprep.subr.bf16.mxu0 %v7300_v28  ;;  %v7420_v28 = vpack.c.bf16 %v5941_v6, %v5939_v44  ;;  %v7318_v60 = vpack.c.bf16 %v4186_v11, %v4182_v5  ;;  %v4344_v13 = vld [vmem:[#allocation3 + $0x1d8] sm:$0xff]  ;;  %v5947_v43 = vld [vmem:[#allocation6 + $0x128] sm:$0xff]  ;;  %v5946_v25 = vld [vmem:[#allocation6 + $0x120] sm:$0xff] }
 0x44a   :  { %7407 = vmatpush1.bf16.msra.mxu1 %v7406_v24  ;;  %v7320_v24 = vpack.c.bf16 %v4346_v21, %v4342_v0  ;;  %v4348_v62 = vld [vmem:[#allocation3 + $0x1f8] sm:$0xff]  ;;  %v5948_v27 = vld [vmem:[#allocation6 + $0x130] sm:$0xff]  ;;  %v4526_v29 = vld [vmem:[#allocation3 + $0x208] sm:$0xff] }
 0x44b   :  { %6561 = vmatmul.mubr.msk.f32.vlgmr.msra.gmra.mrb[26].mxu0 %vm73_vm2, %v8695_v38  ;;  %7409 = vmatprep.subr.bf16.mxu1 %v7408_v16  ;;  %v5949_v34 = vld [vmem:[#allocation6 + $0x138] sm:$0xff]  ;;  %v7324_v15 = vpack.c.bf16 %v4348_v62, %v4344_v13  ;;  %v5951_v50 = vld [vmem:[#allocation6 + $0x148] sm:$0xff]  ;;  %v7430_v1 = vpack.c.bf16 %v5948_v27, %v5946_v25  ;;  %v5950_v26 = vld [vmem:[#allocation6 + $0x140] sm:$0xff] }
 0x44c   :  { %7303 = vmatpush1.bf16.msra.mxu0 %v7302_v39  ;;  %3984 = vmatprep.mubr.f32.mxu0 %v9008_v10  ;;  %v4341_v39 = vld [vmem:[#allocation3 + $0x1c0] sm:$0xff]  ;;  %v7428_v32 = vpack.c.bf16 %v5949_v34, %v5947_v43  ;;  %v5953_v12 = vld [vmem:[#allocation6 + $0x158] sm:$0xff]  ;;  %v5952_v57 = vld [vmem:[#allocation6 + $0x150] sm:$0xff] }
 0x44d   :  { %7305 = vmatprep.subr.bf16.mxu0 %v7304_v33  ;;  %v7424_v33 = vpack.c.bf16 %v5945_v47, %v5943_v41  ;;  %v7322_v16 = vpack.c.bf16 %v4345_v63, %v4341_v39  ;;  %v5955_v4 = vld [vmem:[#allocation6 + $0x168] sm:$0xff]  ;;  %v5957_v53 = vld [vmem:[#allocation6 + $0x178] sm:$0xff]  ;;  %v5956_v36 = vld [vmem:[#allocation6 + $0x170] sm:$0xff] }
 0x44e   :  { %7411 = vmatpush1.bf16.msra.mxu1 %v7410_v20  ;;  %v4343_v20 = vld [vmem:[#allocation3 + $0x1d0] sm:$0xff]  ;;  %v7436_v46 = vpack.c.bf16 %v5957_v53, %v5955_v4  ;;  %v4691_v51 = vld [vmem:[#allocation3 + $0x268] sm:$0xff]  ;;  %v5961_v5 = vld [vmem:[#allocation6 + $0x198] sm:$0xff] }
 0x44f   :  { %6562 = vmatmul.mubr.msk.f32.vlgmr.msra.gmra.mrb[28].mxu0 %vm73_vm2, %v8695_v38  ;;  %7413 = vmatprep.subr.bf16.mxu1 %v7412_v18  ;;  %v7418_v38 = vpack.c.bf16 %v5936_v2, %v5934_v35  ;;  %v4528_v35 = vld [vmem:[#allocation3 + $0x218] sm:$0xff]  ;;  %v7432_v2 = vpack.c.bf16 %v5953_v12, %v5951_v50  ;;  %v4527_v6 = vld [vmem:[#allocation3 + $0x210] sm:$0xff]  ;;  %v4686_v47 = vld [vmem:[#allocation3 + $0x240] sm:$0xff] }
 0x450   :  { %7307 = vmatpush1.bf16.msra.mxu0 %v7306_v7  ;;  %4073 = vmatprep.mubr.f32.mxu0 %v9008_v10  ;;  %v4347_v7 = vld [vmem:[#allocation3 + $0x1f0] sm:$0xff]  ;;  %v5965_v39 = vld [vmem:[#allocation6 + $0x1b8] sm:$0xff]  ;;  %v5962_v13 = vld [vmem:[#allocation6 + $0x1a0] sm:$0xff] }
 0x451   :  { %7309 = vmatprep.subr.bf16.mxu0 %v7308_v59  ;;  %v4530_v59 = vld [vmem:[#allocation3 + $0x228] sm:$0xff]  ;;  %v7326_v18 = vpack.c.bf16 %v4347_v7, %v4343_v20  ;;  %v5960_v21 = vld [vmem:[#allocation6 + $0x190] sm:$0xff]  ;;  %v4870_v50 = vld [vmem:[#allocation3 + $0x280] sm:$0xff] }
 0x452   :  { %7415 = vmatpush1.bf16.msra.mxu1 %v7414_v23  ;;  %v7328_v61 = vpack.c.bf16 %v4530_v59, %v4526_v29  ;;  %v4525_v23 = vld [vmem:[#allocation3 + $0x200] sm:$0xff]  ;;  %v4688_v43 = vld [vmem:[#allocation3 + $0x250] sm:$0xff]  ;;  %v4875_v25 = vld [vmem:[#allocation3 + $0x2a8] sm:$0xff] }
 0x453   :  { %6563 = vmatmul.mubr.msk.f32.vlgmr.msra.gmra.mrb[26].mxu0 %vm73_vm2, %v8698_v3  ;;  %7417 = vmatprep.subr.bf16.mxu1 %v7416_v42  ;;  %v5954_v42 = vld [vmem:[#allocation6 + $0x160] sm:$0xff]  ;;  %v4692_v34 = vld [vmem:[#allocation3 + $0x270] sm:$0xff]  ;;  %v5967_v27 = vld [vmem:[#allocation6 + $0x1c8] sm:$0xff] }
 0x454   :  { %7311 = vmatpush1.bf16.msra.mxu0 %v7310_v45  ;;  %4144 = vmatprep.mubr.f32.mxu0 %v9008_v10  ;;  %v4529_v45 = vld [vmem:[#allocation3 + $0x220] sm:$0xff]  ;;  %v7438_v11 = vpack.c.bf16 %v5956_v36, %v5954_v42  ;;  %v7342_v7 = vpack.c.bf16 %v4692_v34, %v4688_v43  ;;  %v5038_v42 = vld [vmem:[#allocation3 + $0x2f8] sm:$0xff]  ;;  %v5565_v43 = vld [vmem:[#allocation3 + $0x3a8] sm:$0xff] }
 0x455   :  { %7313 = vmatprep.subr.bf16.mxu0 %v7312_v19  ;;  %v4532_v19 = vld [vmem:[#allocation3 + $0x238] sm:$0xff]  ;;  %v7330_v56 = vpack.c.bf16 %v4529_v45, %v4525_v23  ;;  %v5966_v29 = vld [vmem:[#allocation6 + $0x1c0] sm:$0xff]  ;;  %v4872_v23 = vld [vmem:[#allocation3 + $0x290] sm:$0xff] }
 0x456   :  { %7419 = vmatpush1.bf16.msra.mxu1 %v7418_v38  ;;  %v7332_v44 = vpack.c.bf16 %v4532_v19, %v4528_v35  ;;  %v4531_v38 = vld [vmem:[#allocation3 + $0x230] sm:$0xff]  ;;  %v4874_v12 = vld [vmem:[#allocation3 + $0x2a0] sm:$0xff]  ;;  %v5032_v35 = vld [vmem:[#allocation3 + $0x2c8] sm:$0xff] }
 0x457   :  { %6564 = vmatmul.mubr.msk.f32.vlgmr.msra.gmra.mrb[28].mxu0 %vm73_vm2, %v8698_v3  ;;  %7421 = vmatprep.subr.bf16.mxu1 %v7420_v28  ;;  %v7426_v3 = vpack.c.bf16 %v5944_v58, %v5942_v55  ;;  %v7334_v0 = vpack.c.bf16 %v4531_v38, %v4527_v6  ;;  %v5958_v28 = vld [vmem:[#allocation6 + $0x180] sm:$0xff]  ;;  %v4693_v58 = vld [vmem:[#allocation3 + $0x278] sm:$0xff]  ;;  %v4876_v45 = vld [vmem:[#allocation3 + $0x2b0] sm:$0xff] }
 0x458   :  { %7315 = vmatpush1.bf16.msra.mxu0 %v7314_v37  ;;  %4258 = vmatprep.mubr.f32.mxu0 %v9008_v10  ;;  %v4687_v37 = vld [vmem:[#allocation3 + $0x248] sm:$0xff]  ;;  %v7350_v19 = vpack.c.bf16 %v4876_v45, %v4872_v23  ;;  %v5031_v53 = vld [vmem:[#allocation3 + $0x2c0] sm:$0xff]  ;;  %v5037_v6 = vld [vmem:[#allocation3 + $0x2f0] sm:$0xff] }
 0x459   :  { %7317 = vmatprep.subr.bf16.mxu0 %v7316_v48  ;;  %v5959_v48 = vld [vmem:[#allocation6 + $0x188] sm:$0xff]  ;;  %v7336_v41 = vpack.c.bf16 %v4691_v51, %v4687_v37  ;;  %v5727_v23 = vld [vmem:[#allocation3 + $0x3f0] sm:$0xff] }
 0x45a   :  { %7423 = vmatpush1.bf16.msra.mxu1 %v7422_v31  ;;  %v4690_v31 = vld [vmem:[#allocation3 + $0x260] sm:$0xff]  ;;  %v7440_v55 = vpack.c.bf16 %v5961_v5, %v5959_v48  ;;  %v5216_v38 = vld [vmem:[#allocation3 + $0x308] sm:$0xff] }
 0x45b   :  { %6565 = vmatmul.mubr.msk.f32.vlgmr.msra.gmra.mrb[26].mxu0 %vm73_vm2, %v8704_v40  ;;  %7425 = vmatprep.subr.bf16.mxu1 %v7424_v33  ;;  %v7338_v63 = vpack.c.bf16 %v4690_v31, %v4686_v47  ;;  %v5964_v33 = vld [vmem:[#allocation6 + $0x1b0] sm:$0xff]  ;;  %v5220_v37 = vld [vmem:[#allocation3 + $0x328] sm:$0xff]  ;;  %v5215_v48 = vld [vmem:[#allocation3 + $0x300] sm:$0xff] }
 0x45c   :  { %7319 = vmatpush1.bf16.msra.mxu0 %v7318_v60  ;;  %4329 = vmatprep.mubr.f32.mxu0 %v9008_v10  ;;  %v4689_v60 = vld [vmem:[#allocation3 + $0x258] sm:$0xff]  ;;  %v7446_v20 = vpack.c.bf16 %v5964_v33, %v5962_v13  ;;  %v7360_v51 = vpack.c.bf16 %v5220_v37, %v5216_v38  ;;  %v5219_v5 = vld [vmem:[#allocation3 + $0x320] sm:$0xff]  ;;  %v5377_v47 = vld [vmem:[#allocation3 + $0x348] sm:$0xff] }
 0x45d   :  { %7321 = vmatprep.subr.bf16.mxu0 %v7320_v24  ;;  %v5963_v24 = vld [vmem:[#allocation6 + $0x1a8] sm:$0xff]  ;;  %v7340_v62 = vpack.c.bf16 %v4693_v58, %v4689_v60  ;;  %v5376_v58 = vld [vmem:[#allocation3 + $0x340] sm:$0xff]  ;;  %v5382_v33 = vld [vmem:[#allocation3 + $0x370] sm:$0xff] }
 0x45e   :  { %7427 = vmatpush1.bf16.msra.mxu1 %v7426_v3  ;;  %v4871_v3 = vld [vmem:[#allocation3 + $0x288] sm:$0xff]  ;;  %v6194_v37 = vld [vmem:[%s8994_s11] sm:$0xff] }
 0x45f   :  { %6566 = vmatmul.mubr.msk.f32.vlgmr.msra.gmra.mrb[28].mxu0 %vm73_vm2, %v8704_v40  ;;  %7429 = vmatprep.subr.bf16.mxu1 %v7428_v32  ;;  %v7434_v40 = vpack.c.bf16 %v5952_v57, %v5950_v26  ;;  %v5968_v32 = vld [vmem:[#allocation6 + $0x1d0] sm:$0xff]  ;;  %v7344_v59 = vpack.c.bf16 %v4875_v25, %v4871_v3  ;;  %v4877_v26 = vld [vmem:[#allocation3 + $0x2b8] sm:$0xff]  ;;  %v7346_v57 = vpack.c.bf16 %v4874_v12, %v4870_v50  ;;  %v5381_v31 = vld [vmem:[#allocation3 + $0x368] sm:$0xff] }
 0x460   :  { %7323 = vmatpush1.bf16.msra.mxu0 %v7322_v16  ;;  %4418 = vmatprep.mubr.f32.mxu0 %v9008_v10  ;;  %v7444_v16 = vpack.c.bf16 %v5965_v39, %v5963_v24  ;;  %v5380_v24 = vld [vmem:[#allocation3 + $0x360] sm:$0xff]  ;;  %v5379_v39 = vld [vmem:[#allocation3 + $0x358] sm:$0xff]  ;;  %v6211_v38 = vld [vmem:[%s8994_s11 + $0x88] sm:$0xff] }
 0x461   :  { %7325 = vmatprep.subr.bf16.mxu0 %v7324_v15  ;;  %v5969_v15 = vld [vmem:[#allocation6 + $0x1d8] sm:$0xff]  ;;  %v5564_v25 = vld [vmem:[#allocation3 + $0x3a0] sm:$0xff] }
 0x462   :  { %7431 = vmatpush1.bf16.msra.mxu1 %v7430_v1  ;;  %v7448_v1 = vpack.c.bf16 %v5969_v15, %v5967_v27  ;;  %v5563_v27 = vld [vmem:[#allocation3 + $0x398] sm:$0xff] }
 0x463   :  { %6567 = vmatmul.mubr.msk.f32.vlgmr.msra.gmra.mrb[26].mxu0 %vm73_vm2, %v8707_v8  ;;  %7433 = vmatprep.subr.bf16.mxu1 %v7432_v2  ;;  %v5036_v2 = vld [vmem:[#allocation3 + $0x2e8] sm:$0xff]  ;;  %v5567_v15 = vld [vmem:[#allocation3 + $0x3b8] sm:$0xff] }
 0x464   :  { %7327 = vmatpush1.bf16.msra.mxu0 %v7326_v18  ;;  %4489 = vmatprep.mubr.f32.mxu0 %v9008_v10  ;;  %v4873_v18 = vld [vmem:[#allocation3 + $0x298] sm:$0xff]  ;;  %v7352_v4 = vpack.c.bf16 %v5036_v2, %v5032_v35  ;;  %v5882_v35 = vlaneseq }
 0x465   :  { %7329 = vmatprep.subr.bf16.mxu0 %v7328_v61  ;;  %v7348_v61 = vpack.c.bf16 %v4877_v26, %v4873_v18  ;;  %v5725_v18 = vld [vmem:[#allocation3 + $0x3e0] sm:$0xff]  ;;  %v5724_v26 = vld [vmem:[#allocation3 + $0x3d8] sm:$0xff] }
 0x466   :  { %7435 = vmatpush1.bf16.msra.mxu1 %v7434_v40  ;;  %v5035_v40 = vld [vmem:[#allocation3 + $0x2e0] sm:$0xff]  ;;  %v8840_v2 = vshrl.u32 %v5882_v35, 7 }
 0x467   :  { %6568 = vmatmul.mubr.msk.f32.vlgmr.msra.gmra.mrb[28].mxu0 %vm73_vm2, %v8707_v8  ;;  %7437 = vmatprep.subr.bf16.mxu1 %v7436_v46  ;;  %v7442_v8 = vpack.c.bf16 %v5960_v21, %v5958_v28  ;;  %v7354_v36 = vpack.c.bf16 %v5035_v40, %v5031_v53  ;;  %v7362_v28 = vpack.c.bf16 %v5219_v5, %v5215_v48  ;;  %v8846_v40 = vld [vmem:[%s8991_s8] sm:$0xf]  ;;  %v6212_v48 = vld [vmem:[%s8994_s11 + $0x90] sm:$0xff]  ;;  %v6213_v5 = vld [vmem:[%s8994_s11 + $0x98] sm:$0xff] }
 0x468   :  { %7331 = vmatpush1.bf16.msra.mxu0 %v7330_v56  ;;  %4603 = vmatprep.mubr.f32.mxu0 %v9008_v10  ;;  %v5034_v56 = vld [vmem:[#allocation3 + $0x2d8] sm:$0xff]  ;;  %v5892_v53 = vsub.s32 2, %v8840_v2 }
 0x469   :  { %7333 = vmatprep.subr.bf16.mxu0 %v7332_v44  ;;  %v5033_v44 = vld [vmem:[#allocation3 + $0x2d0] sm:$0xff] }
 0x46a   :  { %7439 = vmatpush1.bf16.msra.mxu1 %v7438_v11  ;;  %v7358_v46 = vpack.c.bf16 %v5037_v6, %v5033_v44  ;;  %v5218_v11 = vld [vmem:[#allocation3 + $0x318] sm:$0xff]  ;;  %v6210_v6 = vld [vmem:[%s8994_s11 + $0x80] sm:$0xff] }
 0x46b   :  { %6569 = vmatmul.mubr.msk.f32.vlgmr.msra.gmra.mrb[26].mxu0 %vm73_vm2, %v8723_v30  ;;  %7441 = vmatprep.subr.bf16.mxu1 %v7440_v55  ;;  %v7368_v55 = vpack.c.bf16 %v5381_v31, %v5377_v47 }
 0x46c   :  { %7335 = vmatpush1.bf16.msra.mxu0 %v7334_v0  ;;  %4674 = vmatprep.mubr.f32.mxu0 %v9008_v10  ;;  %v5222_v0 = vld [vmem:[#allocation3 + $0x338] sm:$0xff] }
 0x46d   :  { %7337 = vmatprep.subr.bf16.mxu0 %v7336_v41  ;;  %v7364_v21 = vpack.c.bf16 %v5222_v0, %v5218_v11  ;;  %v5221_v41 = vld [vmem:[#allocation3 + $0x330] sm:$0xff]  ;;  %v7524_v0 = vpack.c.bf16 %v6213_v5, %v6212_v48  ;;  %v5982_v5 = vld [vmem:[#allocation6 + $0x240] sm:$0xff] }
 0x46e   :  { %7443 = vmatpush1.bf16.msra.mxu1 %v7442_v8  ;;  %v5383_v8 = vld [vmem:[#allocation3 + $0x378] sm:$0xff] }
 0x46f   :  { %6570 = vmatmul.mubr.msk.f32.vlgmr.msra.gmra.mrb[28].mxu0 %vm73_vm2, %v8723_v30  ;;  %7445 = vmatprep.subr.bf16.mxu1 %v7444_v16  ;;  %v7450_v30 = vpack.c.bf16 %v5968_v32, %v5966_v29  ;;  %v7372_v13 = vpack.c.bf16 %v5383_v8, %v5379_v39  ;;  %v5560_v16 = vld [vmem:[#allocation3 + $0x380] sm:$0xff]  ;;  %v5566_v29 = vld [vmem:[#allocation3 + $0x3b0] sm:$0xff]  ;;  %v5722_v32 = vld [vmem:[#allocation3 + $0x3c8] sm:$0xff] }
 0x470   :  { %7339 = vmatpush1.bf16.msra.mxu0 %v7338_v63  ;;  %4763 = vmatprep.mubr.f32.mxu0 %v9008_v10  ;;  %v7370_v63 = vpack.c.bf16 %v5380_v24, %v5376_v58  ;;  %v6216_v58 = vld [vmem:[%s8994_s11 + $0xb0] sm:$0xff]  ;;  %v6217_v24 = vld [vmem:[%s8994_s11 + $0xb8] sm:$0xff] }
 0x471   :  { %7341 = vmatprep.subr.bf16.mxu0 %v7340_v62  ;;  %v5561_v62 = vld [vmem:[#allocation3 + $0x388] sm:$0xff]  ;;  %v7532_v8 = vpack.c.bf16 %v6217_v24, %v6216_v58  ;;  %v5990_v58 = vld [vmem:[#allocation6 + $0x280] sm:$0xff]  ;;  %v5992_v24 = vld [vmem:[#allocation6 + $0x290] sm:$0xff] }
 0x472   :  { %7447 = vmatpush1.bf16.msra.mxu1 %v7446_v20  ;;  %v7376_v3 = vpack.c.bf16 %v5565_v43, %v5561_v62  ;;  %v7378_v20 = vpack.c.bf16 %v5564_v25, %v5560_v16  ;;  %v6220_v16 = vld [vmem:[%s8994_s11 + $0xd0] sm:$0xff]  ;;  %v6221_v25 = vld [vmem:[%s8994_s11 + $0xd8] sm:$0xff] }
 0x473   :  { %6571 = vmatmul.mubr.msk.f32.vlgmr.msra.gmra.mrb[26].mxu0 %vm73_vm2, %v8736_v49  ;;  %7449 = vmatprep.subr.bf16.mxu1 %v7448_v1  ;;  %v5721_v1 = vld [vmem:[#allocation3 + $0x3c0] sm:$0xff] }
 0x474   :  { %7343 = vmatpush1.bf16.msra.mxu0 %v7342_v7  ;;  %4834 = vmatprep.mubr.f32.mxu0 %v9008_v10  ;;  %v7380_v7 = vpack.c.bf16 %v5567_v15, %v5563_v27  ;;  %v7540_v15 = vpack.c.bf16 %v6221_v25, %v6220_v16  ;;  %v5998_v16 = vld [vmem:[#allocation6 + $0x2c0] sm:$0xff]  ;;  %v6000_v25 = vld [vmem:[#allocation6 + $0x2d0] sm:$0xff] }
 0x475   :  { %7345 = vmatprep.subr.bf16.mxu0 %v7344_v59  ;;  %v5726_v59 = vld [vmem:[#allocation3 + $0x3e8] sm:$0xff] }
 0x476   :  { %7451 = vmatpush1.bf16.msra.mxu1 %v7450_v30  ;;  %v7384_v12 = vpack.c.bf16 %v5726_v59, %v5722_v32  ;;  %v5728_v30 = vld [vmem:[#allocation3 + $0x3f8] sm:$0xff] }
 0x477   :  { %6572 = vmatmul.mubr.msk.f32.vlgmr.msra.gmra.mrb[28].mxu0 %vm73_vm2, %v8736_v49  ;;  %v7356_v49 = vpack.c.bf16 %v5038_v42, %v5034_v56  ;;  %v5972_v42 = vld [vmem:[#allocation6 + $0x1f0] sm:$0xff] }
 0x478   :  { %7347 = vmatpush1.bf16.msra.mxu0 %v7346_v57  ;;  %4948 = vmatprep.mubr.f32.mxu0 %v9008_v10  ;;  %v7386_v57 = vpack.c.bf16 %v5725_v18, %v5721_v1 }
 0x479   :  { %7349 = vmatprep.subr.bf16.mxu0 %v7348_v61  ;;  %v7388_v61 = vpack.c.bf16 %v5728_v30, %v5724_v26  ;;  %v5896_v26 = vsub.s32 3, %v8840_v2 }
 0x47b   :  { %6573 = vmatmul.mubr.msk.f32.vlgmr.msra.gmra.mrb[26].mxu0 %vm73_vm2, %v8729_v54  ;;  %v5897_v35 = vrot.slane %v8846_v40, %v5896_v26  ;;  %v6006_v26 = vld [vmem:[#allocation6 + $0x300] sm:$0xff] }
 0x47c   :  { %7351 = vmatpush1.bf16.msra.mxu0 %v7350_v19  ;;  %5019 = vmatprep.mubr.f32.mxu0 %v9008_v10  ;;  %v5971_v19 = vld [vmem:[#allocation6 + $0x1e8] sm:$0xff] }
 0x47d   :  { %7353 = vmatprep.subr.bf16.mxu0 %v7352_v4  ;;  %v5973_v4 = vld [vmem:[#allocation6 + $0x1f8] sm:$0xff] }
 0x47e   :  { %v7452_v56 = vpack.c.bf16 %v5973_v4, %v5971_v19  ;;  %v5979_v19 = vld [vmem:[#allocation6 + $0x228] sm:$0xff]  ;;  %v5981_v4 = vld [vmem:[#allocation6 + $0x238] sm:$0xff] }
 0x47f   :  { %6574 = vmatmul.mubr.msk.f32.vlgmr.msra.gmra.mrb[28].mxu0 %vm73_vm2, %v8729_v54  ;;  %v5217_v54 = vld [vmem:[#allocation3 + $0x310] sm:$0xff] }
 0x480   :  { %7355 = vmatpush1.bf16.msra.mxu0 %v7354_v36  ;;  %5108 = vmatprep.mubr.f32.mxu0 %v9008_v10  ;;  %v7366_v60 = vpack.c.bf16 %v5221_v41, %v5217_v54  ;;  %v6214_v54 = vld [vmem:[%s8994_s11 + $0xa0] sm:$0xff]  ;;  %v6215_v41 = vld [vmem:[%s8994_s11 + $0xa8] sm:$0xff] }
 0x481   :  { %7357 = vmatprep.subr.bf16.mxu0 %v7356_v49  ;;  %7453 = vmatprep.subr.bf16.mxu1 %v7452_v56  ;;  %v5977_v49 = vld [vmem:[#allocation6 + $0x218] sm:$0xff]  ;;  %v7528_v31 = vpack.c.bf16 %v6215_v41, %v6214_v54  ;;  %v5986_v54 = vld [vmem:[#allocation6 + $0x260] sm:$0xff]  ;;  %v5988_v41 = vld [vmem:[#allocation6 + $0x270] sm:$0xff] }
 0x483   :  { %6575 = vmatmul.mubr.msk.f32.vlgmr.msra.gmra.mrb[26].mxu0 %vm73_vm2, %v8742_v22 }
 0x484   :  { %7359 = vmatpush1.bf16.msra.mxu0 %v7358_v46  ;;  %5179 = vmatprep.mubr.f32.mxu0 %v9008_v10  ;;  %v7520_v46 = vpack.c.bf16 %v6211_v38, %v6210_v6  ;;  %v5980_v6 = vld [vmem:[#allocation6 + $0x230] sm:$0xff] }
 0x485   :  { %7361 = vmatprep.subr.bf16.mxu0 %v7360_v51  ;;  %v6195_v51 = vld [vmem:[%s8994_s11 + $0x8] sm:$0xff] }
 0x486   :  { %v7522_v11 = vpack.c.bf16 %v6195_v51, %v6194_v37  ;;  %v5983_v37 = vld [vmem:[#allocation6 + $0x248] sm:$0xff] }
 0x487   :  { %6576 = vmatmul.mubr.msk.f32.vlgmr.msra.gmra.mrb[28].mxu0 %vm73_vm2, %v8742_v22  ;;  %v5378_v22 = vld [vmem:[#allocation3 + $0x350] sm:$0xff] }
 0x488   :  { %7363 = vmatpush1.bf16.msra.mxu0 %v7362_v28  ;;  %5293 = vmatprep.mubr.f32.mxu0 %v9008_v10  ;;  %v7374_v34 = vpack.c.bf16 %v5382_v33, %v5378_v22  ;;  %v6196_v28 = vld [vmem:[%s8994_s11 + $0x10] sm:$0xff]  ;;  %v6218_v22 = vld [vmem:[%s8994_s11 + $0xc0] sm:$0xff]  ;;  %v6219_v33 = vld [vmem:[%s8994_s11 + $0xc8] sm:$0xff] }
 0x489   :  { %7365 = vmatprep.subr.bf16.mxu0 %v7364_v21  ;;  %v6197_v21 = vld [vmem:[%s8994_s11 + $0x18] sm:$0xff]  ;;  %v7536_v43 = vpack.c.bf16 %v6219_v33, %v6218_v22  ;;  %v5994_v22 = vld [vmem:[#allocation6 + $0x2a0] sm:$0xff]  ;;  %v5996_v33 = vld [vmem:[#allocation6 + $0x2b0] sm:$0xff] }
 0x48a   :  { %v7526_v47 = vpack.c.bf16 %v6197_v21, %v6196_v28 }
 0x48b   :  { %6577 = vmatmul.mubr.msk.f32.vlgmr.msra.gmra.mrb[26].mxu0 %vm73_vm2, %v8746_v52 }
 0x48c   :  { %7367 = vmatpush1.bf16.msra.mxu0 %v7366_v60  ;;  %5364 = vmatprep.mubr.f32.mxu0 %v9008_v10  ;;  %v6198_v60 = vld [vmem:[%s8994_s11 + $0x20] sm:$0xff] }
 0x48d   :  { %7369 = vmatprep.subr.bf16.mxu0 %v7368_v55  ;;  %v6199_v55 = vld [vmem:[%s8994_s11 + $0x28] sm:$0xff] }
 0x48e   :  { %v7530_v39 = vpack.c.bf16 %v6199_v55, %v6198_v60  ;;  %v7470_v60 = vpack.c.bf16 %v5988_v41, %v5986_v54  ;;  %v6026_v54 = vld [vmem:[#allocation6 + $0x3a0] sm:$0xff]  ;;  %v6028_v41 = vld [vmem:[#allocation6 + $0x3b0] sm:$0xff] }
 0x48f   :  { %6578 = vmatmul.mubr.msk.f32.vlgmr.msra.gmra.mrb[28].mxu0 %vm73_vm2, %v8746_v52  ;;  %v5562_v52 = vld [vmem:[#allocation3 + $0x390] sm:$0xff] }
 0x490   :  { %7371 = vmatpush1.bf16.msra.mxu0 %v7370_v63  ;;  %5453 = vmatprep.mubr.f32.mxu0 %v9008_v10  ;;  %v7382_v50 = vpack.c.bf16 %v5566_v29, %v5562_v52  ;;  %v6200_v63 = vld [vmem:[%s8994_s11 + $0x30] sm:$0xff]  ;;  %v6222_v52 = vld [vmem:[%s8994_s11 + $0xe0] sm:$0xff]  ;;  %v6223_v29 = vld [vmem:[%s8994_s11 + $0xe8] sm:$0xff] }
 0x491   :  { %7373 = vmatprep.subr.bf16.mxu0 %v7372_v13  ;;  %v6201_v13 = vld [vmem:[%s8994_s11 + $0x38] sm:$0xff]  ;;  %v7544_v59 = vpack.c.bf16 %v6223_v29, %v6222_v52  ;;  %v6002_v52 = vld [vmem:[#allocation6 + $0x2e0] sm:$0xff]  ;;  %v6004_v29 = vld [vmem:[#allocation6 + $0x2f0] sm:$0xff] }
 0x492   :  { %v7534_v62 = vpack.c.bf16 %v6201_v13, %v6200_v63  ;;  %v7474_v63 = vpack.c.bf16 %v5992_v24, %v5990_v58  ;;  %v6030_v58 = vld [vmem:[#allocation6 + $0x3c0] sm:$0xff]  ;;  %v6032_v24 = vld [vmem:[#allocation6 + $0x3d0] sm:$0xff] }
 0x493   :  { %6579 = vmatmul.mubr.msk.f32.vlgmr.msra.gmra.mrb[26].mxu0 %vm73_vm2, %v8751_v17 }
 0x494   :  { %7375 = vmatpush1.bf16.msra.mxu0 %v7374_v34  ;;  %5524 = vmatprep.mubr.f32.mxu0 %v9008_v10  ;;  %v6202_v34 = vld [vmem:[%s8994_s11 + $0x40] sm:$0xff] }
 0x495   :  { %7377 = vmatprep.subr.bf16.mxu0 %v7376_v3  ;;  %v6203_v3 = vld [vmem:[%s8994_s11 + $0x48] sm:$0xff] }
 0x496   :  { %v7538_v27 = vpack.c.bf16 %v6203_v3, %v6202_v34  ;;  %v7478_v34 = vpack.c.bf16 %v5996_v33, %v5994_v22  ;;  %v6034_v22 = vld [vmem:[#allocation6 + $0x3e0] sm:$0xff]  ;;  %v6036_v33 = vld [vmem:[#allocation6 + $0x3f0] sm:$0xff] }
 0x497   :  { %6580 = vmatmul.mubr.msk.f32.vlgmr.msra.gmra.mrb[28].mxu0 %vm73_vm2, %v8751_v17  ;;  %v5723_v17 = vld [vmem:[#allocation3 + $0x3d0] sm:$0xff] }
 0x498   :  { %7379 = vmatpush1.bf16.msra.mxu0 %v7378_v20  ;;  %5638 = vmatprep.mubr.f32.mxu0 %v9008_v10  ;;  %v7390_v45 = vpack.c.bf16 %v5727_v23, %v5723_v17  ;;  %v6204_v20 = vld [vmem:[%s8994_s11 + $0x50] sm:$0xff]  ;;  %v5974_v17 = vld [vmem:[#allocation6 + $0x200] sm:$0xff] }
 0x499   :  { %7381 = vmatprep.subr.bf16.mxu0 %v7380_v7  ;;  %v6205_v7 = vld [vmem:[%s8994_s11 + $0x58] sm:$0xff]  ;;  %v5976_v23 = vld [vmem:[#allocation6 + $0x210] sm:$0xff] }
 0x49a   :  { %v7542_v32 = vpack.c.bf16 %v6205_v7, %v6204_v20  ;;  %v7458_v56 = vpack.c.bf16 %v5976_v23, %v5974_v17  ;;  %v7482_v20 = vpack.c.bf16 %v6000_v25, %v5998_v16  ;;  %v6224_v25 = vld [vmem:[%s8994_s11 + $0xf0] sm:$0xff] }
 0x49b   :  { %6581 = vmatmul.mubr.msk.f32.vlgmr.msra.gmra.mrb[26].mxu0 %vm73_vm2, %v8758_v14 }
 0x49c   :  { %7383 = vmatpush1.bf16.msra.mxu0 %v7382_v50  ;;  %5709 = vmatprep.mubr.f32.mxu0 %v9008_v10  ;;  %v5884_v50 = vsub.s32 0, %v8840_v2 }
 0x49d   :  { %7385 = vmatprep.subr.bf16.mxu0 %v7384_v12  ;;  %v5888_v12 = vsub.s32 1, %v8840_v2 }
 0x49e   :  { %v5885_v1 = vrot.slane %v8846_v40, %v5884_v50 }
 0x49f   :  { %6582 = vmatmul.mubr.msk.f32.vlgmr.msra.gmra.mrb[28].mxu0 %vm73_vm2, %v8758_v14  ;;  %v5970_v14 = vld [vmem:[#allocation6 + $0x1e0] sm:$0xff]  ;;  %v5889_v18 = vrot.slane %v8846_v40, %v5888_v12 }
 0x4a0   :  { %7387 = vmatpush1.bf16.msra.mxu0 %v7386_v57  ;;  %5798 = vmatprep.mubr.f32.mxu0 %v9008_v10  ;;  %v7454_v36 = vpack.c.bf16 %v5972_v42, %v5970_v14 }
 0x4a1   :  { %7389 = vmatprep.subr.bf16.mxu0 %v7388_v61 }
 0x4a2   :  { %7455 = vmatpush1.bf16.msra.mxu1 %v7454_v36 }
 0x4a3   :  { %6583 = vmatmul.mubr.msk.f32.vlgmr.msra.gmra.mrb[26].mxu0 %vm73_vm2, %v8761_v9 }
 0x4a4   :  { %7391 = vmatpush1.bf16.msra.mxu0 %v7390_v45  ;;  %5869 = vmatprep.mubr.f32.mxu0 %v9008_v10  ;;  %v8849_v10 = vrot.slane %v8846_v40, %v5892_v53 }
 0x4a5   :  { %7521 = vmatprep.subr.bf16.mxu0 %v7520_v46  ;;  %v5985_v46 = vld [vmem:[#allocation6 + $0x258] sm:$0xff] }
 0x4a6   :  { %v7464_v48 = vpack.c.bf16 %v5985_v46, %v5983_v37  ;;  %v6020_v37 = vld [vmem:[#allocation6 + $0x370] sm:$0xff]  ;;  %v6023_v46 = vld [vmem:[#allocation6 + $0x388] sm:$0xff] }
 0x4a7   :  { %6584 = vmatmul.mubr.msk.f32.vlgmr.msra.gmra.mrb[28].mxu0 %vm73_vm2, %v8761_v9  ;;  %v5975_v9 = vld [vmem:[#allocation6 + $0x208] sm:$0xff] }
 0x4a8   :  { %v7456_v44 = vpack.c.bf16 %v5977_v49, %v5975_v9  ;;  %7523 = vmatpush3.bf16.msra.mxu0 %v7522_v11  ;;  %v7460_v49 = vpack.c.bf16 %v5981_v4, %v5979_v19  ;;  %v5984_v11 = vld [vmem:[#allocation6 + $0x250] sm:$0xff]  ;;  %v6015_v19 = vld [vmem:[#allocation6 + $0x348] sm:$0xff]  ;;  %v6017_v4 = vld [vmem:[#allocation6 + $0x358] sm:$0xff] }
 0x4a9   :  { %7525 = vmatprep.subr.bf16.mxu0 %v7524_v0  ;;  %v5987_v0 = vld [vmem:[#allocation6 + $0x268] sm:$0xff]  ;;  %v7466_v28 = vpack.c.bf16 %v5984_v11, %v5982_v5  ;;  %v6022_v5 = vld [vmem:[#allocation6 + $0x380] sm:$0xff]  ;;  %v6024_v11 = vld [vmem:[#allocation6 + $0x390] sm:$0xff] }
 0x4aa   :  { %7457 = vmatprep.subr.bf16.mxu1 %v7456_v44  ;;  %v5978_v44 = vld [vmem:[#allocation6 + $0x220] sm:$0xff] }
 0x4ab   :  { %v7462_v40 = vpack.c.bf16 %v5980_v6, %v5978_v44 }
 0x4ac   :  { %7527 = vmatpush3.bf16.msra.mxu0 %v7526_v47  ;;  %v5991_v47 = vld [vmem:[#allocation6 + $0x288] sm:$0xff] }
 0x4ad   :  { %7529 = vmatprep.subr.bf16.mxu0 %v7528_v31  ;;  %v5993_v31 = vld [vmem:[#allocation6 + $0x298] sm:$0xff] }
 0x4ae   :  { %v7472_v55 = vpack.c.bf16 %v5993_v31, %v5991_v47  ;;  %v6031_v47 = vld [vmem:[#allocation6 + $0x3c8] sm:$0xff]  ;;  %v6033_v31 = vld [vmem:[#allocation6 + $0x3d8] sm:$0xff] }
 0x4b0   :  { %7531 = vmatpush3.bf16.msra.mxu0 %v7530_v39  ;;  %v5995_v39 = vld [vmem:[#allocation6 + $0x2a8] sm:$0xff] }
 0x4b1   :  { %7533 = vmatprep.subr.bf16.mxu0 %v7532_v8  ;;  %v5997_v8 = vld [vmem:[#allocation6 + $0x2b8] sm:$0xff] }
 0x4b2   :  { %v7476_v13 = vpack.c.bf16 %v5997_v8, %v5995_v39  ;;  %v6035_v39 = vld [vmem:[#allocation6 + $0x3e8] sm:$0xff]  ;;  %v6037_v8 = vld [vmem:[#allocation6 + $0x3f8] sm:$0xff] }
 0x4b4   :  { %7535 = vmatpush3.bf16.msra.mxu0 %v7534_v62  ;;  %v5999_v62 = vld [vmem:[#allocation6 + $0x2c8] sm:$0xff] }
 0x4b5   :  { %7537 = vmatprep.subr.bf16.mxu0 %v7536_v43  ;;  %v6001_v43 = vld [vmem:[#allocation6 + $0x2d8] sm:$0xff] }
 0x4b6   :  { %v7480_v3 = vpack.c.bf16 %v6001_v43, %v5999_v62  ;;  %v7518_v62 = vpack.c.bf16 %v6036_v33, %v6034_v22 }
 0x4b8   :  { %7539 = vmatpush3.bf16.msra.mxu0 %v7538_v27  ;;  %v6003_v27 = vld [vmem:[#allocation6 + $0x2e8] sm:$0xff] }
 0x4b9   :  { %7541 = vmatprep.subr.bf16.mxu0 %v7540_v15  ;;  %v6005_v15 = vld [vmem:[#allocation6 + $0x2f8] sm:$0xff] }
 0x4ba   :  { %v7484_v7 = vpack.c.bf16 %v6005_v15, %v6003_v27  ;;  %v6225_v27 = vld [vmem:[%s8994_s11 + $0xf8] sm:$0xff] }
 0x4bb   :  { %v7548_v15 = vpack.c.bf16 %v6225_v27, %v6224_v25 }
 0x4bc   :  { %7543 = vmatpush3.bf16.msra.mxu0 %v7542_v32  ;;  %v6007_v32 = vld [vmem:[#allocation6 + $0x308] sm:$0xff] }
 0x4bd   :  { %7545 = vmatprep.subr.bf16.mxu0 %v7544_v59  ;;  %v6009_v59 = vld [vmem:[#allocation6 + $0x318] sm:$0xff] }
 0x576   :  { %v5800_v30 = vpop.f32.mrb[26].mxu0 }
 0x577   :  { %v5902_v57 = vadd.f32 %v5885_v1, %v5800_v30  ;;  %v5802_v61 = vpop.f32.mrb[27].mxu0  ;;  %v7486_v1 = vpack.c.bf16 %v6004_v29, %v6002_v52  ;;  %v6008_v30 = vld [vmem:[#allocation6 + $0x310] sm:$0xff]  ;;  %v6038_v52 = vld [vmem:[%s8993_s10] sm:$0x3]  ;;  %s7897_s10 = smov [#allocation8]  }
 0x578   :  { %v5903_v45 = vadd.f32 %v5889_v18, %v5802_v61  ;;  %v7488_v18 = vpack.c.bf16 %v6009_v59, %v6007_v32  ;;  %v6013_v61 = vld [vmem:[#allocation6 + $0x338] sm:$0xff]  ;;  %v7490_v17 = vpack.c.bf16 %v6008_v30, %v6006_v26  ;;  %v6043_v29 = vrot.slane %v6038_v52, %v5884_v50  ;;  %s6311_s27 = sshll.u32 %s7897_s10, 4  ;;  %s6312_s27 = int_to_ptr.vmem [resolvable:$true] %s6311_s27 }
 0x579   :  { %v5906_v42 = vmax.f32 %v5902_v57, 0.0  ;;  %v6011_v57 = vld [vmem:[#allocation6 + $0x328] sm:$0xff]  ;;  %v6047_v32 = vrot.slane %v6038_v52, %v5888_v12  ;;  %s7862_s28 = scalar_lea.vmem %s6312_s27, 32  ;;  %p7867_p3 = scmp.lt.s32.totalorder %s6312_s27, %s6312_s27 }
 0x57a   :  { %v5907_v14 = vmax.f32 %v5903_v45, 0.0  ;;  %v5871_v53 = vpop.f32.mrb[28].mxu0  ;;  %v7492_v23 = vpack.c.bf16 %v6013_v61, %v6011_v57  ;;  %v6010_v45 = vld [vmem:[#allocation6 + $0x320] sm:$0xff]  ;;  %p7863_p2 = scmp.ne.s32.totalorder %s6312_s27, %s7862_s28  ;;  %p7868_p4 = scmp.lt.s32.totalorder %s7862_s28, %s7862_s28 }
 0x57b   :  { %v8940_v36 = vadd.f32 %v8849_v10, %v5871_v53  ;;  %v5873_v9 = vpop.f32.mrb[29].mxu0  ;;  %v5989_v10 = vld [vmem:[#allocation6 + $0x278] sm:$0xff]  ;;  %v7496_v53 = vpack.c.bf16 %v6017_v4, %v6015_v19 }
 0x57c   :  { %v5905_v38 = vadd.f32 %v5897_v35, %v5873_v9  ;;  %6114 = vmatprep.mubr.f32.mxu1 %v5907_v14  ;;  %v7468_v21 = vpack.c.bf16 %v5989_v10, %v5987_v0  ;;  %v6012_v35 = vld [vmem:[#allocation6 + $0x330] sm:$0xff]  ;;  %v6019_v9 = vld [vmem:[#allocation6 + $0x368] sm:$0xff]  ;;  %v6029_v10 = vld [vmem:[#allocation6 + $0x3b8] sm:$0xff]  ;;  %p7869_p5 = por %p7868_p4, %p7867_p3 }
 0x57d   :  { %6115 = vmatmul.mubr.f32.vlgmr.msra.gmra.mrb[22].mxu1 %v5906_v42  ;;  %v7494_v14 = vpack.c.bf16 %v6012_v35, %v6010_v45  ;;  %v6016_v42 = vld [vmem:[#allocation6 + $0x350] sm:$0xff]  ;;  %v6027_v0 = vld [vmem:[#allocation6 + $0x3a8] sm:$0xff]  ;;  %v5908_v43 = vmax.f32 %v8940_v36, 0.0 }
 0x57e   :  { %v5909_v51 = vmax.f32 %v5905_v38, 0.0  ;;  %7459 = vmatpush1.bf16.msra.mxu1 %v7458_v56  ;;  %v6014_v56 = vld [vmem:[#allocation6 + $0x340] sm:$0xff]  ;;  %v6208_v36 = vld [vmem:[%s8994_s11 + $0x70] sm:$0xff]  ;;  %p7870_p6 = pnand %p7869_p5, %p7863_p2 }
 0x57f   :  { %7461 = vmatprep.subr.bf16.mxu1 %v7460_v49  ;;  %v6021_v49 = vld [vmem:[#allocation6 + $0x378] sm:$0xff]  ;;  %v7498_v44 = vpack.c.bf16 %v6016_v42, %v6014_v56  ;;  %v6018_v38 = vld [vmem:[#allocation6 + $0x360] sm:$0xff] }
 0x580   :  { %6185 = vmatprep.mubr.f32.mxu1 %v5909_v51  ;;  %v7500_v6 = vpack.c.bf16 %v6021_v49, %v6019_v9  ;;  %v6025_v51 = vld [vmem:[#allocation6 + $0x398] sm:$0xff] }
 0x582   :  { %7463 = vmatpush1.bf16.msra.mxu1 %v7462_v40  ;;  %v7502_v40 = vpack.c.bf16 %v6020_v37, %v6018_v38 }
 0x583   :  { %7465 = vmatprep.subr.bf16.mxu1 %v7464_v48  ;;  %v7504_v48 = vpack.c.bf16 %v6025_v51, %v6023_v46 }
 0x586   :  { %7467 = vmatpush1.bf16.msra.mxu1 %v7466_v28  ;;  %v7506_v28 = vpack.c.bf16 %v6024_v11, %v6022_v5 }
 0x587   :  { %7469 = vmatprep.subr.bf16.mxu1 %v7468_v21  ;;  %v7508_v21 = vpack.c.bf16 %v6029_v10, %v6027_v0 }
 0x58a   :  { %7471 = vmatpush1.bf16.msra.mxu1 %v7470_v60  ;;  %v7510_v60 = vpack.c.bf16 %v6028_v41, %v6026_v54 }
 0x58b   :  { %7473 = vmatprep.subr.bf16.mxu1 %v7472_v55  ;;  %v7512_v55 = vpack.c.bf16 %v6033_v31, %v6031_v47 }
 0x58e   :  { %7475 = vmatpush1.bf16.msra.mxu1 %v7474_v63  ;;  %v7514_v63 = vpack.c.bf16 %v6032_v24, %v6030_v58 }
 0x58f   :  { %7477 = vmatprep.subr.bf16.mxu1 %v7476_v13  ;;  %v7516_v13 = vpack.c.bf16 %v6037_v8, %v6035_v39 }
 0x592   :  { %7479 = vmatpush1.bf16.msra.mxu1 %v7478_v34  ;;  %v6206_v34 = vld [vmem:[%s8994_s11 + $0x60] sm:$0xff] }
 0x593   :  { %7481 = vmatprep.subr.bf16.mxu1 %v7480_v3  ;;  %v6207_v3 = vld [vmem:[%s8994_s11 + $0x68] sm:$0xff] }
 0x594   :  { %v7546_v16 = vpack.c.bf16 %v6207_v3, %v6206_v34 }
 0x596   :  { %7483 = vmatpush1.bf16.msra.mxu1 %v7482_v20  ;;  %v6209_v20 = vld [vmem:[%s8994_s11 + $0x78] sm:$0xff]  ;;  %7547 = vmatpush3.bf16.msra.mxu0 %v7546_v16 }
 0x597   :  { %7485 = vmatprep.subr.bf16.mxu1 %v7484_v7  ;;  %v7550_v7 = vpack.c.bf16 %v6209_v20, %v6208_v36  ;;  %7549 = vmatprep.subr.bf16.mxu0 %v7548_v15 }
 0x59a   :  { %7487 = vmatpush1.bf16.msra.mxu1 %v7486_v1  ;;  %7551 = vmatpush3.bf16.msra.mxu0 %v7550_v7 }
 0x59b   :  { %7489 = vmatprep.subr.bf16.mxu1 %v7488_v18 }
 0x59e   :  { %7491 = vmatpush1.bf16.msra.mxu1 %v7490_v17  ;;  %v6585_v17 = vld [vmem:[%s8995_s12] ss:$0 sm:$0xff] }
 0x59f   :  { %7493 = vmatprep.subr.bf16.mxu1 %v7492_v23 }
 0x5a2   :  { %7495 = vmatpush1.bf16.msra.mxu1 %v7494_v14 }
 0x5a3   :  { %7497 = vmatprep.subr.bf16.mxu1 %v7496_v53 }
 0x5a6   :  { %7499 = vmatpush1.bf16.msra.mxu1 %v7498_v44 }
 0x5a7   :  { %7501 = vmatprep.subr.bf16.mxu1 %v7500_v6 }
 0x5aa   :  { %7503 = vmatpush1.bf16.msra.mxu1 %v7502_v40 }
 0x5ab   :  { %7505 = vmatprep.subr.bf16.mxu1 %v7504_v48 }
 0x5ae   :  { %7507 = vmatpush1.bf16.msra.mxu1 %v7506_v28 }
 0x5af   :  { %7509 = vmatprep.subr.bf16.mxu1 %v7508_v21 }
 0x5b2   :  { %7511 = vmatpush1.bf16.msra.mxu1 %v7510_v60 }
 0x5b3   :  { %7513 = vmatprep.subr.bf16.mxu1 %v7512_v55 }
 0x5b6   :  { %7515 = vmatpush1.bf16.msra.mxu1 %v7514_v63 }
 0x5b7   :  { %7517 = vmatprep.subr.bf16.mxu1 %v7516_v13 }
 0x5ba   :  { %7519 = vmatpush1.bf16.msra.mxu1 %v7518_v62 }
 0x5bd   :  { %6186 = vmatmul.mubr.f32.vlgmr.msra.gmra.mrb[22].mxu1 %v5908_v43 }
 0x690   :  { %v6187_v59 = vpop.f32.mrb[22].mxu1 }
 0x691   :  { %v7586_v1 = vadd.f32 %v6187_v59, %v6043_v29  ;;  %v6189_v18 = vpop.f32.mrb[23].mxu1 }
 0x692   :  { %v7587_v26 = vadd.f32 %v6189_v18, %v6047_v32 }
 0x693   :  { %v6192_v57 = vmax.f32 %v7586_v1, 0.0 }
 0x694   :  { %v6193_v30 = vmax.f32 %v7587_v26, 0.0 }
 0x696   :  { %6297 = vmatprep.mubr.f32.mxu0 %v6193_v30 }
 0x697   :  { %6298 = vmatmul.mubr.f32.vlgmr.msra.gmra.mrb[30].mxu0 %v6192_v57 }
 0x76a   :  { %v6851_v61 = vpop.f32.mrb[30].mxu0 }
 0x76b   :  { %v6852_v23 = vpop.f32.mrb[31].mxu0 }
 0x76c   :  { %v6853_v50 = vadd.f32 %v6852_v23, %v6851_v61 }
 0x76e   :  { %v6300_v2 = vadd.f32 %v6853_v50, %v6585_v17 }
 0x770   :  { %6304 = vst.msk [vmem:[#allocation8] sm:$0x3] %vm6303_vm4, %v6300_v2 }
 0x771   :  { %7873 = shalt.err (!%p7870_p6)
}
 0x772   :  { %s7874_s14 = scalar_lea.hbm %s8996_s13, 32 }
 0x773   :  { %p7875_p7 = scmp.ne.s32.totalorder %s8996_s13, %s7874_s14  ;;  %p7878_p8 = scmp.lt.u32.totalorder %s7874_s14, %s8996_s13 }
 0x775   :  { %p7880_p9 = pnand %p7878_p8, %p7875_p7 }
 0x777   :  { %7883 = shalt.err (!%p7880_p9)
}
 0x778   :  { %6314 = dma.vmem_to_hbm [thread:$0]  %s6312_s27, 32, %s8996_s13, [#allocation5]  }
 0x779   :  { %7888 = dma.done.wait [#allocation5], 32  }
 0x77a   :  { %7889 = vsyncadd [#allocation5], 4294967264 }
 0x77b   :  { %6318 = vsyncpa [#allocation4], 1 }
 0x77c   :  { %6319 = vsyncpa [#allocation7], 1 }
 0x77d   :  { %6320 = vsyncpa [#allocation5], 1 }

</bundles_post_ra>
